<compile_context>
chip_gen: v7x
topology: tpu7x:2x2x1
jax: 0.10.0
libtpu: 0.0.40
codegen_flags: <defaults>
</compile_context>

<pallas_src>
import functools
import math

import jax
import jax.numpy as jnp
from jax.experimental import pallas as pl
from jax.experimental.pallas import tpu as pltpu


def _round_up(v, m):
    return -(-v // m) * m


# ---------------------------------------------------------------------------
# Pallas kernel: one (batch, out-depth, depth-tap) grid step.
#   x_ref   : (1, 1, Hp, Wp, Cin)    current depth-tap input slice (bf16)
#   w_ref   : (Dk, Hk*Wk*Cin, Cout)  full weights, resident in VMEM (bf16)
#   b_ref   : (1, Cout)              bias (f32)
#   o_ref   : (1, 1, Cout, Ho*Wo)    channel-major, lane-dense output block
#   col_ref : (Ho*Wo, Hk*Wk*Cin)     im2col scratch slab (bf16)
#   acc_ref : (Ho*Wo, Cout)          f32 accumulator carried across depth taps
# ---------------------------------------------------------------------------
def _conv_im2col_kernel(x_ref, w_ref, b_ref, o_ref, col_ref, acc_ref, *,
                        hk, wk, ho, wo, sh, sw):
    cin = x_ref.shape[-1]
    kd = pl.program_id(2)

    @pl.when(kd == 0)
    def _init():
        acc_ref[...] = jnp.zeros_like(acc_ref)

    # Build the im2col slab for this depth tap in VMEM scratch: rows are output
    # pixels, columns are ordered (kh, kw, cin) to match the reshaped weights.
    # Windows are read directly from the ref (bounded vreg pressure).
    for kh in range(hk):
        h_idx = pl.ds(kh, ho) if sh == 1 else pl.ds(kh, ho, sh)
        for kw_ in range(wk):
            w_idx = pl.ds(kw_, wo) if sw == 1 else pl.ds(kw_, wo, sw)
            patch = x_ref[0, 0, h_idx, w_idx, :]              # (Ho, Wo, Cin)
            p = kh * wk + kw_
            col_ref[:, p * cin:(p + 1) * cin] = patch.reshape(ho * wo, cin)

    # One MXU matmul per depth tap: (Ho*Wo, Hk*Wk*Cin) @ (Hk*Wk*Cin, Cout),
    # bf16 operands, f32 accumulation.
    acc_ref[...] += jnp.dot(col_ref[...], w_ref[kd],
                            preferred_element_type=jnp.float32)

    # Finalize on the last depth tap: f32 bias add, then store channel-major so
    # the lane dimension is Ho*Wo (lane-dense stores, not Cout-wide masked ones).
    @pl.when(kd == pl.num_programs(2) - 1)
    def _finalize():
        out = acc_ref[...] + b_ref[...]                       # (Ho*Wo, Cout) f32
        o_ref[0, 0] = out.T.astype(o_ref.dtype)               # (Cout, Ho*Wo)


def pallas_conv(x_padded, w, b, strides, out_dtype=jnp.float32):
    """Valid N-D conv on a pre-padded channels-last volume.

    x_padded: (N, D, Hp, Wp, Cin)     bf16, already padded as required
    w:        (Dk, Hk, Wk, Cin, Cout) bf16
    b:        (Cout,)                 f32
    strides:  (sd, sh, sw)
    returns:  (N, Do, Cout, Ho, Wo)   channel-major per depth slice, out_dtype
    """
    N, D, Hp, Wp, Cin = x_padded.shape
    Dk, Hk, Wk, _, Cout = w.shape
    sd, sh, sw = strides
    Do = (D - Dk) // sd + 1
    Ho = (Hp - Hk) // sh + 1
    Wo = (Wp - Wk) // sw + 1
    Khw = Hk * Wk * Cin
    HoWo = Ho * Wo

    w_mat = w.reshape(Dk, Khw, Cout)                  # (kh, kw, cin) ordering
    b_mat = b.reshape(1, Cout).astype(jnp.float32)

    kernel = functools.partial(_conv_im2col_kernel,
                               hk=Hk, wk=Wk, ho=Ho, wo=Wo, sh=sh, sw=sw)

    # --- VMEM budget for this tiling: double-buffered blocks + scratch. -----
    def _buf_bytes(shape, dtype):
        s = list(shape) if len(shape) >= 2 else [1] + list(shape)
        s[-1] = _round_up(s[-1], 128)
        s[-2] = _round_up(s[-2], 8)
        return math.prod(s) * jnp.dtype(dtype).itemsize

    vmem_need = (
        2 * _buf_bytes((Hp, Wp, Cin), x_padded.dtype)
        + 2 * _buf_bytes((Dk, Khw, Cout), w_mat.dtype)
        + 2 * _buf_bytes((1, Cout), jnp.float32)
        + 2 * _buf_bytes((Cout, HoWo), out_dtype)
        + _buf_bytes((HoWo, Khw), jnp.bfloat16)
        + _buf_bytes((HoWo, Cout), jnp.float32)
    )
    # Never below the 32 MiB scoped default; cap at v7x-safe 64 MiB.
    vmem_limit = int(min(64 * 1024 * 1024, max(32 * 1024 * 1024, 2 * vmem_need)))

    cost = pl.CostEstimate(
        flops=2 * N * Do * Dk * Khw * HoWo * Cout,
        transcendentals=0,
        bytes_accessed=int(
            N * Do * Dk * Hp * Wp * Cin * jnp.dtype(x_padded.dtype).itemsize
            + Dk * Khw * Cout * jnp.dtype(w_mat.dtype).itemsize
            + N * Do * Cout * HoWo * jnp.dtype(out_dtype).itemsize),
    )

    out = pl.pallas_call(
        kernel,
        out_shape=jax.ShapeDtypeStruct((N, Do, Cout, HoWo), out_dtype),
        grid_spec=pltpu.PrefetchScalarGridSpec(
            num_scalar_prefetch=0,
            grid=(N, Do, Dk),
            in_specs=[
                # One depth-tap slice per step; overlapping windows via d*sd + k.
                pl.BlockSpec((1, 1, Hp, Wp, Cin),
                             lambda n, d, k: (n, d * sd + k, 0, 0, 0)),
                # Full weights: constant block index -> stays resident in VMEM.
                pl.BlockSpec((Dk, Khw, Cout), lambda n, d, k: (0, 0, 0)),
                pl.BlockSpec((1, Cout), lambda n, d, k: (0, 0)),
            ],
            out_specs=pl.BlockSpec((1, 1, Cout, HoWo),
                                   lambda n, d, k: (n, d, 0, 0)),
            scratch_shapes=[
                pltpu.VMEM((HoWo, Khw), jnp.bfloat16),   # im2col slab
                pltpu.VMEM((HoWo, Cout), jnp.float32),   # f32 accumulator
            ],
        ),
        compiler_params=pltpu.CompilerParams(
            dimension_semantics=("parallel", "parallel", "arbitrary"),
            vmem_limit_bytes=vmem_limit),
        cost_estimate=cost,
    )(x_padded, w_mat, b_mat)

    return out.reshape(N, Do, Cout, Ho, Wo)


# ---------------------------------------------------------------------------
# Parameters (weight-normalised convs, deterministic init)
# ---------------------------------------------------------------------------
def _weight_norm(v, g):
    axes = tuple(range(1, v.ndim))
    norm = jnp.sqrt(jnp.sum(v * v, axis=axes, keepdims=True))
    return g * v / norm


def init_params(key, n_channels, out_channels, kernel_size):
    Dk, Hk, Wk = kernel_size

    def conv_init(k, cin, cout, kshape):
        kv, kb = jax.random.split(k)
        fan_in = cin * math.prod(kshape)
        bound = 1.0 / math.sqrt(fan_in)
        v = jax.random.uniform(kv, (cout, cin) + kshape, jnp.float32,
                               -bound, bound)
        # nn.utils.weight_norm(dim=0): g initialised to ||v|| per out-channel.
        g = jnp.sqrt(jnp.sum(v * v, axis=tuple(range(1, v.ndim)),
                             keepdims=True))
        b = jax.random.uniform(kb, (cout,), jnp.float32, -bound, bound)
        return {'w': _weight_norm(v, g), 'b': b}

    k1, k2, k3 = jax.random.split(key, 3)
    return {
        'conv2d':  conv_init(k1, n_channels, out_channels, (3, 3)),
        'conv3d1': conv_init(k2, n_channels, out_channels, (Dk, Hk, Wk)),
        'conv3d2': conv_init(k3, out_channels, out_channels, (Dk, Hk, Wk)),
    }


# ---------------------------------------------------------------------------
# DownRightShiftedConv3d forward (NCDHW in / NCDHW out, like PyTorch)
# ---------------------------------------------------------------------------
def down_right_shifted_conv3d_forward(x, params, kernel_size, stride=(1, 1, 1)):
    Dk, Hk, Wk = kernel_size
    sd, sh, sw = stride
    cdt = jnp.bfloat16   # MXU operand dtype; accumulation stays f32 in-kernel.

    def to_kernel_w(w_oidhw):
        # (Cout, Cin, Dk, Hk, Wk) -> (Dk, Hk, Wk, Cin, Cout)
        return jnp.transpose(w_oidhw, (2, 3, 4, 1, 0)).astype(cdt)

    w2 = to_kernel_w(params['conv2d']['w'][:, :, None, :, :])  # (1,3,3,Cin,Cout)
    b2 = params['conv2d']['b']
    w31, b31 = to_kernel_w(params['conv3d1']['w']), params['conv3d1']['b']
    w32, b32 = to_kernel_w(params['conv3d2']['w']), params['conv3d2']['b']

    # NCDHW -> channels-last (N, D, H, W, C), single bf16 cast for the MXU path.
    # NOTE: with tiny Cin the input lane dim is sparse; in the real model Cin is
    # large so channels-last loads are lane-dense.
    x_cl = jnp.transpose(x, (0, 2, 3, 4, 1)).astype(cdt)

    def conv2d(z):  # z: (N, H, W, C); 3x3, padding=1, stride (sh, sw)
        zp = jnp.pad(z, ((0, 0), (1, 1), (1, 1), (0, 0)))[:, None]  # (N,1,Hp,Wp,C)
        return pallas_conv(zp, w2, b2, (1, sh, sw), out_dtype=jnp.float32)

    def drs_pad(z):  # down-right-shifted causal pad on H, W
        return jnp.pad(z, ((0, 0), (0, 0), (Hk - 1, 0), (Wk - 1, 0), (0, 0)))

    xt = conv2d(x_cl[:, 0])          # (N, 1, Cout, Ho, Wo)
    xb = conv2d(x_cl[:, -1])         # (N, 1, Cout, Ho, Wo)

    if Dk == 2:
        # conv3d1 over the full depth == concat([conv3d1(x[:, :2]),
        # conv3d1(x[:, 1:])], depth): one launch, no duplicate HBM reads.
        xm = pallas_conv(drs_pad(x_cl), w31, b31, (1, 1, 1), out_dtype=cdt)
    else:
        xm_a = pallas_conv(drs_pad(x_cl[:, :2]), w31, b31, (1, 1, 1), out_dtype=cdt)
        xm_b = pallas_conv(drs_pad(x_cl[:, 1:]), w31, b31, (1, 1, 1), out_dtype=cdt)
        xm = jnp.concatenate([xm_a, xm_b], axis=1)

    # (N, Dm, Cout, H, W) -> channels-last for the second conv.
    xm_cl = jnp.transpose(xm, (0, 1, 3, 4, 2))
    xm_out = pallas_conv(drs_pad(xm_cl), w32, b32, (sd, sh, sw),
                         out_dtype=jnp.float32)          # (N, Do2, Cout, Ho, Wo)

    out = jnp.concatenate([xt, xm_out, xb], axis=1)      # (N, Dtot, Cout, Ho, Wo)
    return jnp.transpose(out, (0, 2, 1, 3, 4))           # NCDHW


# ---------------------------------------------------------------------------
# Pure-JAX reference (mirrors the PyTorch forward exactly) for validation
# ---------------------------------------------------------------------------
def _ref_forward(x, params, kernel_size, stride=(1, 1, 1)):
    Dk, Hk, Wk = kernel_size
    sd, sh, sw = stride
    hp = jax.lax.Precision.HIGHEST

    def conv2d(z):  # (N, C, H, W)
        out = jax.lax.conv_general_dilated(
            z, params['conv2d']['w'], (sh, sw), ((1, 1), (1, 1)),
            dimension_numbers=('NCHW', 'OIHW', 'NCHW'), precision=hp)
        return out + params['conv2d']['b'].reshape(1, -1, 1, 1)

    def drs3d(z, p, strides):  # (N, C, D, H, W)
        zp = jnp.pad(z, ((0, 0), (0, 0), (0, 0), (Hk - 1, 0), (Wk - 1, 0)))
        out = jax.lax.conv_general_dilated(
            zp, p['w'], strides, ((0, 0), (0, 0), (0, 0)),
            dimension_numbers=('NCDHW', 'OIDHW', 'NCDHW'), precision=hp)
        return out + p['b'].reshape(1, -1, 1, 1, 1)

    xt = conv2d(x[:, :, 0])
    xm1 = drs3d(x[:, :, :2], params['conv3d1'], (1, 1, 1))
    xm2 = drs3d(x[:, :, 1:], params['conv3d1'], (1, 1, 1))
    xm = jnp.concatenate([xm1, xm2], axis=2)
    xm = drs3d(xm, params['conv3d2'], (sd, sh, sw))
    xb = conv2d(x[:, :, -1])
    return jnp.concatenate([xt[:, :, None], xm, xb[:, :, None]], axis=2)


if __name__ == "__main__":
    key = jax.random.PRNGKey(0)
    kx, kp = jax.random.split(key)

    N, Cin, Cout = 2, 4, 8
    D, H, W = 4, 8, 8
    kernel_size = (2, 3, 3)
    stride = (1, 1, 1)

    x = jax.random.normal(kx, (N, Cin, D, H, W), jnp.float32)
    params = init_params(kp, Cin, Cout, kernel_size)

    fwd = jax.jit(functools.partial(down_right_shifted_conv3d_forward,
                                    kernel_size=kernel_size, stride=stride))
    out = jax.block_until_ready(fwd(x, params))

    ref = _ref_forward(x, params, kernel_size, stride)
    assert out.shape == ref.shape, (out.shape, ref.shape)
    max_err = float(jnp.max(jnp.abs(out - ref)))
    assert max_err < 5e-2, f"max abs err {max_err}"

    print("KERNEL_OK")
</pallas_src>

<mosaic_0001>
module attributes {stable_mosaic.version = 11 : i64} {
  func.func @_conv_im2col_kernel(%arg0: i32, %arg1: i32, %arg2: i32, %arg3: memref<1x1x10x10x4xbf16, #tpu.memory_space<vmem>>, %arg4: memref<1x36x8xbf16, #tpu.memory_space<vmem>>, %arg5: memref<1x8xf32, #tpu.memory_space<vmem>>, %arg6: memref<1x1x8x64xf32, #tpu.memory_space<vmem>>, %arg7: memref<64x36xbf16, #tpu.memory_space<vmem>>, %arg8: memref<64x8xf32, #tpu.memory_space<vmem>>) attributes {dimension_semantics = [#tpu.dimension_semantics<parallel>, #tpu.dimension_semantics<parallel>, #tpu.dimension_semantics<arbitrary>], iteration_bounds = array<i64: 2, 1, 1>, scalar_prefetch = 0 : i64, scratch_operands = 2 : i64, tpu.core_type = #tpu.core_type<tc>, window_params = [{transform_indices = @transform_0, window_bounds = array<i64: 1, 1, 10, 10, 4>}, {pipeline_mode = #tpu.pipeline_mode<synchronous>, transform_indices = @transform_1, window_bounds = array<i64: 1, 36, 8>}, {pipeline_mode = #tpu.pipeline_mode<synchronous>, transform_indices = @transform_2, window_bounds = array<i64: 1, 8>}, {transform_indices = @transform_3, window_bounds = array<i64: 1, 1, 8, 64>}]} {
    %c0_i32 = arith.constant 0 : i32
    %0 = arith.cmpi eq, %arg2, %c0_i32 : i32
    %1 = arith.extui %0 : i1 to i32
    %c0_i32_0 = arith.constant 0 : i32
    %2 = arith.cmpi ne, %1, %c0_i32_0 : i32
    scf.if %2 {
      %cst_63 = arith.constant 0.000000e+00 : f32
      %50 = vector.broadcast %cst_63 : f32 to vector<64x8xf32>
      %c0_64 = arith.constant 0 : index
      %c0_65 = arith.constant 0 : index
      %51 = vector.load %arg8[%c0_64, %c0_65] : memref<64x8xf32, #tpu.memory_space<vmem>>, vector<64x8xf32>
      tpu.vector_store %arg8[%c0_64, %c0_65], %50 {strides = array<i32>} : memref<64x8xf32, #tpu.memory_space<vmem>>, vector<64x8xf32>,
    } else {
    }
    %c0 = arith.constant 0 : index
    %c0_1 = arith.constant 0 : index
    %c0_2 = arith.constant 0 : index
    %c0_3 = arith.constant 0 : index
    %c0_4 = arith.constant 0 : index
    %3 = vector.load %arg3[%c0, %c0_1, %c0_2, %c0_3, %c0_4] : memref<1x1x10x10x4xbf16, #tpu.memory_space<vmem>>, vector<1x1x8x8x4xbf16>
    %4 = vector.shape_cast %3 : vector<1x1x8x8x4xbf16> to vector<8x8x4xbf16>
    %5 = vector.shape_cast %4 : vector<8x8x4xbf16> to vector<64x4xbf16>
    %c0_5 = arith.constant 0 : index
    %c0_6 = arith.constant 0 : index
    %6 = vector.load %arg7[%c0_5, %c0_6] : memref<64x36xbf16, #tpu.memory_space<vmem>>, vector<64x4xbf16>
    tpu.vector_store %arg7[%c0_5, %c0_6], %5 {strides = array<i32>} : memref<64x36xbf16, #tpu.memory_space<vmem>>, vector<64x4xbf16>,
    %c0_7 = arith.constant 0 : index
    %c0_8 = arith.constant 0 : index
    %c0_9 = arith.constant 0 : index
    %c1 = arith.constant 1 : index
    %c0_10 = arith.constant 0 : index
    %7 = vector.load %arg3[%c0_7, %c0_8, %c0_9, %c1, %c0_10] : memref<1x1x10x10x4xbf16, #tpu.memory_space<vmem>>, vector<1x1x8x8x4xbf16>
    %8 = vector.shape_cast %7 : vector<1x1x8x8x4xbf16> to vector<8x8x4xbf16>
    %9 = vector.shape_cast %8 : vector<8x8x4xbf16> to vector<64x4xbf16>
    %c0_11 = arith.constant 0 : index
    %c4 = arith.constant 4 : index
    %10 = vector.load %arg7[%c0_11, %c4] : memref<64x36xbf16, #tpu.memory_space<vmem>>, vector<64x4xbf16>
    tpu.vector_store %arg7[%c0_11, %c4], %9 {strides = array<i32>} : memref<64x36xbf16, #tpu.memory_space<vmem>>, vector<64x4xbf16>,
    %c0_12 = arith.constant 0 : index
    %c0_13 = arith.constant 0 : index
    %c0_14 = arith.constant 0 : index
    %c2 = arith.constant 2 : index
    %c0_15 = arith.constant 0 : index
    %11 = vector.load %arg3[%c0_12, %c0_13, %c0_14, %c2, %c0_15] : memref<1x1x10x10x4xbf16, #tpu.memory_space<vmem>>, vector<1x1x8x8x4xbf16>
    %12 = vector.shape_cast %11 : vector<1x1x8x8x4xbf16> to vector<8x8x4xbf16>
    %13 = vector.shape_cast %12 : vector<8x8x4xbf16> to vector<64x4xbf16>
    %c0_16 = arith.constant 0 : index
    %c8 = arith.constant 8 : index
    %14 = vector.load %arg7[%c0_16, %c8] : memref<64x36xbf16, #tpu.memory_space<vmem>>, vector<64x4xbf16>
    tpu.vector_store %arg7[%c0_16, %c8], %13 {strides = array<i32>} : memref<64x36xbf16, #tpu.memory_space<vmem>>, vector<64x4xbf16>,
    %c0_17 = arith.constant 0 : index
    %c0_18 = arith.constant 0 : index
    %c1_19 = arith.constant 1 : index
    %c0_20 = arith.constant 0 : index
    %c0_21 = arith.constant 0 : index
    %15 = vector.load %arg3[%c0_17, %c0_18, %c1_19, %c0_20, %c0_21] : memref<1x1x10x10x4xbf16, #tpu.memory_space<vmem>>, vector<1x1x8x8x4xbf16>
    %16 = vector.shape_cast %15 : vector<1x1x8x8x4xbf16> to vector<8x8x4xbf16>
    %17 = vector.shape_cast %16 : vector<8x8x4xbf16> to vector<64x4xbf16>
    %c0_22 = arith.constant 0 : index
    %c12 = arith.constant 12 : index
    %18 = vector.load %arg7[%c0_22, %c12] : memref<64x36xbf16, #tpu.memory_space<vmem>>, vector<64x4xbf16>
    tpu.vector_store %arg7[%c0_22, %c12], %17 {strides = array<i32>} : memref<64x36xbf16, #tpu.memory_space<vmem>>, vector<64x4xbf16>,
    %c0_23 = arith.constant 0 : index
    %c0_24 = arith.constant 0 : index
    %c1_25 = arith.constant 1 : index
    %c1_26 = arith.constant 1 : index
    %c0_27 = arith.constant 0 : index
    %19 = vector.load %arg3[%c0_23, %c0_24, %c1_25, %c1_26, %c0_27] : memref<1x1x10x10x4xbf16, #tpu.memory_space<vmem>>, vector<1x1x8x8x4xbf16>
    %20 = vector.shape_cast %19 : vector<1x1x8x8x4xbf16> to vector<8x8x4xbf16>
    %21 = vector.shape_cast %20 : vector<8x8x4xbf16> to vector<64x4xbf16>
    %c0_28 = arith.constant 0 : index
    %c16 = arith.constant 16 : index
    %22 = vector.load %arg7[%c0_28, %c16] : memref<64x36xbf16, #tpu.memory_space<vmem>>, vector<64x4xbf16>
    tpu.vector_store %arg7[%c0_28, %c16], %21 {strides = array<i32>} : memref<64x36xbf16, #tpu.memory_space<vmem>>, vector<64x4xbf16>,
    %c0_29 = arith.constant 0 : index
    %c0_30 = arith.constant 0 : index
    %c1_31 = arith.constant 1 : index
    %c2_32 = arith.constant 2 : index
    %c0_33 = arith.constant 0 : index
    %23 = vector.load %arg3[%c0_29, %c0_30, %c1_31, %c2_32, %c0_33] : memref<1x1x10x10x4xbf16, #tpu.memory_space<vmem>>, vector<1x1x8x8x4xbf16>
    %24 = vector.shape_cast %23 : vector<1x1x8x8x4xbf16> to vector<8x8x4xbf16>
    %25 = vector.shape_cast %24 : vector<8x8x4xbf16> to vector<64x4xbf16>
    %c0_34 = arith.constant 0 : index
    %c20 = arith.constant 20 : index
    %26 = vector.load %arg7[%c0_34, %c20] : memref<64x36xbf16, #tpu.memory_space<vmem>>, vector<64x4xbf16>
    tpu.vector_store %arg7[%c0_34, %c20], %25 {strides = array<i32>} : memref<64x36xbf16, #tpu.memory_space<vmem>>, vector<64x4xbf16>,
    %c0_35 = arith.constant 0 : index
    %c0_36 = arith.constant 0 : index
    %c2_37 = arith.constant 2 : index
    %c0_38 = arith.constant 0 : index
    %c0_39 = arith.constant 0 : index
    %27 = vector.load %arg3[%c0_35, %c0_36, %c2_37, %c0_38, %c0_39] : memref<1x1x10x10x4xbf16, #tpu.memory_space<vmem>>, vector<1x1x8x8x4xbf16>
    %28 = vector.shape_cast %27 : vector<1x1x8x8x4xbf16> to vector<8x8x4xbf16>
    %29 = vector.shape_cast %28 : vector<8x8x4xbf16> to vector<64x4xbf16>
    %c0_40 = arith.constant 0 : index
    %c24 = arith.constant 24 : index
    %30 = vector.load %arg7[%c0_40, %c24] : memref<64x36xbf16, #tpu.memory_space<vmem>>, vector<64x4xbf16>
    tpu.vector_store %arg7[%c0_40, %c24], %29 {strides = array<i32>} : memref<64x36xbf16, #tpu.memory_space<vmem>>, vector<64x4xbf16>,
    %c0_41 = arith.constant 0 : index
    %c0_42 = arith.constant 0 : index
    %c2_43 = arith.constant 2 : index
    %c1_44 = arith.constant 1 : index
    %c0_45 = arith.constant 0 : index
    %31 = vector.load %arg3[%c0_41, %c0_42, %c2_43, %c1_44, %c0_45] : memref<1x1x10x10x4xbf16, #tpu.memory_space<vmem>>, vector<1x1x8x8x4xbf16>
    %32 = vector.shape_cast %31 : vector<1x1x8x8x4xbf16> to vector<8x8x4xbf16>
    %33 = vector.shape_cast %32 : vector<8x8x4xbf16> to vector<64x4xbf16>
    %c0_46 = arith.constant 0 : index
    %c28 = arith.constant 28 : index
    %34 = vector.load %arg7[%c0_46, %c28] : memref<64x36xbf16, #tpu.memory_space<vmem>>, vector<64x4xbf16>
    tpu.vector_store %arg7[%c0_46, %c28], %33 {strides = array<i32>} : memref<64x36xbf16, #tpu.memory_space<vmem>>, vector<64x4xbf16>,
    %c0_47 = arith.constant 0 : index
    %c0_48 = arith.constant 0 : index
    %c2_49 = arith.constant 2 : index
    %c2_50 = arith.constant 2 : index
    %c0_51 = arith.constant 0 : index
    %35 = vector.load %arg3[%c0_47, %c0_48, %c2_49, %c2_50, %c0_51] : memref<1x1x10x10x4xbf16, #tpu.memory_space<vmem>>, vector<1x1x8x8x4xbf16>
    %36 = vector.shape_cast %35 : vector<1x1x8x8x4xbf16> to vector<8x8x4xbf16>
    %37 = vector.shape_cast %36 : vector<8x8x4xbf16> to vector<64x4xbf16>
    %c0_52 = arith.constant 0 : index
    %c32 = arith.constant 32 : index
    %38 = vector.load %arg7[%c0_52, %c32] : memref<64x36xbf16, #tpu.memory_space<vmem>>, vector<64x4xbf16>
    tpu.vector_store %arg7[%c0_52, %c32], %37 {strides = array<i32>} : memref<64x36xbf16, #tpu.memory_space<vmem>>, vector<64x4xbf16>,
    %c0_53 = arith.constant 0 : index
    %c0_54 = arith.constant 0 : index
    %39 = vector.load %arg8[%c0_53, %c0_54] : memref<64x8xf32, #tpu.memory_space<vmem>>, vector<64x8xf32>
    %c0_55 = arith.constant 0 : index
    %c0_56 = arith.constant 0 : index
    %40 = vector.load %arg7[%c0_55, %c0_56] : memref<64x36xbf16, #tpu.memory_space<vmem>>, vector<64x36xbf16>
    %41 = arith.index_cast %arg2 : i32 to index
    %c0_57 = arith.constant 0 : index
    %c0_58 = arith.constant 0 : index
    %42 = vector.load %arg4[%41, %c0_57, %c0_58] : memref<1x36x8xbf16, #tpu.memory_space<vmem>>, vector<1x36x8xbf16>
    %43 = vector.shape_cast %42 : vector<1x36x8xbf16> to vector<36x8xbf16>
    %cst = arith.constant dense<0.000000e+00> : vector<64x8xf32>
    %44 = tpu.matmul %40, %43, %cst {dimension_numbers = #tpu.dot_dimension_numbers<[1], [0], [0], [1], [0, 0, 1, 1], [], []>} : vector<64x36xbf16>, vector<36x8xbf16>, vector<64x8xf32> -> vector<64x8xf32>
    %45 = arith.addf %39, %44 : vector<64x8xf32>
    %c0_59 = arith.constant 0 : index
    %c0_60 = arith.constant 0 : index
    %46 = vector.load %arg8[%c0_59, %c0_60] : memref<64x8xf32, #tpu.memory_space<vmem>>, vector<64x8xf32>
    tpu.vector_store %arg8[%c0_59, %c0_60], %45 {strides = array<i32>} : memref<64x8xf32, #tpu.memory_space<vmem>>, vector<64x8xf32>,
    %c0_i32_61 = arith.constant 0 : i32
    %47 = arith.cmpi eq, %arg2, %c0_i32_61 : i32
    %48 = arith.extui %47 : i1 to i32
    %c0_i32_62 = arith.constant 0 : i32
    %49 = arith.cmpi ne, %48, %c0_i32_62 : i32
    scf.if %49 {
      %c0_63 = arith.constant 0 : index
      %c0_64 = arith.constant 0 : index
      %50 = vector.load %arg8[%c0_63, %c0_64] : memref<64x8xf32, #tpu.memory_space<vmem>>, vector<64x8xf32>
      %c0_65 = arith.constant 0 : index
      %c0_66 = arith.constant 0 : index
      %51 = vector.load %arg5[%c0_65, %c0_66] : memref<1x8xf32, #tpu.memory_space<vmem>>, vector<1x8xf32>
      %52 = vector.broadcast %51 : vector<1x8xf32> to vector<64x8xf32>
      %53 = arith.addf %50, %52 : vector<64x8xf32>
      %54 = tpu.transpose %53, [1, 0] : vector<64x8xf32> -> vector<8x64xf32>
      %c0_67 = arith.constant 0 : index
      %c0_68 = arith.constant 0 : index
      %c0_69 = arith.constant 0 : index
      %c0_70 = arith.constant 0 : index
      %55 = vector.load %arg6[%c0_67, %c0_68, %c0_69, %c0_70] : memref<1x1x8x64xf32, #tpu.memory_space<vmem>>, vector<1x1x8x64xf32>
      %56 = vector.shape_cast %55 : vector<1x1x8x64xf32> to vector<8x64xf32>
      %57 = vector.shape_cast %54 : vector<8x64xf32> to vector<1x1x8x64xf32>
      tpu.vector_store %arg6[%c0_67, %c0_68, %c0_69, %c0_70], %57 {strides = array<i32>} : memref<1x1x8x64xf32, #tpu.memory_space<vmem>>, vector<1x1x8x64xf32>,
    } else {
    }
    return
  }
  func.func @transform_0(%arg0: i32, %arg1: i32, %arg2: i32) -> (i32, i32, i32, i32, i32) {
    %c1_i32 = arith.constant 1 : i32
    %0 = arith.muli %arg1, %c1_i32 : i32
    %1 = arith.addi %0, %arg2 : i32
    %c0_i32 = arith.constant 0 : i32
    %c0_i32_0 = arith.constant 0 : i32
    %c0_i32_1 = arith.constant 0 : i32
    %c0_i32_2 = arith.constant 0 : i32
    return %arg0, %1, %c0_i32, %c0_i32_0, %c0_i32_1 : i32, i32, i32, i32, i32
  }
  func.func @transform_1(%arg0: i32, %arg1: i32, %arg2: i32) -> (i32, i32, i32) {
    %c0_i32 = arith.constant 0 : i32
    %c0_i32_0 = arith.constant 0 : i32
    %c0_i32_1 = arith.constant 0 : i32
    %c0_i32_2 = arith.constant 0 : i32
    return %c0_i32, %c0_i32_0, %c0_i32_1 : i32, i32, i32
  }
  func.func @transform_2(%arg0: i32, %arg1: i32, %arg2: i32) -> (i32, i32) {
    %c0_i32 = arith.constant 0 : i32
    %c0_i32_0 = arith.constant 0 : i32
    %c0_i32_1 = arith.constant 0 : i32
    return %c0_i32, %c0_i32_0 : i32, i32
  }
  func.func @transform_3(%arg0: i32, %arg1: i32, %arg2: i32) -> (i32, i32, i32, i32) {
    %c0_i32 = arith.constant 0 : i32
    %c0_i32_0 = arith.constant 0 : i32
    %c0_i32_1 = arith.constant 0 : i32
    return %arg0, %arg1, %c0_i32, %c0_i32_0 : i32, i32, i32, i32
  }
}

module attributes {stable_mosaic.version = 11 : i64} {
  func.func @_conv_im2col_kernel(%arg0: i32, %arg1: i32, %arg2: i32, %arg3: memref<1x1x10x10x4xbf16, #tpu.memory_space<vmem>>, %arg4: memref<2x36x8xbf16, #tpu.memory_space<vmem>>, %arg5: memref<1x8xf32, #tpu.memory_space<vmem>>, %arg6: memref<1x1x8x64xbf16, #tpu.memory_space<vmem>>, %arg7: memref<64x36xbf16, #tpu.memory_space<vmem>>, %arg8: memref<64x8xf32, #tpu.memory_space<vmem>>) attributes {dimension_semantics = [#tpu.dimension_semantics<parallel>, #tpu.dimension_semantics<parallel>, #tpu.dimension_semantics<arbitrary>], iteration_bounds = array<i64: 2, 3, 2>, scalar_prefetch = 0 : i64, scratch_operands = 2 : i64, tpu.core_type = #tpu.core_type<tc>, window_params = [{transform_indices = @transform_0, window_bounds = array<i64: 1, 1, 10, 10, 4>}, {pipeline_mode = #tpu.pipeline_mode<synchronous>, transform_indices = @transform_1, window_bounds = array<i64: 2, 36, 8>}, {pipeline_mode = #tpu.pipeline_mode<synchronous>, transform_indices = @transform_2, window_bounds = array<i64: 1, 8>}, {transform_indices = @transform_3, window_bounds = array<i64: 1, 1, 8, 64>}]} {
    %c0_i32 = arith.constant 0 : i32
    %0 = arith.cmpi eq, %arg2, %c0_i32 : i32
    %1 = arith.extui %0 : i1 to i32
    %c0_i32_0 = arith.constant 0 : i32
    %2 = arith.cmpi ne, %1, %c0_i32_0 : i32
    scf.if %2 {
      %cst_62 = arith.constant 0.000000e+00 : f32
      %50 = vector.broadcast %cst_62 : f32 to vector<64x8xf32>
      %c0_63 = arith.constant 0 : index
      %c0_64 = arith.constant 0 : index
      %51 = vector.load %arg8[%c0_63, %c0_64] : memref<64x8xf32, #tpu.memory_space<vmem>>, vector<64x8xf32>
      tpu.vector_store %arg8[%c0_63, %c0_64], %50 {strides = array<i32>} : memref<64x8xf32, #tpu.memory_space<vmem>>, vector<64x8xf32>,
    } else {
    }
    %c0 = arith.constant 0 : index
    %c0_1 = arith.constant 0 : index
    %c0_2 = arith.constant 0 : index
    %c0_3 = arith.constant 0 : index
    %c0_4 = arith.constant 0 : index
    %3 = vector.load %arg3[%c0, %c0_1, %c0_2, %c0_3, %c0_4] : memref<1x1x10x10x4xbf16, #tpu.memory_space<vmem>>, vector<1x1x8x8x4xbf16>
    %4 = vector.shape_cast %3 : vector<1x1x8x8x4xbf16> to vector<8x8x4xbf16>
    %5 = vector.shape_cast %4 : vector<8x8x4xbf16> to vector<64x4xbf16>
    %c0_5 = arith.constant 0 : index
    %c0_6 = arith.constant 0 : index
    %6 = vector.load %arg7[%c0_5, %c0_6] : memref<64x36xbf16, #tpu.memory_space<vmem>>, vector<64x4xbf16>
    tpu.vector_store %arg7[%c0_5, %c0_6], %5 {strides = array<i32>} : memref<64x36xbf16, #tpu.memory_space<vmem>>, vector<64x4xbf16>,
    %c0_7 = arith.constant 0 : index
    %c0_8 = arith.constant 0 : index
    %c0_9 = arith.constant 0 : index
    %c1 = arith.constant 1 : index
    %c0_10 = arith.constant 0 : index
    %7 = vector.load %arg3[%c0_7, %c0_8, %c0_9, %c1, %c0_10] : memref<1x1x10x10x4xbf16, #tpu.memory_space<vmem>>, vector<1x1x8x8x4xbf16>
    %8 = vector.shape_cast %7 : vector<1x1x8x8x4xbf16> to vector<8x8x4xbf16>
    %9 = vector.shape_cast %8 : vector<8x8x4xbf16> to vector<64x4xbf16>
    %c0_11 = arith.constant 0 : index
    %c4 = arith.constant 4 : index
    %10 = vector.load %arg7[%c0_11, %c4] : memref<64x36xbf16, #tpu.memory_space<vmem>>, vector<64x4xbf16>
    tpu.vector_store %arg7[%c0_11, %c4], %9 {strides = array<i32>} : memref<64x36xbf16, #tpu.memory_space<vmem>>, vector<64x4xbf16>,
    %c0_12 = arith.constant 0 : index
    %c0_13 = arith.constant 0 : index
    %c0_14 = arith.constant 0 : index
    %c2 = arith.constant 2 : index
    %c0_15 = arith.constant 0 : index
    %11 = vector.load %arg3[%c0_12, %c0_13, %c0_14, %c2, %c0_15] : memref<1x1x10x10x4xbf16, #tpu.memory_space<vmem>>, vector<1x1x8x8x4xbf16>
    %12 = vector.shape_cast %11 : vector<1x1x8x8x4xbf16> to vector<8x8x4xbf16>
    %13 = vector.shape_cast %12 : vector<8x8x4xbf16> to vector<64x4xbf16>
    %c0_16 = arith.constant 0 : index
    %c8 = arith.constant 8 : index
    %14 = vector.load %arg7[%c0_16, %c8] : memref<64x36xbf16, #tpu.memory_space<vmem>>, vector<64x4xbf16>
    tpu.vector_store %arg7[%c0_16, %c8], %13 {strides = array<i32>} : memref<64x36xbf16, #tpu.memory_space<vmem>>, vector<64x4xbf16>,
    %c0_17 = arith.constant 0 : index
    %c0_18 = arith.constant 0 : index
    %c1_19 = arith.constant 1 : index
    %c0_20 = arith.constant 0 : index
    %c0_21 = arith.constant 0 : index
    %15 = vector.load %arg3[%c0_17, %c0_18, %c1_19, %c0_20, %c0_21] : memref<1x1x10x10x4xbf16, #tpu.memory_space<vmem>>, vector<1x1x8x8x4xbf16>
    %16 = vector.shape_cast %15 : vector<1x1x8x8x4xbf16> to vector<8x8x4xbf16>
    %17 = vector.shape_cast %16 : vector<8x8x4xbf16> to vector<64x4xbf16>
    %c0_22 = arith.constant 0 : index
    %c12 = arith.constant 12 : index
    %18 = vector.load %arg7[%c0_22, %c12] : memref<64x36xbf16, #tpu.memory_space<vmem>>, vector<64x4xbf16>
    tpu.vector_store %arg7[%c0_22, %c12], %17 {strides = array<i32>} : memref<64x36xbf16, #tpu.memory_space<vmem>>, vector<64x4xbf16>,
    %c0_23 = arith.constant 0 : index
    %c0_24 = arith.constant 0 : index
    %c1_25 = arith.constant 1 : index
    %c1_26 = arith.constant 1 : index
    %c0_27 = arith.constant 0 : index
    %19 = vector.load %arg3[%c0_23, %c0_24, %c1_25, %c1_26, %c0_27] : memref<1x1x10x10x4xbf16, #tpu.memory_space<vmem>>, vector<1x1x8x8x4xbf16>
    %20 = vector.shape_cast %19 : vector<1x1x8x8x4xbf16> to vector<8x8x4xbf16>
    %21 = vector.shape_cast %20 : vector<8x8x4xbf16> to vector<64x4xbf16>
    %c0_28 = arith.constant 0 : index
    %c16 = arith.constant 16 : index
    %22 = vector.load %arg7[%c0_28, %c16] : memref<64x36xbf16, #tpu.memory_space<vmem>>, vector<64x4xbf16>
    tpu.vector_store %arg7[%c0_28, %c16], %21 {strides = array<i32>} : memref<64x36xbf16, #tpu.memory_space<vmem>>, vector<64x4xbf16>,
    %c0_29 = arith.constant 0 : index
    %c0_30 = arith.constant 0 : index
    %c1_31 = arith.constant 1 : index
    %c2_32 = arith.constant 2 : index
    %c0_33 = arith.constant 0 : index
    %23 = vector.load %arg3[%c0_29, %c0_30, %c1_31, %c2_32, %c0_33] : memref<1x1x10x10x4xbf16, #tpu.memory_space<vmem>>, vector<1x1x8x8x4xbf16>
    %24 = vector.shape_cast %23 : vector<1x1x8x8x4xbf16> to vector<8x8x4xbf16>
    %25 = vector.shape_cast %24 : vector<8x8x4xbf16> to vector<64x4xbf16>
    %c0_34 = arith.constant 0 : index
    %c20 = arith.constant 20 : index
    %26 = vector.load %arg7[%c0_34, %c20] : memref<64x36xbf16, #tpu.memory_space<vmem>>, vector<64x4xbf16>
    tpu.vector_store %arg7[%c0_34, %c20], %25 {strides = array<i32>} : memref<64x36xbf16, #tpu.memory_space<vmem>>, vector<64x4xbf16>,
    %c0_35 = arith.constant 0 : index
    %c0_36 = arith.constant 0 : index
    %c2_37 = arith.constant 2 : index
    %c0_38 = arith.constant 0 : index
    %c0_39 = arith.constant 0 : index
    %27 = vector.load %arg3[%c0_35, %c0_36, %c2_37, %c0_38, %c0_39] : memref<1x1x10x10x4xbf16, #tpu.memory_space<vmem>>, vector<1x1x8x8x4xbf16>
    %28 = vector.shape_cast %27 : vector<1x1x8x8x4xbf16> to vector<8x8x4xbf16>
    %29 = vector.shape_cast %28 : vector<8x8x4xbf16> to vector<64x4xbf16>
    %c0_40 = arith.constant 0 : index
    %c24 = arith.constant 24 : index
    %30 = vector.load %arg7[%c0_40, %c24] : memref<64x36xbf16, #tpu.memory_space<vmem>>, vector<64x4xbf16>
    tpu.vector_store %arg7[%c0_40, %c24], %29 {strides = array<i32>} : memref<64x36xbf16, #tpu.memory_space<vmem>>, vector<64x4xbf16>,
    %c0_41 = arith.constant 0 : index
    %c0_42 = arith.constant 0 : index
    %c2_43 = arith.constant 2 : index
    %c1_44 = arith.constant 1 : index
    %c0_45 = arith.constant 0 : index
    %31 = vector.load %arg3[%c0_41, %c0_42, %c2_43, %c1_44, %c0_45] : memref<1x1x10x10x4xbf16, #tpu.memory_space<vmem>>, vector<1x1x8x8x4xbf16>
    %32 = vector.shape_cast %31 : vector<1x1x8x8x4xbf16> to vector<8x8x4xbf16>
    %33 = vector.shape_cast %32 : vector<8x8x4xbf16> to vector<64x4xbf16>
    %c0_46 = arith.constant 0 : index
    %c28 = arith.constant 28 : index
    %34 = vector.load %arg7[%c0_46, %c28] : memref<64x36xbf16, #tpu.memory_space<vmem>>, vector<64x4xbf16>
    tpu.vector_store %arg7[%c0_46, %c28], %33 {strides = array<i32>} : memref<64x36xbf16, #tpu.memory_space<vmem>>, vector<64x4xbf16>,
    %c0_47 = arith.constant 0 : index
    %c0_48 = arith.constant 0 : index
    %c2_49 = arith.constant 2 : index
    %c2_50 = arith.constant 2 : index
    %c0_51 = arith.constant 0 : index
    %35 = vector.load %arg3[%c0_47, %c0_48, %c2_49, %c2_50, %c0_51] : memref<1x1x10x10x4xbf16, #tpu.memory_space<vmem>>, vector<1x1x8x8x4xbf16>
    %36 = vector.shape_cast %35 : vector<1x1x8x8x4xbf16> to vector<8x8x4xbf16>
    %37 = vector.shape_cast %36 : vector<8x8x4xbf16> to vector<64x4xbf16>
    %c0_52 = arith.constant 0 : index
    %c32 = arith.constant 32 : index
    %38 = vector.load %arg7[%c0_52, %c32] : memref<64x36xbf16, #tpu.memory_space<vmem>>, vector<64x4xbf16>
    tpu.vector_store %arg7[%c0_52, %c32], %37 {strides = array<i32>} : memref<64x36xbf16, #tpu.memory_space<vmem>>, vector<64x4xbf16>,
    %c0_53 = arith.constant 0 : index
    %c0_54 = arith.constant 0 : index
    %39 = vector.load %arg8[%c0_53, %c0_54] : memref<64x8xf32, #tpu.memory_space<vmem>>, vector<64x8xf32>
    %c0_55 = arith.constant 0 : index
    %c0_56 = arith.constant 0 : index
    %40 = vector.load %arg7[%c0_55, %c0_56] : memref<64x36xbf16, #tpu.memory_space<vmem>>, vector<64x36xbf16>
    %41 = arith.index_cast %arg2 : i32 to index
    %c0_57 = arith.constant 0 : index
    %c0_58 = arith.constant 0 : index
    %42 = vector.load %arg4[%41, %c0_57, %c0_58] : memref<2x36x8xbf16, #tpu.memory_space<vmem>>, vector<1x36x8xbf16>
    %43 = vector.shape_cast %42 : vector<1x36x8xbf16> to vector<36x8xbf16>
    %cst = arith.constant dense<0.000000e+00> : vector<64x8xf32>
    %44 = tpu.matmul %40, %43, %cst {dimension_numbers = #tpu.dot_dimension_numbers<[1], [0], [0], [1], [0, 0, 1, 1], [], []>} : vector<64x36xbf16>, vector<36x8xbf16>, vector<64x8xf32> -> vector<64x8xf32>
    %45 = arith.addf %39, %44 : vector<64x8xf32>
    %c0_59 = arith.constant 0 : index
    %c0_60 = arith.constant 0 : index
    %46 = vector.load %arg8[%c0_59, %c0_60] : memref<64x8xf32, #tpu.memory_space<vmem>>, vector<64x8xf32>
    tpu.vector_store %arg8[%c0_59, %c0_60], %45 {strides = array<i32>} : memref<64x8xf32, #tpu.memory_space<vmem>>, vector<64x8xf32>,
    %c1_i32 = arith.constant 1 : i32
    %47 = arith.cmpi eq, %arg2, %c1_i32 : i32
    %48 = arith.extui %47 : i1 to i32
    %c0_i32_61 = arith.constant 0 : i32
    %49 = arith.cmpi ne, %48, %c0_i32_61 : i32
    scf.if %49 {
      %c0_62 = arith.constant 0 : index
      %c0_63 = arith.constant 0 : index
      %50 = vector.load %arg8[%c0_62, %c0_63] : memref<64x8xf32, #tpu.memory_space<vmem>>, vector<64x8xf32>
      %c0_64 = arith.constant 0 : index
      %c0_65 = arith.constant 0 : index
      %51 = vector.load %arg5[%c0_64, %c0_65] : memref<1x8xf32, #tpu.memory_space<vmem>>, vector<1x8xf32>
      %52 = vector.broadcast %51 : vector<1x8xf32> to vector<64x8xf32>
      %53 = arith.addf %50, %52 : vector<64x8xf32>
      %54 = tpu.transpose %53, [1, 0] : vector<64x8xf32> -> vector<8x64xf32>
      %55 = arith.truncf %54 : vector<8x64xf32> to vector<8x64xbf16>
      %c0_66 = arith.constant 0 : index
      %c0_67 = arith.constant 0 : index
      %c0_68 = arith.constant 0 : index
      %c0_69 = arith.constant 0 : index
      %56 = vector.load %arg6[%c0_66, %c0_67, %c0_68, %c0_69] : memref<1x1x8x64xbf16, #tpu.memory_space<vmem>>, vector<1x1x8x64xbf16>
      %57 = vector.shape_cast %56 : vector<1x1x8x64xbf16> to vector<8x64xbf16>
      %58 = vector.shape_cast %55 : vector<8x64xbf16> to vector<1x1x8x64xbf16>
      tpu.vector_store %arg6[%c0_66, %c0_67, %c0_68, %c0_69], %58 {strides = array<i32>} : memref<1x1x8x64xbf16, #tpu.memory_space<vmem>>, vector<1x1x8x64xbf16>,
    } else {
    }
    return
  }
  func.func @transform_0(%arg0: i32, %arg1: i32, %arg2: i32) -> (i32, i32, i32, i32, i32) {
    %c1_i32 = arith.constant 1 : i32
    %0 = arith.muli %arg1, %c1_i32 : i32
    %1 = arith.addi %0, %arg2 : i32
    %c0_i32 = arith.constant 0 : i32
    %c0_i32_0 = arith.constant 0 : i32
    %c0_i32_1 = arith.constant 0 : i32
    %c0_i32_2 = arith.constant 0 : i32
    return %arg0, %1, %c0_i32, %c0_i32_0, %c0_i32_1 : i32, i32, i32, i32, i32
  }
  func.func @transform_1(%arg0: i32, %arg1: i32, %arg2: i32) -> (i32, i32, i32) {
    %c0_i32 = arith.constant 0 : i32
    %c0_i32_0 = arith.constant 0 : i32
    %c0_i32_1 = arith.constant 0 : i32
    %c0_i32_2 = arith.constant 0 : i32
    return %c0_i32, %c0_i32_0, %c0_i32_1 : i32, i32, i32
  }
  func.func @transform_2(%arg0: i32, %arg1: i32, %arg2: i32) -> (i32, i32) {
    %c0_i32 = arith.constant 0 : i32
    %c0_i32_0 = arith.constant 0 : i32
    %c0_i32_1 = arith.constant 0 : i32
    return %c0_i32, %c0_i32_0 : i32, i32
  }
  func.func @transform_3(%arg0: i32, %arg1: i32, %arg2: i32) -> (i32, i32, i32, i32) {
    %c0_i32 = arith.constant 0 : i32
    %c0_i32_0 = arith.constant 0 : i32
    %c0_i32_1 = arith.constant 0 : i32
    return %arg0, %arg1, %c0_i32, %c0_i32_0 : i32, i32, i32, i32
  }
}

module attributes {stable_mosaic.version = 11 : i64} {
  func.func @_conv_im2col_kernel(%arg0: i32, %arg1: i32, %arg2: i32, %arg3: memref<1x1x10x10x8xbf16, #tpu.memory_space<vmem>>, %arg4: memref<2x72x8xbf16, #tpu.memory_space<vmem>>, %arg5: memref<1x8xf32, #tpu.memory_space<vmem>>, %arg6: memref<1x1x8x64xf32, #tpu.memory_space<vmem>>, %arg7: memref<64x72xbf16, #tpu.memory_space<vmem>>, %arg8: memref<64x8xf32, #tpu.memory_space<vmem>>) attributes {dimension_semantics = [#tpu.dimension_semantics<parallel>, #tpu.dimension_semantics<parallel>, #tpu.dimension_semantics<arbitrary>], iteration_bounds = array<i64: 2, 2, 2>, scalar_prefetch = 0 : i64, scratch_operands = 2 : i64, tpu.core_type = #tpu.core_type<tc>, window_params = [{transform_indices = @transform_0, window_bounds = array<i64: 1, 1, 10, 10, 8>}, {pipeline_mode = #tpu.pipeline_mode<synchronous>, transform_indices = @transform_1, window_bounds = array<i64: 2, 72, 8>}, {pipeline_mode = #tpu.pipeline_mode<synchronous>, transform_indices = @transform_2, window_bounds = array<i64: 1, 8>}, {transform_indices = @transform_3, window_bounds = array<i64: 1, 1, 8, 64>}]} {
    %c0_i32 = arith.constant 0 : i32
    %0 = arith.cmpi eq, %arg2, %c0_i32 : i32
    %1 = arith.extui %0 : i1 to i32
    %c0_i32_0 = arith.constant 0 : i32
    %2 = arith.cmpi ne, %1, %c0_i32_0 : i32
    scf.if %2 {
      %cst_62 = arith.constant 0.000000e+00 : f32
      %50 = vector.broadcast %cst_62 : f32 to vector<64x8xf32>
      %c0_63 = arith.constant 0 : index
      %c0_64 = arith.constant 0 : index
      %51 = vector.load %arg8[%c0_63, %c0_64] : memref<64x8xf32, #tpu.memory_space<vmem>>, vector<64x8xf32>
      tpu.vector_store %arg8[%c0_63, %c0_64], %50 {strides = array<i32>} : memref<64x8xf32, #tpu.memory_space<vmem>>, vector<64x8xf32>,
    } else {
    }
    %c0 = arith.constant 0 : index
    %c0_1 = arith.constant 0 : index
    %c0_2 = arith.constant 0 : index
    %c0_3 = arith.constant 0 : index
    %c0_4 = arith.constant 0 : index
    %3 = vector.load %arg3[%c0, %c0_1, %c0_2, %c0_3, %c0_4] : memref<1x1x10x10x8xbf16, #tpu.memory_space<vmem>>, vector<1x1x8x8x8xbf16>
    %4 = vector.shape_cast %3 : vector<1x1x8x8x8xbf16> to vector<8x8x8xbf16>
    %5 = vector.shape_cast %4 : vector<8x8x8xbf16> to vector<64x8xbf16>
    %c0_5 = arith.constant 0 : index
    %c0_6 = arith.constant 0 : index
    %6 = vector.load %arg7[%c0_5, %c0_6] : memref<64x72xbf16, #tpu.memory_space<vmem>>, vector<64x8xbf16>
    tpu.vector_store %arg7[%c0_5, %c0_6], %5 {strides = array<i32>} : memref<64x72xbf16, #tpu.memory_space<vmem>>, vector<64x8xbf16>,
    %c0_7 = arith.constant 0 : index
    %c0_8 = arith.constant 0 : index
    %c0_9 = arith.constant 0 : index
    %c1 = arith.constant 1 : index
    %c0_10 = arith.constant 0 : index
    %7 = vector.load %arg3[%c0_7, %c0_8, %c0_9, %c1, %c0_10] : memref<1x1x10x10x8xbf16, #tpu.memory_space<vmem>>, vector<1x1x8x8x8xbf16>
    %8 = vector.shape_cast %7 : vector<1x1x8x8x8xbf16> to vector<8x8x8xbf16>
    %9 = vector.shape_cast %8 : vector<8x8x8xbf16> to vector<64x8xbf16>
    %c0_11 = arith.constant 0 : index
    %c8 = arith.constant 8 : index
    %10 = vector.load %arg7[%c0_11, %c8] : memref<64x72xbf16, #tpu.memory_space<vmem>>, vector<64x8xbf16>
    tpu.vector_store %arg7[%c0_11, %c8], %9 {strides = array<i32>} : memref<64x72xbf16, #tpu.memory_space<vmem>>, vector<64x8xbf16>,
    %c0_12 = arith.constant 0 : index
    %c0_13 = arith.constant 0 : index
    %c0_14 = arith.constant 0 : index
    %c2 = arith.constant 2 : index
    %c0_15 = arith.constant 0 : index
    %11 = vector.load %arg3[%c0_12, %c0_13, %c0_14, %c2, %c0_15] : memref<1x1x10x10x8xbf16, #tpu.memory_space<vmem>>, vector<1x1x8x8x8xbf16>
    %12 = vector.shape_cast %11 : vector<1x1x8x8x8xbf16> to vector<8x8x8xbf16>
    %13 = vector.shape_cast %12 : vector<8x8x8xbf16> to vector<64x8xbf16>
    %c0_16 = arith.constant 0 : index
    %c16 = arith.constant 16 : index
    %14 = vector.load %arg7[%c0_16, %c16] : memref<64x72xbf16, #tpu.memory_space<vmem>>, vector<64x8xbf16>
    tpu.vector_store %arg7[%c0_16, %c16], %13 {strides = array<i32>} : memref<64x72xbf16, #tpu.memory_space<vmem>>, vector<64x8xbf16>,
    %c0_17 = arith.constant 0 : index
    %c0_18 = arith.constant 0 : index
    %c1_19 = arith.constant 1 : index
    %c0_20 = arith.constant 0 : index
    %c0_21 = arith.constant 0 : index
    %15 = vector.load %arg3[%c0_17, %c0_18, %c1_19, %c0_20, %c0_21] : memref<1x1x10x10x8xbf16, #tpu.memory_space<vmem>>, vector<1x1x8x8x8xbf16>
    %16 = vector.shape_cast %15 : vector<1x1x8x8x8xbf16> to vector<8x8x8xbf16>
    %17 = vector.shape_cast %16 : vector<8x8x8xbf16> to vector<64x8xbf16>
    %c0_22 = arith.constant 0 : index
    %c24 = arith.constant 24 : index
    %18 = vector.load %arg7[%c0_22, %c24] : memref<64x72xbf16, #tpu.memory_space<vmem>>, vector<64x8xbf16>
    tpu.vector_store %arg7[%c0_22, %c24], %17 {strides = array<i32>} : memref<64x72xbf16, #tpu.memory_space<vmem>>, vector<64x8xbf16>,
    %c0_23 = arith.constant 0 : index
    %c0_24 = arith.constant 0 : index
    %c1_25 = arith.constant 1 : index
    %c1_26 = arith.constant 1 : index
    %c0_27 = arith.constant 0 : index
    %19 = vector.load %arg3[%c0_23, %c0_24, %c1_25, %c1_26, %c0_27] : memref<1x1x10x10x8xbf16, #tpu.memory_space<vmem>>, vector<1x1x8x8x8xbf16>
    %20 = vector.shape_cast %19 : vector<1x1x8x8x8xbf16> to vector<8x8x8xbf16>
    %21 = vector.shape_cast %20 : vector<8x8x8xbf16> to vector<64x8xbf16>
    %c0_28 = arith.constant 0 : index
    %c32 = arith.constant 32 : index
    %22 = vector.load %arg7[%c0_28, %c32] : memref<64x72xbf16, #tpu.memory_space<vmem>>, vector<64x8xbf16>
    tpu.vector_store %arg7[%c0_28, %c32], %21 {strides = array<i32>} : memref<64x72xbf16, #tpu.memory_space<vmem>>, vector<64x8xbf16>,
    %c0_29 = arith.constant 0 : index
    %c0_30 = arith.constant 0 : index
    %c1_31 = arith.constant 1 : index
    %c2_32 = arith.constant 2 : index
    %c0_33 = arith.constant 0 : index
    %23 = vector.load %arg3[%c0_29, %c0_30, %c1_31, %c2_32, %c0_33] : memref<1x1x10x10x8xbf16, #tpu.memory_space<vmem>>, vector<1x1x8x8x8xbf16>
    %24 = vector.shape_cast %23 : vector<1x1x8x8x8xbf16> to vector<8x8x8xbf16>
    %25 = vector.shape_cast %24 : vector<8x8x8xbf16> to vector<64x8xbf16>
    %c0_34 = arith.constant 0 : index
    %c40 = arith.constant 40 : index
    %26 = vector.load %arg7[%c0_34, %c40] : memref<64x72xbf16, #tpu.memory_space<vmem>>, vector<64x8xbf16>
    tpu.vector_store %arg7[%c0_34, %c40], %25 {strides = array<i32>} : memref<64x72xbf16, #tpu.memory_space<vmem>>, vector<64x8xbf16>,
    %c0_35 = arith.constant 0 : index
    %c0_36 = arith.constant 0 : index
    %c2_37 = arith.constant 2 : index
    %c0_38 = arith.constant 0 : index
    %c0_39 = arith.constant 0 : index
    %27 = vector.load %arg3[%c0_35, %c0_36, %c2_37, %c0_38, %c0_39] : memref<1x1x10x10x8xbf16, #tpu.memory_space<vmem>>, vector<1x1x8x8x8xbf16>
    %28 = vector.shape_cast %27 : vector<1x1x8x8x8xbf16> to vector<8x8x8xbf16>
    %29 = vector.shape_cast %28 : vector<8x8x8xbf16> to vector<64x8xbf16>
    %c0_40 = arith.constant 0 : index
    %c48 = arith.constant 48 : index
    %30 = vector.load %arg7[%c0_40, %c48] : memref<64x72xbf16, #tpu.memory_space<vmem>>, vector<64x8xbf16>
    tpu.vector_store %arg7[%c0_40, %c48], %29 {strides = array<i32>} : memref<64x72xbf16, #tpu.memory_space<vmem>>, vector<64x8xbf16>,
    %c0_41 = arith.constant 0 : index
    %c0_42 = arith.constant 0 : index
    %c2_43 = arith.constant 2 : index
    %c1_44 = arith.constant 1 : index
    %c0_45 = arith.constant 0 : index
    %31 = vector.load %arg3[%c0_41, %c0_42, %c2_43, %c1_44, %c0_45] : memref<1x1x10x10x8xbf16, #tpu.memory_space<vmem>>, vector<1x1x8x8x8xbf16>
    %32 = vector.shape_cast %31 : vector<1x1x8x8x8xbf16> to vector<8x8x8xbf16>
    %33 = vector.shape_cast %32 : vector<8x8x8xbf16> to vector<64x8xbf16>
    %c0_46 = arith.constant 0 : index
    %c56 = arith.constant 56 : index
    %34 = vector.load %arg7[%c0_46, %c56] : memref<64x72xbf16, #tpu.memory_space<vmem>>, vector<64x8xbf16>
    tpu.vector_store %arg7[%c0_46, %c56], %33 {strides = array<i32>} : memref<64x72xbf16, #tpu.memory_space<vmem>>, vector<64x8xbf16>,
    %c0_47 = arith.constant 0 : index
    %c0_48 = arith.constant 0 : index
    %c2_49 = arith.constant 2 : index
    %c2_50 = arith.constant 2 : index
    %c0_51 = arith.constant 0 : index
    %35 = vector.load %arg3[%c0_47, %c0_48, %c2_49, %c2_50, %c0_51] : memref<1x1x10x10x8xbf16, #tpu.memory_space<vmem>>, vector<1x1x8x8x8xbf16>
    %36 = vector.shape_cast %35 : vector<1x1x8x8x8xbf16> to vector<8x8x8xbf16>
    %37 = vector.shape_cast %36 : vector<8x8x8xbf16> to vector<64x8xbf16>
    %c0_52 = arith.constant 0 : index
    %c64 = arith.constant 64 : index
    %38 = vector.load %arg7[%c0_52, %c64] : memref<64x72xbf16, #tpu.memory_space<vmem>>, vector<64x8xbf16>
    tpu.vector_store %arg7[%c0_52, %c64], %37 {strides = array<i32>} : memref<64x72xbf16, #tpu.memory_space<vmem>>, vector<64x8xbf16>,
    %c0_53 = arith.constant 0 : index
    %c0_54 = arith.constant 0 : index
    %39 = vector.load %arg8[%c0_53, %c0_54] : memref<64x8xf32, #tpu.memory_space<vmem>>, vector<64x8xf32>
    %c0_55 = arith.constant 0 : index
    %c0_56 = arith.constant 0 : index
    %40 = vector.load %arg7[%c0_55, %c0_56] : memref<64x72xbf16, #tpu.memory_space<vmem>>, vector<64x72xbf16>
    %41 = arith.index_cast %arg2 : i32 to index
    %c0_57 = arith.constant 0 : index
    %c0_58 = arith.constant 0 : index
    %42 = vector.load %arg4[%41, %c0_57, %c0_58] : memref<2x72x8xbf16, #tpu.memory_space<vmem>>, vector<1x72x8xbf16>
    %43 = vector.shape_cast %42 : vector<1x72x8xbf16> to vector<72x8xbf16>
    %cst = arith.constant dense<0.000000e+00> : vector<64x8xf32>
    %44 = tpu.matmul %40, %43, %cst {dimension_numbers = #tpu.dot_dimension_numbers<[1], [0], [0], [1], [0, 0, 1, 1], [], []>} : vector<64x72xbf16>, vector<72x8xbf16>, vector<64x8xf32> -> vector<64x8xf32>
    %45 = arith.addf %39, %44 : vector<64x8xf32>
    %c0_59 = arith.constant 0 : index
    %c0_60 = arith.constant 0 : index
    %46 = vector.load %arg8[%c0_59, %c0_60] : memref<64x8xf32, #tpu.memory_space<vmem>>, vector<64x8xf32>
    tpu.vector_store %arg8[%c0_59, %c0_60], %45 {strides = array<i32>} : memref<64x8xf32, #tpu.memory_space<vmem>>, vector<64x8xf32>,
    %c1_i32 = arith.constant 1 : i32
    %47 = arith.cmpi eq, %arg2, %c1_i32 : i32
    %48 = arith.extui %47 : i1 to i32
    %c0_i32_61 = arith.constant 0 : i32
    %49 = arith.cmpi ne, %48, %c0_i32_61 : i32
    scf.if %49 {
      %c0_62 = arith.constant 0 : index
      %c0_63 = arith.constant 0 : index
      %50 = vector.load %arg8[%c0_62, %c0_63] : memref<64x8xf32, #tpu.memory_space<vmem>>, vector<64x8xf32>
      %c0_64 = arith.constant 0 : index
      %c0_65 = arith.constant 0 : index
      %51 = vector.load %arg5[%c0_64, %c0_65] : memref<1x8xf32, #tpu.memory_space<vmem>>, vector<1x8xf32>
      %52 = vector.broadcast %51 : vector<1x8xf32> to vector<64x8xf32>
      %53 = arith.addf %50, %52 : vector<64x8xf32>
      %54 = tpu.transpose %53, [1, 0] : vector<64x8xf32> -> vector<8x64xf32>
      %c0_66 = arith.constant 0 : index
      %c0_67 = arith.constant 0 : index
      %c0_68 = arith.constant 0 : index
      %c0_69 = arith.constant 0 : index
      %55 = vector.load %arg6[%c0_66, %c0_67, %c0_68, %c0_69] : memref<1x1x8x64xf32, #tpu.memory_space<vmem>>, vector<1x1x8x64xf32>
      %56 = vector.shape_cast %55 : vector<1x1x8x64xf32> to vector<8x64xf32>
      %57 = vector.shape_cast %54 : vector<8x64xf32> to vector<1x1x8x64xf32>
      tpu.vector_store %arg6[%c0_66, %c0_67, %c0_68, %c0_69], %57 {strides = array<i32>} : memref<1x1x8x64xf32, #tpu.memory_space<vmem>>, vector<1x1x8x64xf32>,
    } else {
    }
    return
  }
  func.func @transform_0(%arg0: i32, %arg1: i32, %arg2: i32) -> (i32, i32, i32, i32, i32) {
    %c1_i32 = arith.constant 1 : i32
    %0 = arith.muli %arg1, %c1_i32 : i32
    %1 = arith.addi %0, %arg2 : i32
    %c0_i32 = arith.constant 0 : i32
    %c0_i32_0 = arith.constant 0 : i32
    %c0_i32_1 = arith.constant 0 : i32
    %c0_i32_2 = arith.constant 0 : i32
    return %arg0, %1, %c0_i32, %c0_i32_0, %c0_i32_1 : i32, i32, i32, i32, i32
  }
  func.func @transform_1(%arg0: i32, %arg1: i32, %arg2: i32) -> (i32, i32, i32) {
    %c0_i32 = arith.constant 0 : i32
    %c0_i32_0 = arith.constant 0 : i32
    %c0_i32_1 = arith.constant 0 : i32
    %c0_i32_2 = arith.constant 0 : i32
    return %c0_i32, %c0_i32_0, %c0_i32_1 : i32, i32, i32
  }
  func.func @transform_2(%arg0: i32, %arg1: i32, %arg2: i32) -> (i32, i32) {
    %c0_i32 = arith.constant 0 : i32
    %c0_i32_0 = arith.constant 0 : i32
    %c0_i32_1 = arith.constant 0 : i32
    return %c0_i32, %c0_i32_0 : i32, i32
  }
  func.func @transform_3(%arg0: i32, %arg1: i32, %arg2: i32) -> (i32, i32, i32, i32) {
    %c0_i32 = arith.constant 0 : i32
    %c0_i32_0 = arith.constant 0 : i32
    %c0_i32_1 = arith.constant 0 : i32
    return %arg0, %arg1, %c0_i32, %c0_i32_0 : i32, i32, i32, i32
  }
}

</mosaic_0001>

<bundles_post_ra>
// kernel: down_right_shifted_conv3d_forward.5
= control target key start
LH: loop header
LB: loop body
LE: loop exit
PB: predicated region body
PF: predicated region fallthrough
CT: control target
= control target key end

     0   :  { %s1683_s12 = smov 0   ;;  %s1685_s13 = smov 0   ;;  %s2042_s0 = inlined_call_operand.vmem [shape: bf16[2,1,10,10,4], index: 0, kind: input, shape index: {}]   ;;  %s2043_s1 = inlined_call_operand.vmem [shape: bf16[1,36,8], index: 1, kind: input, shape index: {}]   ;;  %s2044_s2 = inlined_call_operand.vmem [shape: f32[1,8], index: 2, kind: input, shape index: {}]   ;;  %s2045_s3 = inlined_call_operand.vmem [shape: f32[2,1,8,64], index: 3, kind: output, shape index: {}]  }
   0x1   :  { %s1687_s14 = smov 0  }
   0x2 LB: > { %s32_s15 = sadd.s32 1, %s1648_s13  ;;  %p1399_p0 = scmp.ge.s32.totalorder %s1652_s14, 1  ;;  %s1652_s14 = sphi %s1687_s14, %s13_s14   ;;  %s1648_s13 = sphi %s1685_s13, %s2051_s13   ;;  %s1644_s12 = sphi %s1683_s12, %s2050_s12  }
   0x3   : > { %p34_p1 = scmp.ge.s32.totalorder %s32_s15, 2  ;;  %p168_p2 = scmp.lt.s32.totalorder %s1652_s14, 3 }
   0x5   : > { %s2053_s15 = smov (%p34_p1, %s32_s15), 0  ;;  %p169_p3 = pnand %p1399_p0, %p168_p2 }
   0x6   : > { %p200_p4 = scmp.lt.s32.totalorder (!%p169_p3), %s1644_s12, 1  ;;  %vm460_vm0 = vcmask (!%p169_p3), 1042432   ;;  %vm461_vm1 = vcmask (!%p169_p3), 1046532   ;;  %s1654_s20 = smov (!%p169_p3), 12   ;;  %vm284_vm3 = vsmask.f32 (!%p169_p3), 3328 }
   0x7   : > { %172 = sbr.rel (%p169_p3) target bundleno = 568 (0x238), region = 32  ;;  %vm1709_vm2 = vmor (!%p169_p3), %vm460_vm0, %vm461_vm1  ;;  %vm285_vm4 = vsmask.f32 (!%p169_p3), 7440  ;;  %s1655_s21 = smov (!%p169_p3), 8   ;;  %vm263_vm6 = vcmask (!%p169_p3), 31744   ;;  %vm1164_vm7 = vcmask (!%p169_p3), 1041408  }
   0x8   : > { %s1656_s22 = smov (!%p169_p3), 20   ;;  %vm1754_vm5 = vmor (!%p169_p3), %vm284_vm3, %vm285_vm4  ;;  %s1657_s23 = smov (!%p169_p3), 4   ;;  %vm222_vm8 = vcmask (!%p169_p3), 64512   ;;  %v1629_v0 = vld [vmem:[%s2043_s1 + $0x10] ss:$0 sps:$4 sm:$0x33] (!%p169_p3)  }
   0x9   : > { %s1658_s24 = smov (!%p169_p3), 16   ;;  %s1659_s25 = smov (!%p169_p3), 24   ;;  %vm423_vm9 = vcmask (!%p169_p3), 64544   ;;  %vm519_vm10 = vcmask (!%p169_p3), 97344   ;;  %vm565_vm11 = vcmask (!%p169_p3), 130144   ;;  %vm722_vm12 = vcmask (!%p169_p3), 162944  }
   0xa   : > { %s1660_s30 = smov (!%p169_p3), 28   ;;  %s1661_s4 = smov (!%p169_p3), 32   ;;  %vm815_vm13 = vcmask (!%p169_p3), 195744   ;;  %vm861_vm14 = vcmask (!%p169_p3), 228544   ;;  %vm1018_vm15 = vcmask (!%p169_p3), 261344   ;;  %vm1111_vm0 = vcmask (!%p169_p3), 294144  }
   0xb   : > { %vm1151_vm1 = vcmask (!%p169_p3), 293888  }
   0xe   : > { %s2055_s12 = smov (!%p200_p4, %s1644_s12), 1 }
   0xf   : > { %s1581_s16 = smul.u32 80, %s2055_s12  ;;  %s1401_s9 = sshll.u32 %s2055_s12, 3 }
  0x11   : > { %s1707_s19 = scalar_lea.vmem %s2042_s0, %s1581_s16  ;;  %s216_s16 = scalar_lea.vmem %s2045_s3, %s1401_s9 }
  0x12   : > { %v1615_v1 = vld [vmem:[%s1707_s19 + $0x18] ss:$8 sps:$4 sm:$0xff]   ;;  %v1616_v2 = vld [vmem:[%s1707_s19 + $0x8] ss:$8 sps:$4 sm:$0xff]   ;;  %v429_v4 = vld [vmem:[%s1707_s19 + $0x4] sm:$0x1] }
  0x13   : > { %555 = vrot.lane.b32.xlu1 %v1615_v1, %s1654_s20  ;;  %v428_v3 = vld [vmem:[%s1707_s19] sm:$0xe]  ;;  %v430_v5 = vld [vmem:[%s1707_s19 + $0x8] sm:$0xe]  ;;  %553 = vrot.lane.b32.xlu0 %v1616_v2, %s1654_s20  ;;  %v465_v8 = vrot.slane %v429_v4, 5 }
  0x14   : > { %v431_v6 = vld [vmem:[%s1707_s19 + $0xc] sm:$0x1]  ;;  %v1410_v7 = vrot.slane %v428_v3, 9  ;;  %v1411_v9 = vrot.slane %v430_v5, 9  ;;  %v1454_v11 = vld [vmem:[%s1707_s19 + $0x8] sm:$0xe] }
  0x15   : > { %v469_v10 = vrot.slane %v431_v6, 5  ;;  %v1455_v12 = vld [vmem:[%s1707_s19 + $0xc] sm:$0x1]  ;;  %v1456_v14 = vld [vmem:[%s1707_s19 + $0x10] sm:$0xe]  ;;  %v1470_v16 = vrot.slane %v1454_v11, 9 }
  0x16   : > { %v466_v13 = vsel %vm1709_vm2, %v1410_v7, %v465_v8  ;;  %v1457_v15 = vld [vmem:[%s1707_s19 + $0x14] sm:$0x1]  ;;  %v761_v17 = vrot.slane %v1455_v12, 5  ;;  %v1471_v19 = vrot.slane %v1456_v14, 9  ;;  %v432_v21 = vld [vmem:[%s1707_s19 + $0x10] sm:$0xe] }
  0x17   : > { %v470_v18 = vsel %vm1709_vm2, %v1411_v9, %v469_v10  ;;  %v765_v20 = vrot.slane %v1457_v15, 5  ;;  %v433_v22 = vld [vmem:[%s1707_s19 + $0x14] sm:$0x1]  ;;  %v434_v25 = vld [vmem:[%s1707_s19 + $0x18] sm:$0xe]  ;;  %v1412_v27 = vrot.slane %v432_v21, 9 }
  0x18   : > { %v1418_v23 = vcombine.low %v466_v13, %v470_v18  ;;  %v762_v24 = vsel %vm1709_vm2, %v1470_v16, %v761_v17  ;;  %v435_v26 = vld [vmem:[%s1707_s19 + $0x1c] sm:$0x1]  ;;  %v473_v28 = vrot.slane %v433_v22, 5  ;;  %v1413_v30 = vrot.slane %v434_v25, 9  ;;  %v268_v32 = vld [vmem:[%s1707_s19] sm:$0xf] }
  0x19   : > { %v766_v29 = vsel %vm1709_vm2, %v1471_v19, %v765_v20  ;;  %v477_v31 = vrot.slane %v435_v26, 5  ;;  %v269_v33 = vld [vmem:[%s1707_s19 + $0x4] sm:$0x1]  ;;  %v270_v36 = vld [vmem:[%s1707_s19 + $0x8] sm:$0xf]  ;;  %v288_v38 = vshrl.u32 %v268_v32, 16 }
  0x1a   : > { %507 = vrot.lane.b32.xlu1 %v1418_v23, %s1655_s21  ;;  %v1478_v34 = vcombine.low %v762_v24, %v766_v29  ;;  %v474_v35 = vsel %vm1709_vm2, %v1412_v27, %v473_v28  ;;  %v271_v37 = vld [vmem:[%s1707_s19 + $0xc] sm:$0x1]  ;;  %v291_v39 = vshll.u32 %v268_v32, 16  ;;  %v297_v41 = vshll.u32 %v269_v33, 16  ;;  %v1458_v44 = vld [vmem:[%s1707_s19 + $0x18] sm:$0xe] }
  0x1b   : > { %v478_v40 = vsel %vm1709_vm2, %v1413_v30, %v477_v31  ;;  %v302_v42 = vshrl.u32 %v270_v36, 16  ;;  %v305_v43 = vshll.u32 %v270_v36, 16  ;;  %v290_v46 = vrot.slane %v288_v38, 4  ;;  %v1459_v49 = vld [vmem:[%s1707_s19 + $0x1c] sm:$0x1] }
  0x1c   : > { %803 = vrot.lane.b32.xlu0 %v1478_v34, %s1656_s22  ;;  %v1419_v45 = vcombine.low %v474_v35, %v478_v40  ;;  %v293_v47 = vrot.slane %v291_v39, 5  ;;  %v311_v48 = vshll.u32 %v271_v37, 16  ;;  %v1460_v52 = vld [vmem:[%s1707_s19 + $0x20] sm:$0xe]  ;;  %v1472_v53 = vrot.slane %v1458_v44, 9 }
  0x1d   : > { %v304_v50 = vrot.slane %v302_v42, 4  ;;  %v307_v51 = vrot.slane %v305_v43, 5  ;;  %v299_v55 = vrot.slane %v297_v41, 5  ;;  %v1461_v56 = vld [vmem:[%s1707_s19 + $0x24] sm:$0x1]  ;;  %v769_v57 = vrot.slane %v1459_v49, 5 }
  0x1e   : > { %509 = vrot.lane.b32.xlu1 %v1419_v45, %s1655_s21  ;;  %v294_v54 = vor.u32 %v293_v47, %v290_v46  ;;  %v1473_v58 = vrot.slane %v1460_v52, 9  ;;  %v313_v61 = vrot.slane %v311_v48, 5  ;;  %v773_v62 = vrot.slane %v1461_v56, 5  ;;  %v272_v63 = vld [vmem:[%s1707_s19 + $0x10] sm:$0xf] }
  0x1f   : > { %v308_v60 = vor.u32 %v307_v51, %v304_v50  ;;  %v273_v1 = vld [vmem:[%s1707_s19 + $0x14] sm:$0x1]  ;;  %v770_v3 = vsel %vm1709_vm2, %v1472_v53, %v769_v57  ;;  %v274_v4 = vld [vmem:[%s1707_s19 + $0x18] sm:$0xf]  ;;  %v275_v5 = vld [vmem:[%s1707_s19 + $0x1c] sm:$0x1] }
  0x20   : > { %v295_v2 = vrot.slane %v294_v54, 4  ;;  %v316_v6 = vshrl.u32 %v272_v63, 16  ;;  %v774_v8 = vsel %vm1709_vm2, %v1473_v58, %v773_v62  ;;  %v319_v9 = vshll.u32 %v272_v63, 16  ;;  %v1438_v11 = vld [vmem:[%s1707_s19 + $0x18] sm:$0xf] }
  0x21   : > { %v309_v7 = vrot.slane %v308_v60, 4  ;;  %v325_v10 = vshll.u32 %v273_v1, 16  ;;  %v1479_v13 = vcombine.low %v770_v3, %v774_v8  ;;  %v330_v15 = vshrl.u32 %v274_v4, 16  ;;  %v1439_v16 = vld [vmem:[%s1707_s19 + $0x1c] sm:$0x1] }
  0x22   : > { %v300_v12 = vsel %vm1754_vm5, %v295_v2, %v299_v55  ;;  %v318_v14 = vrot.slane %v316_v6, 4  ;;  %v321_v18 = vrot.slane %v319_v9, 5  ;;  %v333_v20 = vshll.u32 %v274_v4, 16  ;;  %v1440_v21 = vld [vmem:[%s1707_s19 + $0x20] sm:$0xf] }
  0x23   : > { %v314_v17 = vsel %vm1754_vm5, %v309_v7, %v313_v61  ;;  %v327_v19 = vrot.slane %v325_v10, 5  ;;  %805 = vrot.lane.b32.xlu1 %v1479_v13, %s1656_s22  ;;  %v332_v23 = vrot.slane %v330_v15, 4  ;;  %v339_v24 = vshll.u32 %v275_v5, 16  ;;  %v1441_v25 = vld [vmem:[%s1707_s19 + $0x24] sm:$0x1] }
  0x24   : > { %v1406_v22 = vcombine.low %v300_v12, %v314_v17  ;;  %v615_v26 = vshrl.u32 %v1438_v11, 16  ;;  %v322_v27 = vor.u32 %v321_v18, %v318_v14  ;;  %v335_v28 = vrot.slane %v333_v20, 5  ;;  %v1434_v31 = vld [vmem:[%s1707_s19 + $0x8] sm:$0xf]  ;;  %v1435_v36 = vld [vmem:[%s1707_s19 + $0xc] sm:$0x1] }
  0x25   : > { %v618_v29 = vshll.u32 %v1438_v11, 16  ;;  %v624_v30 = vshll.u32 %v1439_v16, 16  ;;  %v341_v32 = vrot.slane %v339_v24, 5  ;;  %v629_v34 = vshrl.u32 %v1440_v21, 16  ;;  %v1436_v41 = vld [vmem:[%s1707_s19 + $0x10] sm:$0xf] }
  0x26   : > { %411 = vrot.lane.b32.xlu0 %v1406_v22, %s1657_s23  ;;  %v617_v33 = vrot.slane %v615_v26, 4  ;;  %v632_v35 = vshll.u32 %v1440_v21, 16  ;;  %v323_v37 = vrot.slane %v322_v27, 4  ;;  %v336_v38 = vor.u32 %v335_v28, %v332_v23  ;;  %v1437_v49 = vld [vmem:[%s1707_s19 + $0x14] sm:$0x1] }
  0x27   : > { %v620_v39 = vrot.slane %v618_v29, 5  ;;  %v626_v40 = vrot.slane %v624_v30, 5  ;;  %v631_v42 = vrot.slane %v629_v34, 4  ;;  %v638_v44 = vshll.u32 %v1441_v25, 16  ;;  %v1494_v5 = vld [vmem:[%s1707_s19 + $0x10] sm:$0xf] }
  0x28   : > { %v634_v43 = vrot.slane %v632_v35, 5  ;;  %v587_v45 = vshrl.u32 %v1434_v31, 16  ;;  %v328_v46 = vsel %vm1754_vm5, %v323_v37, %v327_v19  ;;  %v337_v47 = vrot.slane %v336_v38, 4  ;;  %v1495_v6 = vld [vmem:[%s1707_s19 + $0x14] sm:$0x1] }
  0x29   : > { %v621_v48 = vor.u32 %v620_v39, %v617_v33  ;;  %v590_v50 = vshll.u32 %v1434_v31, 16  ;;  %v640_v52 = vrot.slane %v638_v44, 5  ;;  %v596_v54 = vshll.u32 %v1435_v36, 16  ;;  %v1496_v9 = vld [vmem:[%s1707_s19 + $0x18] sm:$0xf] }
  0x2a   : > { %v635_v51 = vor.u32 %v634_v43, %v631_v42  ;;  %v589_v53 = vrot.slane %v587_v45, 4  ;;  %v342_v55 = vsel %vm1754_vm5, %v337_v47, %v341_v32  ;;  %v601_v58 = vshrl.u32 %v1436_v41, 16  ;;  %v1497_v10 = vld [vmem:[%s1707_s19 + $0x1c] sm:$0x1]  ;;  %v1618_v15 = vld [vmem:[%s1707_s19 + $0x20] ss:$8 sps:$4 sm:$0xff]  }
  0x2b   : > { %v622_v56 = vrot.slane %v621_v48, 4  ;;  %v592_v57 = vrot.slane %v590_v50, 5  ;;  %v1407_v60 = vcombine.low %v328_v46, %v342_v55  ;;  %v598_v62 = vrot.slane %v596_v54, 5  ;;  %v1498_v17 = vld [vmem:[%s1707_s19 + $0x20] sm:$0xf] }
  0x2c   : > { %v636_v61 = vrot.slane %v635_v51, 4  ;;  %v604_v63 = vshll.u32 %v1436_v41, 16  ;;  %v603_v3 = vrot.slane %v601_v58, 4  ;;  %v610_v4 = vshll.u32 %v1437_v49, 16  ;;  %v1499_v22 = vld [vmem:[%s1707_s19 + $0x24] sm:$0x1] }
  0x2d   : > { %v627_v1 = vsel %vm1754_vm5, %v622_v56, %v626_v40  ;;  %v593_v2 = vor.u32 %v592_v57, %v589_v53  ;;  %413 = vrot.lane.b32.xlu0 %v1407_v60, %s1657_s23  ;;  %v883_v11 = vshrl.u32 %v1494_v5, 16  ;;  %v886_v16 = vshll.u32 %v1494_v5, 16  ;;  %v1500_v27 = vld [vmem:[%s1707_s19 + $0x28] sm:$0xf]  ;;  %v1501_v31 = vld [vmem:[%s1707_s19 + $0x2c] sm:$0x1] }
  0x2e   : > { %v641_v7 = vsel %vm1754_vm5, %v636_v61, %v640_v52  ;;  %v606_v8 = vrot.slane %v604_v63, 5  ;;  %v612_v14 = vrot.slane %v610_v4, 5  ;;  %v892_v20 = vshll.u32 %v1495_v6, 16  ;;  %v1514_v37 = vld [vmem:[%s1707_s19 + $0x10] sm:$0xe] }
  0x2f   : > { %v1451_v12 = vcombine.low %v627_v1, %v641_v7  ;;  %v594_v13 = vrot.slane %v593_v2, 4  ;;  %v885_v19 = vrot.slane %v883_v11, 4  ;;  %v897_v21 = vshrl.u32 %v1496_v9, 16  ;;  %v1515_v42 = vld [vmem:[%s1707_s19 + $0x14] sm:$0x1]  ;;  %v1625_v7 = vld [vmem:[%s2043_s1] sm:$0xff]  }
  0x30   : > { %v607_v18 = vor.u32 %v606_v8, %v603_v3  ;;  %v888_v24 = vrot.slane %v886_v16, 5  ;;  %v900_v25 = vshll.u32 %v1496_v9, 16  ;;  %v906_v26 = vshll.u32 %v1497_v10, 16  ;;  %v1516_v47 = vld [vmem:[%s1707_s19 + $0x18] sm:$0xe]  ;;  %1559 = vmatprep.subr.bf16.mxu0 %v1625_v7  ;;  %1573 = vmatprep.subr.bf16.mxu1 %v1625_v7 }
  0x31   : > { %712 = vrot.lane.b32.xlu1 %v1451_v12, %s1658_s24  ;;  %v599_v23 = vsel %vm1754_vm5, %v594_v13, %v598_v62  ;;  %v894_v29 = vrot.slane %v892_v20, 5  ;;  %v899_v30 = vrot.slane %v897_v21, 4  ;;  %v911_v32 = vshrl.u32 %v1498_v17, 16  ;;  %v1517_v48 = vld [vmem:[%s1707_s19 + $0x1c] sm:$0x1]  ;;  %1560 = vmatpush3.bf16.msra.mxu0 %v1625_v7 }
  0x32   : > { %v608_v28 = vrot.slane %v607_v18, 4  ;;  %v889_v33 = vor.u32 %v888_v24, %v885_v19  ;;  %v902_v34 = vrot.slane %v900_v25, 5  ;;  %v908_v35 = vrot.slane %v906_v26, 5  ;;  %v276_v53 = vld [vmem:[%s1707_s19 + $0x20] sm:$0xf]  ;;  %v1627_v25 = vld [vmem:[%s2043_s1 + $0x8] sm:$0xff]   ;;  %1576 = vmatpush3.bf16.msra.mxu1 %v1625_v7 }
  0x33   : > { %v914_v36 = vshll.u32 %v1498_v17, 16  ;;  %v913_v39 = vrot.slane %v911_v32, 4  ;;  %v920_v40 = vshll.u32 %v1499_v22, 16  ;;  %v925_v41 = vshrl.u32 %v1500_v27, 16  ;;  %v1617_v54 = vld [vmem:[%s1707_s19 + $0x10] ss:$8 sps:$4 sm:$0xff]   ;;  %1561 = vmatprep.subr.bf16.mxu0 %v1627_v25  ;;  %1574 = vmatprep.subr.bf16.mxu1 %v1627_v25 }
  0x34   : > { %v613_v38 = vsel %vm1754_vm5, %v608_v28, %v612_v14  ;;  %v890_v44 = vrot.slane %v889_v33, 4  ;;  %v903_v45 = vor.u32 %v902_v34, %v899_v30  ;;  %v928_v51 = vshll.u32 %v1500_v27, 16  ;;  %v277_v1 = vld [vmem:[%s1707_s19 + $0x24] sm:$0x1]  ;;  %v278_v5 = vld [vmem:[%s1707_s19 + $0x28] sm:$0xf] }
  0x35   : > { %v1450_v43 = vcombine.low %v599_v23, %v613_v38  ;;  %851 = vrot.lane.b32.xlu1 %v1618_v15, %s1659_s25  ;;  %v916_v46 = vrot.slane %v914_v36, 5  ;;  %v922_v49 = vrot.slane %v920_v40, 5  ;;  %v927_v50 = vrot.slane %v925_v41, 4  ;;  %v279_v11 = vld [vmem:[%s1707_s19 + $0x2c] sm:$0x1]  ;;  %1562 = vmatpush3.bf16.msra.mxu0 %v1627_v25 }
  0x36   : > { %v934_v52 = vshll.u32 %v1501_v31, 16  ;;  %v895_v55 = vsel %vm1754_vm5, %v890_v44, %v894_v29  ;;  %v904_v56 = vrot.slane %v903_v45, 4  ;;  %v1530_v58 = vrot.slane %v1514_v37, 9  ;;  %v1518_v13 = vld [vmem:[%s1707_s19 + $0x20] sm:$0xe]  ;;  %1577 = vmatpush3.bf16.msra.mxu1 %v1627_v25  ;;  %1579 = vmatprep.subr.msk.bf16.mxu0 %vm1164_vm7, %v1629_v0 }
  0x37   : > { %710 = vrot.lane.b32.xlu0 %v1450_v43, %s1658_s24  ;;  %v917_v57 = vor.u32 %v916_v46, %v913_v39  ;;  %v930_v60 = vrot.slane %v928_v51, 5  ;;  %v1057_v62 = vrot.slane %v1515_v42, 5  ;;  %v1531_v63 = vrot.slane %v1516_v47, 9  ;;  %v1519_v18 = vld [vmem:[%s1707_s19 + $0x24] sm:$0x1]  ;;  %1580 = vmatprep.subr.msk.bf16.mxu1 %vm1164_vm7, %v1629_v0 }
  0x38   : > { %v936_v61 = vrot.slane %v934_v52, 5  ;;  %v909_v2 = vsel %vm1754_vm5, %v904_v56, %v908_v35  ;;  %v1061_v4 = vrot.slane %v1517_v48, 5  ;;  %v344_v6 = vshrl.u32 %v276_v53, 16  ;;  %v1520_v19 = vld [vmem:[%s1707_s19 + $0x28] sm:$0xe] }
  0x39   : > { %v918_v3 = vrot.slane %v917_v57, 4  ;;  %v1510_v8 = vcombine.low %v895_v55, %v909_v2  ;;  %v931_v9 = vor.u32 %v930_v60, %v927_v50  ;;  %v1822_v10 = vsel %vm1709_vm2, %v1530_v58, %v1057_v62  ;;  %v1521_v24 = vld [vmem:[%s1707_s19 + $0x2c] sm:$0x1]  ;;  %v280_v30 = vld [vmem:[%s1707_s19 + $0x30] sm:$0xf] }
  0x3a   : > { %v347_v12 = vshll.u32 %v276_v53, 16  ;;  %v1062_v15 = vsel %vm1709_vm2, %v1531_v63, %v1061_v4  ;;  %v346_v16 = vrot.slane %v344_v6, 4  ;;  %v353_v17 = vshll.u32 %v277_v1, 16  ;;  %v281_v35 = vld [vmem:[%s1707_s19 + $0x34] sm:$0x1] }
  0x3b   : > { %849 = vrot.lane.b32.xlu0 %v1617_v54, %s1659_s25  ;;  %v923_v14 = vsel %vm1754_vm5, %v918_v3, %v922_v49  ;;  %v932_v20 = vrot.slane %v931_v9, 4  ;;  %v1538_v21 = vcombine.low %v1822_v10, %v1062_v15  ;;  %v358_v23 = vshrl.u32 %v278_v5, 16  ;;  %v282_v36 = vld [vmem:[%s1707_s19 + $0x38] sm:$0xf]  ;;  %v283_v41 = vld [vmem:[%s1707_s19 + $0x3c] sm:$0x1] }
  0x3c   : > { %v349_v22 = vrot.slane %v347_v12, 5  ;;  %v355_v26 = vrot.slane %v353_v17, 5  ;;  %v361_v27 = vshll.u32 %v278_v5, 16  ;;  %v367_v28 = vshll.u32 %v279_v11, 16  ;;  %v436_v42 = vld [vmem:[%s1707_s19 + $0x20] sm:$0xe] }
  0x3d   : > { %v1532_v29 = vrot.slane %v1518_v13, 9  ;;  %v937_v31 = vsel %vm1754_vm5, %v932_v20, %v936_v61  ;;  %v360_v33 = vrot.slane %v358_v23, 4  ;;  %v1065_v34 = vrot.slane %v1519_v18, 5  ;;  %v437_v47 = vld [vmem:[%s1707_s19 + $0x24] sm:$0x1] }
  0x3e   : > { %v350_v32 = vor.u32 %v349_v22, %v346_v16  ;;  %v1511_v37 = vcombine.low %v923_v14, %v937_v31  ;;  %v363_v38 = vrot.slane %v361_v27, 5  ;;  %v369_v39 = vrot.slane %v367_v28, 5  ;;  %v438_v48 = vld [vmem:[%s1707_s19 + $0x28] sm:$0xe]  ;;  %v439_v53 = vld [vmem:[%s1707_s19 + $0x2c] sm:$0x1] }
  0x3f   : > { %1006 = vrot.lane.b32.xlu0 %v1510_v8, %s1660_s30  ;;  %v1533_v40 = vrot.slane %v1520_v19, 9  ;;  %v1066_v44 = vsel %vm1709_vm2, %v1532_v29, %v1065_v34  ;;  %v1069_v45 = vrot.slane %v1521_v24, 5  ;;  %v372_v46 = vshrl.u32 %v280_v30, 16  ;;  %v440_v58 = vld [vmem:[%s1707_s19 + $0x30] sm:$0xe] }
  0x40   : > { %v351_v43 = vrot.slane %v350_v32, 4  ;;  %1008 = vrot.lane.b32.xlu1 %v1511_v37, %s1660_s30  ;;  %v364_v49 = vor.u32 %v363_v38, %v360_v33  ;;  %v375_v50 = vshll.u32 %v280_v30, 16  ;;  %v381_v51 = vshll.u32 %v281_v35, 16  ;;  %v441_v60 = vld [vmem:[%s1707_s19 + $0x34] sm:$0x1] }
  0x41   : > { %v386_v52 = vshrl.u32 %v282_v36, 16  ;;  %v1070_v55 = vsel %vm1709_vm2, %v1533_v40, %v1069_v45  ;;  %v374_v56 = vrot.slane %v372_v46, 4  ;;  %v389_v57 = vshll.u32 %v282_v36, 16  ;;  %v442_v2 = vld [vmem:[%s1707_s19 + $0x38] sm:$0xe] }
  0x42   : > { %v356_v54 = vsel %vm1754_vm5, %v351_v43, %v355_v26  ;;  %v365_v61 = vrot.slane %v364_v49, 4  ;;  %v1539_v62 = vcombine.low %v1066_v44, %v1070_v55  ;;  %v377_v63 = vrot.slane %v375_v50, 5  ;;  %v443_v7 = vld [vmem:[%s1707_s19 + $0x3c] sm:$0x1]  ;;  %v1619_v27 = vld [vmem:[%s1707_s19 + $0x28] ss:$8 sps:$4 sm:$0xff]  }
  0x43   : > { %1099 = vrot.lane.b32.xlu0 %v1538_v21, %s1661_s4  ;;  %v383_v1 = vrot.slane %v381_v51, 5  ;;  %v388_v3 = vrot.slane %v386_v52, 4  ;;  %v391_v4 = vrot.slane %v389_v57, 5  ;;  %v395_v5 = vshll.u32 %v283_v41, 16  ;;  %v1442_v28 = vld [vmem:[%s1707_s19 + $0x28] sm:$0xf] }
  0x44   : > { %v1414_v6 = vrot.slane %v436_v42, 9  ;;  %v370_v8 = vsel %vm1754_vm5, %v365_v61, %v369_v39  ;;  %v378_v9 = vor.u32 %v377_v63, %v374_v56  ;;  %v481_v10 = vrot.slane %v437_v47, 5  ;;  %v1443_v29 = vld [vmem:[%s1707_s19 + $0x2c] sm:$0x1]  ;;  %v1444_v30 = vld [vmem:[%s1707_s19 + $0x30] sm:$0xf] }
  0x45   : > { %v1415_v11 = vrot.slane %v438_v48, 9  ;;  %v1408_v12 = vcombine.low %v356_v54, %v370_v8  ;;  %v392_v13 = vor.u32 %v391_v4, %v388_v3  ;;  %v397_v14 = vrot.slane %v395_v5, 5  ;;  %v1445_v33 = vld [vmem:[%s1707_s19 + $0x34] sm:$0x1]  ;;  %v1446_v36 = vld [vmem:[%s1707_s19 + $0x38] sm:$0xf] }
  0x46   : > { %v485_v15 = vrot.slane %v439_v53, 5  ;;  %v379_v16 = vrot.slane %v378_v9, 4  ;;  %v482_v17 = vsel %vm1709_vm2, %v1414_v6, %v481_v10  ;;  %v1416_v18 = vrot.slane %v440_v58, 9  ;;  %v1447_v41 = vld [vmem:[%s1707_s19 + $0x3c] sm:$0x1] }
  0x47   : > { %1101 = vrot.lane.b32.xlu0 %v1539_v62, %s1661_s4  ;;  %v489_v19 = vrot.slane %v441_v60, 5  ;;  %415 = vrot.lane.b32.xlu1 %v1408_v12, %s1657_s23  ;;  %v393_v20 = vrot.slane %v392_v13, 4  ;;  %v1417_v22 = vrot.slane %v442_v2, 9  ;;  %v493_v23 = vrot.slane %v443_v7, 5  ;;  %v1448_v42 = vld [vmem:[%s1707_s19 + $0x40] sm:$0xf] }
  0x48   : > { %v486_v21 = vsel %vm1709_vm2, %v1415_v11, %v485_v15  ;;  %v384_v24 = vsel %vm1754_vm5, %v379_v16, %v383_v1  ;;  %v643_v34 = vshrl.u32 %v1442_v28, 16  ;;  %v646_v35 = vshll.u32 %v1442_v28, 16  ;;  %v1449_v47 = vld [vmem:[%s1707_s19 + $0x44] sm:$0x1]  ;;  %v1462_v52 = vld [vmem:[%s1707_s19 + $0x28] sm:$0xe] }
  0x49   : > { %v1420_v25 = vcombine.low %v482_v17, %v486_v21  ;;  %v490_v26 = vsel %vm1709_vm2, %v1416_v18, %v489_v19  ;;  %v398_v31 = vsel %vm1754_vm5, %v393_v20, %v397_v14  ;;  %v494_v32 = vsel %vm1709_vm2, %v1417_v22, %v493_v23  ;;  %v1463_v57 = vld [vmem:[%s1707_s19 + $0x2c] sm:$0x1]  ;;  %v1620_v58 = vld [vmem:[%s1707_s19 + $0x38] ss:$8 sps:$4 sm:$0xff]   ;;  %v1464_v1 = vld [vmem:[%s1707_s19 + $0x30] sm:$0xe] }
  0x4a   : > { %v1409_v37 = vcombine.low %v384_v24, %v398_v31  ;;  %v1421_v38 = vcombine.low %v490_v26, %v494_v32  ;;  %v652_v39 = vshll.u32 %v1443_v29, 16  ;;  %v657_v40 = vshrl.u32 %v1444_v30, 16  ;;  %v1465_v6 = vld [vmem:[%s1707_s19 + $0x34] sm:$0x1]  ;;  %v1466_v11 = vld [vmem:[%s1707_s19 + $0x38] sm:$0xe] }
  0x4b   : > { %511 = vrot.lane.b32.xlu0 %v1420_v25, %s1655_s21  ;;  %v645_v43 = vrot.slane %v643_v34, 4  ;;  %v648_v44 = vrot.slane %v646_v35, 5  ;;  %v660_v45 = vshll.u32 %v1444_v30, 16  ;;  %v666_v46 = vshll.u32 %v1445_v33, 16  ;;  %v1467_v16 = vld [vmem:[%s1707_s19 + $0x3c] sm:$0x1] }
  0x4c   : > { %417 = vrot.lane.b32.xlu1 %v1409_v37, %s1657_s23  ;;  %v654_v48 = vrot.slane %v652_v39, 5  ;;  %v659_v49 = vrot.slane %v657_v40, 4  ;;  %v671_v50 = vshrl.u32 %v1446_v36, 16  ;;  %v674_v51 = vshll.u32 %v1446_v36, 16  ;;  %v1468_v21 = vld [vmem:[%s1707_s19 + $0x40] sm:$0xe] }
  0x4d   : > { %v649_v53 = vor.u32 %v648_v44, %v645_v43  ;;  %v662_v54 = vrot.slane %v660_v45, 5  ;;  %v668_v55 = vrot.slane %v666_v46, 5  ;;  %v680_v56 = vshll.u32 %v1447_v41, 16  ;;  %v1469_v24 = vld [vmem:[%s1707_s19 + $0x44] sm:$0x1] }
  0x4e   : > { %v673_v60 = vrot.slane %v671_v50, 4  ;;  %v676_v61 = vrot.slane %v674_v51, 5  ;;  %v685_v62 = vshrl.u32 %v1448_v42, 16  ;;  %v688_v63 = vshll.u32 %v1448_v42, 16  ;;  %v1502_v36 = vld [vmem:[%s1707_s19 + $0x30] sm:$0xf] }
  0x4f   : > { %557 = vrot.lane.b32.xlu0 %v1619_v27, %s1654_s20  ;;  %v650_v2 = vrot.slane %v649_v53, 4  ;;  %v663_v3 = vor.u32 %v662_v54, %v659_v49  ;;  %v682_v4 = vrot.slane %v680_v56, 5  ;;  %v694_v5 = vshll.u32 %v1449_v47, 16  ;;  %v1503_v37 = vld [vmem:[%s1707_s19 + $0x34] sm:$0x1] }
  0x50   : > { %513 = vrot.lane.b32.xlu1 %v1421_v38, %s1655_s21  ;;  %v677_v7 = vor.u32 %v676_v61, %v673_v60  ;;  %v687_v8 = vrot.slane %v685_v62, 4  ;;  %v690_v9 = vrot.slane %v688_v63, 5  ;;  %v1474_v10 = vrot.slane %v1462_v52, 9  ;;  %v1504_v40 = vld [vmem:[%s1707_s19 + $0x38] sm:$0xf] }
  0x51   : > { %v655_v12 = vsel %vm1754_vm5, %v650_v2, %v654_v48  ;;  %v664_v13 = vrot.slane %v663_v3, 4  ;;  %v696_v14 = vrot.slane %v694_v5, 5  ;;  %v777_v15 = vrot.slane %v1463_v57, 5  ;;  %v1505_v41 = vld [vmem:[%s1707_s19 + $0x3c] sm:$0x1] }
  0x52   : > { %v678_v17 = vrot.slane %v677_v7, 4  ;;  %v691_v18 = vor.u32 %v690_v9, %v687_v8  ;;  %v1475_v19 = vrot.slane %v1464_v1, 9  ;;  %v781_v20 = vrot.slane %v1465_v6, 5  ;;  %v1621_v45 = vld [vmem:[%s1707_s19 + $0x30] ss:$8 sps:$4 sm:$0xff]  }
  0x53   : > { %v669_v22 = vsel %vm1754_vm5, %v664_v13, %v668_v55  ;;  %v778_v23 = vsel %vm1709_vm2, %v1474_v10, %v777_v15  ;;  %v1476_v25 = vrot.slane %v1466_v11, 9  ;;  %v785_v26 = vrot.slane %v1467_v16, 5  ;;  %v1506_v49 = vld [vmem:[%s1707_s19 + $0x40] sm:$0xf]  ;;  %v1507_v53 = vld [vmem:[%s1707_s19 + $0x44] sm:$0x1] }
  0x54   : > { %559 = vrot.lane.b32.xlu1 %v1620_v58, %s1654_s20  ;;  %v1452_v27 = vcombine.low %v655_v12, %v669_v22  ;;  %v683_v28 = vsel %vm1754_vm5, %v678_v17, %v682_v4  ;;  %v692_v29 = vrot.slane %v691_v18, 4  ;;  %v782_v30 = vsel %vm1709_vm2, %v1475_v19, %v781_v20  ;;  %v1508_v58 = vld [vmem:[%s1707_s19 + $0x48] sm:$0xf]  ;;  %v1509_v1 = vld [vmem:[%s1707_s19 + $0x4c] sm:$0x1] }
  0x55   : > { %v786_v31 = vsel %vm1709_vm2, %v1476_v25, %v785_v26  ;;  %v1477_v32 = vrot.slane %v1468_v21, 9  ;;  %v789_v33 = vrot.slane %v1469_v24, 5  ;;  %v1480_v35 = vcombine.low %v778_v23, %v782_v30  ;;  %v1622_v61 = vld [vmem:[%s1707_s19 + $0x40] ss:$8 sps:$4 sm:$0xff]   ;;  %v1522_v8 = vld [vmem:[%s1707_s19 + $0x30] sm:$0xe] }
  0x56   : > { %714 = vrot.lane.b32.xlu0 %v1452_v27, %s1658_s24  ;;  %v697_v34 = vsel %vm1754_vm5, %v692_v29, %v696_v14  ;;  %v939_v42 = vshrl.u32 %v1502_v36, 16  ;;  %v942_v43 = vshll.u32 %v1502_v36, 16  ;;  %v948_v46 = vshll.u32 %v1503_v37, 16  ;;  %v1523_v12 = vld [vmem:[%s1707_s19 + $0x34] sm:$0x1] }
  0x57   : > { %v1453_v38 = vcombine.low %v683_v28, %v697_v34  ;;  %v790_v39 = vsel %vm1709_vm2, %v1477_v32, %v789_v33  ;;  %v953_v47 = vshrl.u32 %v1504_v40, 16  ;;  %v956_v48 = vshll.u32 %v1504_v40, 16  ;;  %v1524_v18 = vld [vmem:[%s1707_s19 + $0x38] sm:$0xe]  ;;  %v1525_v21 = vld [vmem:[%s1707_s19 + $0x3c] sm:$0x1] }
  0x58   : > { %v1481_v44 = vcombine.low %v786_v31, %v790_v39  ;;  %v941_v50 = vrot.slane %v939_v42, 4  ;;  %v944_v51 = vrot.slane %v942_v43, 5  ;;  %v962_v52 = vshll.u32 %v1505_v41, 16  ;;  %v1526_v28 = vld [vmem:[%s1707_s19 + $0x40] sm:$0xe] }
  0x59   : > { %716 = vrot.lane.b32.xlu1 %v1453_v38, %s1658_s24  ;;  %v967_v54 = vshrl.u32 %v1506_v49, 16  ;;  %v950_v55 = vrot.slane %v948_v46, 5  ;;  %v955_v56 = vrot.slane %v953_v47, 4  ;;  %v958_v57 = vrot.slane %v956_v48, 5  ;;  %v1527_v29 = vld [vmem:[%s1707_s19 + $0x44] sm:$0x1] }
  0x5a   : > { %807 = vrot.lane.b32.xlu0 %v1480_v35, %s1656_s22  ;;  %v970_v60 = vshll.u32 %v1506_v49, 16  ;;  %v945_v62 = vor.u32 %v944_v51, %v941_v50  ;;  %v964_v63 = vrot.slane %v962_v52, 5  ;;  %v976_v3 = vshll.u32 %v1507_v53, 16  ;;  %v1528_v32 = vld [vmem:[%s1707_s19 + $0x48] sm:$0xe] }
  0x5b   : > { %v969_v2 = vrot.slane %v967_v54, 4  ;;  %v959_v4 = vor.u32 %v958_v57, %v955_v56  ;;  %v981_v6 = vshrl.u32 %v1508_v58, 16  ;;  %v984_v7 = vshll.u32 %v1508_v58, 16  ;;  %v1529_v33 = vld [vmem:[%s1707_s19 + $0x4c] sm:$0x1] }
  0x5c   : > { %v972_v5 = vrot.slane %v970_v60, 5  ;;  %v946_v9 = vrot.slane %v945_v62, 4  ;;  %v978_v10 = vrot.slane %v976_v3, 5  ;;  %v990_v11 = vshll.u32 %v1509_v1, 16  ;;  %v1623_v42 = vld [vmem:[%s1707_s19] ss:$8 sps:$4 sm:$0xff]  }
  0x5d   : > { %809 = vrot.lane.b32.xlu1 %v1481_v44, %s1656_s22  ;;  %v1534_v13 = vrot.slane %v1522_v8, 9  ;;  %v960_v14 = vrot.slane %v959_v4, 4  ;;  %v983_v16 = vrot.slane %v981_v6, 4  ;;  %v986_v17 = vrot.slane %v984_v7, 5  ;;  %264 = vst.msk [vmem:[#allocation2] sm:$0xff] %vm263_vm6, %v1623_v42 }
  0x5e   : > { %853 = vrot.lane.b32.xlu0 %v1621_v45, %s1659_s25  ;;  %v973_v15 = vor.u32 %v972_v5, %v969_v2  ;;  %v951_v19 = vsel %vm1754_vm5, %v946_v9, %v950_v55  ;;  %v992_v20 = vrot.slane %v990_v11, 5  ;;  %v1073_v22 = vrot.slane %v1523_v12, 5  ;;  %v1624_v45 = vld [vmem:[%s1707_s19 + $0x10] ss:$8 sps:$4 sm:$0xff]   ;;  %v1626_v48 = vld [vmem:[%s1707_s19 + $0x20] ss:$8 sps:$4 sm:$0xff]  }
  0x5f   : > { %v1535_v23 = vrot.slane %v1524_v18, 9  ;;  %v965_v24 = vsel %vm1754_vm5, %v960_v14, %v964_v63  ;;  %v987_v26 = vor.u32 %v986_v17, %v983_v16  ;;  %v1077_v27 = vrot.slane %v1525_v21, 5  ;;  %265 = vst.msk [vmem:[#allocation2 + $0x8] sm:$0xff] %vm263_vm6, %v1624_v45  ;;  %v1628_v59 = vld [vmem:[%s1707_s19 + $0x30] ss:$8 sps:$4 sm:$0xff]   ;;  %266 = vst.msk [vmem:[#allocation2 + $0x10] sm:$0xff] %vm263_vm6, %v1626_v48 }
  0x60   : > { %v974_v25 = vrot.slane %v973_v15, 4  ;;  %v1512_v30 = vcombine.low %v951_v19, %v965_v24  ;;  %v1074_v31 = vsel %vm1709_vm2, %v1534_v13, %v1073_v22  ;;  %v1536_v34 = vrot.slane %v1526_v28, 9  ;;  %267 = vst.msk [vmem:[#allocation2 + $0x18] sm:$0xff] %vm263_vm6, %v1628_v59 }
  0x61   : > { %855 = vrot.lane.b32.xlu1 %v1622_v61, %s1659_s25  ;;  %v1081_v35 = vrot.slane %v1527_v29, 5  ;;  %v988_v37 = vrot.slane %v987_v26, 4  ;;  %v1078_v38 = vsel %vm1709_vm2, %v1535_v23, %v1077_v27  ;;  %v1537_v39 = vrot.slane %v1528_v32, 9 }
  0x62   : > { %v979_v36 = vsel %vm1754_vm5, %v974_v25, %v978_v10  ;;  %1010 = vrot.lane.b32.xlu0 %v1512_v30, %s1660_s30  ;;  %v1540_v40 = vcombine.low %v1074_v31, %v1078_v38  ;;  %v1085_v41 = vrot.slane %v1529_v33, 5  ;;  %v1662_v50 = vmov 0.0   ;;  %v1549_v38 = vld [vmem:[%s2044_s2] ss:$0 sm:$0xff] }
  0x63   : > { %v993_v43 = vsel %vm1754_vm5, %v988_v37, %v992_v20  ;;  %v1082_v44 = vsel %vm1709_vm2, %v1536_v34, %v1081_v35  ;;  %225 = vst.msk [vmem:[#allocation3 + $0x10] sm:$0xff] %vm222_vm8, %v1662_v50  ;;  %223 = vst.msk [vmem:[#allocation3] sm:$0xff] %vm222_vm8, %v1662_v50  ;;  %v1166_v51 = vsel %vm1164_vm7, %v1629_v0, 0 }
  0x64   : > { %v1513_v46 = vcombine.low %v979_v36, %v993_v43  ;;  %v1086_v47 = vsel %vm1709_vm2, %v1537_v39, %v1085_v41  ;;  %224 = vst.msk [vmem:[#allocation3 + $0x8] sm:$0xff] %vm222_vm8, %v1662_v50  ;;  %226 = vst.msk [vmem:[#allocation3 + $0x18] sm:$0xff] %vm222_vm8, %v1662_v50  ;;  %1564 = vmatpush3.bf16.msra.mxu0 %v1166_v51  ;;  %1578 = vmatpush3.bf16.msra.mxu1 %v1166_v51  ;;  %vm1308_vm2 = vcmask 523264  }
  0x65   : > { %v1541_v49 = vcombine.low %v1082_v44, %v1086_v47  ;;  %227 = vst.msk [vmem:[#allocation3 + $0x20] sm:$0xff] %vm222_vm8, %v1662_v50  ;;  %228 = vst.msk [vmem:[#allocation3 + $0x28] sm:$0xff] %vm222_vm8, %v1662_v50 }
  0x66   : > { %1012 = vrot.lane.b32.xlu1 %v1513_v46, %s1660_s30  ;;  %1103 = vrot.lane.b32.xlu0 %v1540_v40, %s1661_s4  ;;  %229 = vst.msk [vmem:[#allocation3 + $0x30] sm:$0xff] %vm222_vm8, %v1662_v50  ;;  %230 = vst.msk [vmem:[#allocation3 + $0x38] sm:$0xff] %vm222_vm8, %v1662_v50 }
  0x6a   : > { %1105 = vrot.lane.b32.xlu1 %v1541_v49, %s1661_s4  ;;  %v1118_v26 = vld [vmem:[#allocation3 + $0x10] sm:$0xff]  ;;  %v1116_v27 = vld [vmem:[#allocation3] sm:$0xff] }
  0x6b   : > { %v1119_v29 = vld [vmem:[#allocation3 + $0x18] sm:$0xff]  ;;  %v1117_v32 = vld [vmem:[#allocation3 + $0x8] sm:$0xff] }
  0x6c   : > { %v1120_v48 = vld [vmem:[#allocation3 + $0x20] sm:$0xff]  ;;  %v1121_v51 = vld [vmem:[#allocation3 + $0x28] sm:$0xff] }
  0x6d   : > { %v1122_v47 = vld [vmem:[#allocation3 + $0x30] sm:$0xff]  ;;  %v1123_v59 = vld [vmem:[#allocation3 + $0x38] sm:$0xff] }
  0x85   : > { %v556_v52 = vpop.permute.xlu1 %555  ;;  %v554_v53 = vpop.permute.xlu0 %553 }
  0x8c   : > { %v508_v54 = vpop.permute.xlu1 %507 }
  0x8e   : > { %v804_v55 = vpop.permute.xlu0 %803 }
  0x90   : > { %v510_v56 = vpop.permute.xlu1 %509 }
  0x95   : > { %v806_v58 = vpop.permute.xlu1 %805 }
  0x98   : > { %v412_v57 = vpop.permute.xlu0 %411 }
  0x99   : > { %424 = vst.msk [vmem:[#allocation2] sm:$0xff] %vm423_vm9, %v412_v57 }
  0x9a   : > { %520 = vst.msk [vmem:[#allocation2] sm:$0xff] %vm519_vm10, %v508_v54 }
  0x9b   : > { %566 = vst.msk [vmem:[#allocation2] sm:$0xff] %vm565_vm11, %v554_v53 }
  0x9f   : > { %v414_v60 = vpop.permute.xlu0 %413 }
  0xa0   : > { %425 = vst.msk [vmem:[#allocation2 + $0x8] sm:$0xff] %vm423_vm9, %v414_v60 }
  0xa1   : > { %521 = vst.msk [vmem:[#allocation2 + $0x8] sm:$0xff] %vm519_vm10, %v510_v56 }
  0xa2   : > { %567 = vst.msk [vmem:[#allocation2 + $0x8] sm:$0xff] %vm565_vm11, %v556_v52 }
  0xa3   : > { %v713_v61 = vpop.permute.xlu1 %712 }
  0xa4   : > { %724 = vst.msk [vmem:[#allocation2 + $0x8] sm:$0xff] %vm722_vm12, %v713_v61 }
  0xa5   : > { %817 = vst.msk [vmem:[#allocation2 + $0x8] sm:$0xff] %vm815_vm13, %v806_v58 }
  0xa7   : > { %v852_v62 = vpop.permute.xlu1 %851 }
  0xa8   : > { %863 = vst.msk [vmem:[#allocation2 + $0x8] sm:$0xff] %vm861_vm14, %v852_v62 }
  0xa9   : > { %v711_v63 = vpop.permute.xlu0 %710 }
  0xaa   : > { %723 = vst.msk [vmem:[#allocation2] sm:$0xff] %vm722_vm12, %v711_v63 }
  0xab   : > { %816 = vst.msk [vmem:[#allocation2] sm:$0xff] %vm815_vm13, %v804_v55 }
  0xad   : > { %v850_v1 = vpop.permute.xlu0 %849 }
  0xae   : > { %862 = vst.msk [vmem:[#allocation2] sm:$0xff] %vm861_vm14, %v850_v1 }
  0xb1   : > { %v1007_v2 = vpop.permute.xlu0 %1006 }
  0xb2   : > { %1019 = vst.msk [vmem:[#allocation2] sm:$0xff] %vm1018_vm15, %v1007_v2  ;;  %v1009_v3 = vpop.permute.xlu1 %1008 }
  0xb3   : > { %1020 = vst.msk [vmem:[#allocation2 + $0x8] sm:$0xff] %vm1018_vm15, %v1009_v3 }
  0xb5   : > { %v1100_v4 = vpop.permute.xlu0 %1099 }
  0xb6   : > { %1112 = vst.msk [vmem:[#allocation2] sm:$0xff] %vm1111_vm0, %v1100_v4 }
  0xb9   : > { %v1102_v5 = vpop.permute.xlu0 %1101  ;;  %v416_v6 = vpop.permute.xlu1 %415 }
  0xba   : > { %1113 = vst.msk [vmem:[#allocation2 + $0x8] sm:$0xff] %vm1111_vm0, %v1102_v5 }
  0xbb   : > { %426 = vst.msk [vmem:[#allocation2 + $0x10] sm:$0xff] %vm423_vm9, %v416_v6 }
  0xbd   : > { %v512_v7 = vpop.permute.xlu0 %511  ;;  %v1124_v8 = vld [vmem:[#allocation2] sm:$0xff] }
  0xbe   : > { %522 = vst.msk [vmem:[#allocation2 + $0x10] sm:$0xff] %vm519_vm10, %v512_v7  ;;  %1565 = vmatprep.mubr.msk.bf16.mxu0 %vm1151_vm1, %v1124_v8  ;;  %v418_v9 = vpop.permute.xlu1 %417 }
  0xbf   : > { %427 = vst.msk [vmem:[#allocation2 + $0x18] sm:$0xff] %vm423_vm9, %v418_v9 }
  0xc1   : > { %v558_v10 = vpop.permute.xlu0 %557  ;;  %v1125_v11 = vld [vmem:[#allocation2 + $0x8] sm:$0xff] }
  0xc2   : > { %568 = vst.msk [vmem:[#allocation2 + $0x10] sm:$0xff] %vm565_vm11, %v558_v10  ;;  %1566 = vmatmul.mubr.msk.bf16.vlgmr.msra.gmra.mrb[0].mxu0 %vm1151_vm1, %v1125_v11  ;;  %v514_v12 = vpop.permute.xlu1 %513 }
  0xc3   : > { %523 = vst.msk [vmem:[#allocation2 + $0x18] sm:$0xff] %vm519_vm10, %v514_v12 }
  0xc6   : > { %v560_v13 = vpop.permute.xlu1 %559 }
  0xc7   : > { %569 = vst.msk [vmem:[#allocation2 + $0x18] sm:$0xff] %vm565_vm11, %v560_v13 }
  0xc8   : > { %v715_v14 = vpop.permute.xlu0 %714 }
  0xc9   : > { %725 = vst.msk [vmem:[#allocation2 + $0x10] sm:$0xff] %vm722_vm12, %v715_v14 }
  0xcb   : > { %v717_v15 = vpop.permute.xlu1 %716 }
  0xcc   : > { %726 = vst.msk [vmem:[#allocation2 + $0x18] sm:$0xff] %vm722_vm12, %v717_v15  ;;  %v808_v16 = vpop.permute.xlu0 %807 }
  0xcd   : > { %818 = vst.msk [vmem:[#allocation2 + $0x10] sm:$0xff] %vm815_vm13, %v808_v16 }
  0xcf   : > { %v810_v17 = vpop.permute.xlu1 %809 }
  0xd0   : > { %819 = vst.msk [vmem:[#allocation2 + $0x18] sm:$0xff] %vm815_vm13, %v810_v17  ;;  %v854_v18 = vpop.permute.xlu0 %853 }
  0xd1   : > { %864 = vst.msk [vmem:[#allocation2 + $0x10] sm:$0xff] %vm861_vm14, %v854_v18 }
  0xd3   : > { %v856_v19 = vpop.permute.xlu1 %855 }
  0xd4   : > { %865 = vst.msk [vmem:[#allocation2 + $0x18] sm:$0xff] %vm861_vm14, %v856_v19  ;;  %v1011_v20 = vpop.permute.xlu0 %1010 }
  0xd5   : > { %1021 = vst.msk [vmem:[#allocation2 + $0x10] sm:$0xff] %vm1018_vm15, %v1011_v20 }
  0xd8   : > { %v1013_v21 = vpop.permute.xlu1 %1012  ;;  %v1104_v22 = vpop.permute.xlu0 %1103 }
  0xd9   : > { %1022 = vst.msk [vmem:[#allocation2 + $0x18] sm:$0xff] %vm1018_vm15, %v1013_v21 }
  0xda   : > { %1114 = vst.msk [vmem:[#allocation2 + $0x10] sm:$0xff] %vm1111_vm0, %v1104_v22 }
  0xdc   : > { %v1106_v23 = vpop.permute.xlu1 %1105 }
  0xdd   : > { %1115 = vst.msk [vmem:[#allocation2 + $0x18] sm:$0xff] %vm1111_vm0, %v1106_v23 }
  0xe1   : > { %v1126_v24 = vld [vmem:[#allocation2 + $0x10] sm:$0xff] }
  0xe2   : > { %1569 = vmatprep.mubr.msk.bf16.mxu1 %vm1151_vm1, %v1126_v24 }
  0xe4   : > { %v1127_v25 = vld [vmem:[#allocation2 + $0x18] sm:$0xff] }
  0xe5   : > { %1570 = vmatmul.mubr.msk.bf16.vlgmr.msra.gmra.mrb[0].mxu1 %vm1151_vm1, %v1127_v25 }
 0x195   : > { %v1567_v28 = vpop.f32.mrb[0].mxu0 }
 0x196   : > { %v1235_v30 = vadd.f32 %v1567_v28, %v1118_v26  ;;  %v1202_v31 = vpop.f32.mrb[1].mxu0 }
 0x197   : > { %v1233_v33 = vadd.f32 %v1202_v31, %v1116_v27  ;;  %v1568_v34 = vpop.f32.mrb[2].mxu0 }
 0x198   : > { %1244 = vst.msk [vmem:[#allocation3 + $0x10] sm:$0xff] %vm222_vm8, %v1235_v30  ;;  %v1236_v35 = vadd.f32 %v1568_v34, %v1119_v29  ;;  %v1205_v36 = vpop.f32.mrb[3].mxu0 }
 0x199   : > { %1242 = vst.msk [vmem:[#allocation3] sm:$0xff] %vm222_vm8, %v1233_v33  ;;  %v1234_v37 = vadd.f32 %v1205_v36, %v1117_v32 }
 0x19a   : > { %1245 = vst.msk [vmem:[#allocation3 + $0x18] sm:$0xff] %vm222_vm8, %v1236_v35 }
 0x19b   : > { %1243 = vst.msk [vmem:[#allocation3 + $0x8] sm:$0xff] %vm222_vm8, %v1234_v37 }
 0x19f   : > { %v1255_v43 = vld [vmem:[#allocation3 + $0x10] sm:$0xff] }
 0x1a0   : > { %v1253_v39 = vld [vmem:[#allocation3] sm:$0xff]  ;;  %v1270_v44 = vadd.f32 %v1549_v38, %v1255_v43 }
 0x1a1   : > { %v1268_v40 = vadd.f32 %v1549_v38, %v1253_v39  ;;  %v1256_v45 = vld [vmem:[#allocation3 + $0x18] sm:$0xff] }
 0x1a2   : > { %v1254_v41 = vld [vmem:[#allocation3 + $0x8] sm:$0xff]  ;;  %v1271_v46 = vadd.f32 %v1549_v38, %v1256_v45 }
 0x1a3   : > { %1276 = vxpose.xlu0.b32.start [1/8] (short) (narrow) %v1268_v40, 8  ;;  %v1269_v42 = vadd.f32 %v1549_v38, %v1254_v41 }
 0x1a7   : > { %1277 = vxpose.xlu0.b32.cont [2/8] (short) (narrow) %v1269_v42, 8 }
 0x1ab   : > { %1278 = vxpose.xlu0.b32.cont [3/8] (short) (narrow) %v1270_v44, 8 }
 0x1af   : > { %1279 = vxpose.xlu0.b32.cont [4/8] (short) (narrow) %v1271_v46, 8 }
 0x1b8   : > { %v1571_v49 = vpop.f32.mrb[0].mxu1 }
 0x1b9   : > { %v1239_v0 = vadd.f32 %v1571_v49, %v1122_v47  ;;  %v1218_v50 = vpop.f32.mrb[1].mxu1 }
 0x1ba   : > { %v1237_v52 = vadd.f32 %v1218_v50, %v1120_v48  ;;  %v1572_v53 = vpop.f32.mrb[2].mxu1 }
 0x1bb   : > { %1248 = vst.msk [vmem:[#allocation3 + $0x30] sm:$0xff] %vm222_vm8, %v1239_v0  ;;  %v1240_v54 = vadd.f32 %v1572_v53, %v1123_v59  ;;  %v1221_v55 = vpop.f32.mrb[3].mxu1 }
 0x1bc   : > { %1246 = vst.msk [vmem:[#allocation3 + $0x20] sm:$0xff] %vm222_vm8, %v1237_v52  ;;  %v1238_v56 = vadd.f32 %v1221_v55, %v1121_v51 }
 0x1bd   : > { %1249 = vst.msk [vmem:[#allocation3 + $0x38] sm:$0xff] %vm222_vm8, %v1240_v54 }
 0x1be   : > { %1247 = vst.msk [vmem:[#allocation3 + $0x28] sm:$0xff] %vm222_vm8, %v1238_v56 }
 0x1c2   : > { %v1259_v62 = vld [vmem:[#allocation3 + $0x30] sm:$0xff] }
 0x1c3   : > { %v1257_v57 = vld [vmem:[#allocation3 + $0x20] sm:$0xff]  ;;  %v1274_v63 = vadd.f32 %v1549_v38, %v1259_v62 }
 0x1c4   : > { %v1272_v58 = vadd.f32 %v1549_v38, %v1257_v57  ;;  %v1260_v1 = vld [vmem:[#allocation3 + $0x38] sm:$0xff] }
 0x1c5   : > { %v1258_v60 = vld [vmem:[#allocation3 + $0x28] sm:$0xff]  ;;  %v1275_v2 = vadd.f32 %v1549_v38, %v1260_v1 }
 0x1c6   : > { %1280 = vxpose.xlu0.b32.cont [5/8] (short) (narrow) %v1272_v58, 8  ;;  %v1273_v61 = vadd.f32 %v1549_v38, %v1258_v60 }
 0x1ca   : > { %1281 = vxpose.xlu0.b32.cont [6/8] (short) (narrow) %v1273_v61, 8 }
 0x1ce   : > { %1282 = vxpose.xlu0.b32.cont [7/8] (short) (narrow) %v1274_v63, 8 }
 0x1d2   : > { %1283 = vxpose.xlu0.b32.end [8/8] (short) (narrow) %v1275_v2, 8 }
 0x236   : > { %v1292_v3 = vpop.trf.xlu0 }
 0x237   : > { %1309 = vst.msk [vmem:[%s216_s16] sm:$0xff] %vm1308_vm2, %v1292_v3 }
 0x238 PF: > { %s13_s14 = sadd.s32 1, %s1652_s14   ;;  %s2050_s12 = smov %s1648_s13 }
 0x239   : > { %p10_p5 = scmp.ge.s32.totalorder %s13_s14, 4   ;;  %s2051_s13 = smov %s2053_s15 }
 0x23b   :  { %12 = sbr.rel (!%p10_p5) target bundleno = 2 (0x2), region = 73 }

// kernel: down_right_shifted_conv3d_forward.6
= control target key start
LH: loop header
LB: loop body
LE: loop exit
PB: predicated region body
PF: predicated region fallthrough
CT: control target
= control target key end

     0   :  { %s1770_s12 = smov 0   ;;  %s1772_s13 = smov 0   ;;  %s2115_s0 = inlined_call_operand.vmem [shape: bf16[2,4,10,10,4], index: 0, kind: input, shape index: {}]   ;;  %s2116_s1 = inlined_call_operand.vmem [shape: bf16[2,36,8], index: 1, kind: input, shape index: {}]   ;;  %s2117_s2 = inlined_call_operand.vmem [shape: f32[1,8], index: 2, kind: input, shape index: {}]   ;;  %s2118_s3 = inlined_call_operand.vmem [shape: bf16[2,3,8,64], index: 3, kind: output, shape index: {}]  }
   0x1   :  { %s1774_s14 = smov 0   ;;  %s1776_s15 = smov 0  }
   0x2   :  { %s1778_s16 = smov 0   ;;  %s1780_s17 = smov 0  }
   0x3   :  { %s1782_s18 = smov 0  }
   0x4 LB: > { %s25_s19 = sadd.s32 1, %s1727_s15  ;;  %s28_s20 = sadd.s32 1, %s1731_s16  ;;  %s1739_s18 = sphi %s1782_s18, %s13_s18   ;;  %s1735_s17 = sphi %s1780_s17, %s2128_s17   ;;  %s1731_s16 = sphi %s1778_s16, %s2127_s16   ;;  %s1727_s15 = sphi %s1776_s15, %s2126_s15   ;;  %s1723_s14 = sphi %s1774_s14, %s2125_s14   ;;  %s1719_s13 = sphi %s1772_s13, %s2124_s13   ;;  %s1715_s12 = sphi %s1770_s12, %s2123_s12  }
   0x5   : > { %p26_p0 = scmp.ge.s32.totalorder %s25_s19, 2  ;;  %p1415_p1 = scmp.ge.s32.totalorder %s1739_s18, 1 }
   0x6   : > { %p168_p2 = scmp.lt.s32.totalorder %s1739_s18, 13  ;;  %s32_s21 = sadd.s32 1, %s1735_s17 }
   0x7   : > { %s2130_s19 = smov (%p26_p0, %s25_s19), 0  ;;  %s2132_s20 = smov (!%p26_p0, %s28_s20), %s1731_s16 }
   0x8   : > { %p169_p3 = pnand %p1415_p1, %p168_p2  ;;  %p30_p4 = scmp.ge.s32.totalorder %s2132_s20, 3 }
   0x9   : > { %s200_s22 = sadd.s32 (!%p169_p3), %s1715_s12, %s1719_s13  ;;  %p201_p6 = scmp.lt.s32.totalorder (!%p169_p3), %s1723_s14, 1 }
   0xa   : > { %s2134_s20 = smov (%p30_p4, %s2132_s20), 0  ;;  %s2136_s21 = smov (!%p30_p4, %s32_s21), %s1735_s17 }
   0xb   : > { %p34_p5 = scmp.ge.s32.totalorder %s2136_s21, 2  ;;  %172 = sbr.rel (%p169_p3) target bundleno = 599 (0x257), region = 32 }
   0xc   : > { %p203_p7 = scmp.lt.s32.totalorder (!%p169_p3), %s200_s22, 3  ;;  %p213_p8 = scmp.lt.s32.totalorder (!%p169_p3), %s1719_s13, 2 }
   0xd   : > { %s2138_s21 = smov (%p34_p5, %s2136_s21), 0  ;;  %p1418_p9 = scmp.ne.s32.totalorder (!%p169_p3), %s1715_s12, 0 }
  0x12   : > { %s2140_s14 = smov (!%p201_p6, %s1723_s14), 1  ;;  %s2142_s22 = smov (!%p203_p7, %s200_s22), 3 }
  0x13   : > { %s1602_s23 = smul.u32 80, %s2140_s14  ;;  %s2144_s13 = smov (!%p213_p8, %s1719_s13), 2  ;;  %vm224_vm0 = vcmask (!%p1418_p9), 64512   ;;  %v1741_v0 = vmov (!%p1418_p9), 0.0  }
  0x14   : > { %s1601_s24 = smul.u32 20, %s2142_s22  ;;  %225 = vst.msk [vmem:[#allocation3] sm:$0xff] (!%p1418_p9), %vm224_vm0, %v1741_v0  ;;  %226 = vst.msk [vmem:[#allocation3 + $0x8] sm:$0xff] (!%p1418_p9), %vm224_vm0, %v1741_v0 }
  0x15   : > { %s1603_s26 = smul.u32 3, %s2140_s14  ;;  %227 = vst.msk [vmem:[#allocation3 + $0x10] sm:$0xff] (!%p1418_p9), %vm224_vm0, %v1741_v0  ;;  %228 = vst.msk [vmem:[#allocation3 + $0x18] sm:$0xff] (!%p1418_p9), %vm224_vm0, %v1741_v0 }
  0x16   : > { %s207_s25 = sadd.s32 %s1602_s23, %s1601_s24  ;;  %223 = sbr.rel (%p1418_p9) target bundleno = 29 (0x1d), region = 36  ;;  %229 = vst.msk [vmem:[#allocation3 + $0x20] sm:$0xff] (!%p1418_p9), %vm224_vm0, %v1741_v0  ;;  %230 = vst.msk [vmem:[#allocation3 + $0x28] sm:$0xff] (!%p1418_p9), %vm224_vm0, %v1741_v0 }
  0x17   : > { %s1416_s27 = sshll.u32 %s207_s25, 2  ;;  %s216_s4 = sadd.s32 %s1603_s26, %s2144_s13  ;;  %231 = vst.msk [vmem:[#allocation3 + $0x30] sm:$0xff] (!%p1418_p9), %vm224_vm0, %v1741_v0  ;;  %232 = vst.msk [vmem:[#allocation3 + $0x38] sm:$0xff] (!%p1418_p9), %vm224_vm0, %v1741_v0 }
  0x18   : > { %s1818_s30 = scalar_lea.vmem %s2115_s0, %s1416_s27  ;;  %s1417_s5 = sshll.u32 %s216_s4, 2 }
  0x19   : > { %s1823_s8 = scalar_lea.vmem %s2118_s3, %s1417_s5 }
  0x1d PF: > { %v438_v1 = vld [vmem:[%s1818_s30 + $0x20] sm:$0xe]  ;;  %v439_v2 = vld [vmem:[%s1818_s30 + $0x24] sm:$0x1]  ;;  %v440_v3 = vld [vmem:[%s1818_s30 + $0x28] sm:$0xe] }
  0x1e   : > { %v441_v4 = vld [vmem:[%s1818_s30 + $0x2c] sm:$0x1]  ;;  %vm462_vm1 = vcmask 1042432   ;;  %vm463_vm2 = vcmask 1046532   ;;  %v1431_v5 = vrot.slane %v438_v1, 9  ;;  %v483_v6 = vrot.slane %v439_v2, 5 }
  0x1f   : > { %vm1830_vm3 = vmor %vm462_vm1, %vm463_vm2  ;;  %v1432_v8 = vrot.slane %v440_v3, 9  ;;  %v487_v9 = vrot.slane %v441_v4, 5  ;;  %v430_v10 = vld [vmem:[%s1818_s30] sm:$0xe]  ;;  %v431_v12 = vld [vmem:[%s1818_s30 + $0x4] sm:$0x1] }
  0x20   : > { %v484_v11 = vsel %vm1830_vm3, %v1431_v5, %v483_v6  ;;  %v432_v13 = vld [vmem:[%s1818_s30 + $0x8] sm:$0xe]  ;;  %v433_v14 = vld [vmem:[%s1818_s30 + $0xc] sm:$0x1]  ;;  %v1427_v16 = vrot.slane %v430_v10, 9  ;;  %v467_v17 = vrot.slane %v431_v12, 5 }
  0x21   : > { %v488_v15 = vsel %vm1830_vm3, %v1432_v8, %v487_v9  ;;  %v1428_v18 = vrot.slane %v432_v13, 9  ;;  %v442_v19 = vld [vmem:[%s1818_s30 + $0x30] sm:$0xe]  ;;  %v471_v21 = vrot.slane %v433_v14, 5  ;;  %v443_v22 = vld [vmem:[%s1818_s30 + $0x34] sm:$0x1] }
  0x22   : > { %v1437_v20 = vcombine.low %v484_v11, %v488_v15  ;;  %v444_v23 = vld [vmem:[%s1818_s30 + $0x38] sm:$0xe]  ;;  %v1433_v24 = vrot.slane %v442_v19, 9  ;;  %v468_v25 = vsel %vm1830_vm3, %v1427_v16, %v467_v17  ;;  %v445_v26 = vld [vmem:[%s1818_s30 + $0x3c] sm:$0x1]  ;;  %v491_v27 = vrot.slane %v443_v22, 5 }
  0x23   : > { %v1434_v28 = vrot.slane %v444_v23, 9  ;;  %v434_v29 = vld [vmem:[%s1818_s30 + $0x10] sm:$0xe]  ;;  %s1742_s9 = smov 8   ;;  %v472_v30 = vsel %vm1830_vm3, %v1428_v18, %v471_v21  ;;  %v495_v31 = vrot.slane %v445_v26, 5  ;;  %s1743_s10 = smov 4  }
  0x24   : > { %513 = vrot.lane.b32.xlu1 %v1437_v20, %s1742_s9  ;;  %v435_v32 = vld [vmem:[%s1818_s30 + $0x14] sm:$0x1]  ;;  %v436_v33 = vld [vmem:[%s1818_s30 + $0x18] sm:$0xe]  ;;  %v1429_v34 = vrot.slane %v434_v29, 9  ;;  %v1435_v35 = vcombine.low %v468_v25, %v472_v30  ;;  %v492_v36 = vsel %vm1830_vm3, %v1433_v24, %v491_v27  ;;  %s1744_s11 = smov 12  }
  0x25   : > { %v437_v37 = vld [vmem:[%s1818_s30 + $0x1c] sm:$0x1]  ;;  %v475_v38 = vrot.slane %v435_v32, 5  ;;  %v1430_v39 = vrot.slane %v436_v33, 9  ;;  %v274_v40 = vld [vmem:[%s1818_s30 + $0x10] sm:$0xf]  ;;  %v496_v41 = vsel %vm1830_vm3, %v1434_v28, %v495_v31 }
  0x26   : > { %v479_v42 = vrot.slane %v437_v37, 5  ;;  %v275_v43 = vld [vmem:[%s1818_s30 + $0x14] sm:$0x1]  ;;  %v276_v44 = vld [vmem:[%s1818_s30 + $0x18] sm:$0xf]  ;;  %v318_v45 = vshrl.u32 %v274_v40, 16  ;;  %509 = vrot.lane.b32.xlu0 %v1435_v35, %s1742_s9  ;;  %v1438_v46 = vcombine.low %v492_v36, %v496_v41 }
  0x27   : > { %v476_v47 = vsel %vm1830_vm3, %v1429_v34, %v475_v38  ;;  %v277_v48 = vld [vmem:[%s1818_s30 + $0x1c] sm:$0x1]  ;;  %vm286_vm4 = vsmask.f32 3328  ;;  %vm287_vm5 = vsmask.f32 7440 }
  0x28   : > { %v480_v49 = vsel %vm1830_vm3, %v1430_v39, %v479_v42  ;;  %v320_v50 = vrot.slane %v318_v45, 4  ;;  %v321_v51 = vshll.u32 %v274_v40, 16  ;;  %v327_v52 = vshll.u32 %v275_v43, 16  ;;  %v270_v53 = vld [vmem:[%s1818_s30] sm:$0xf]  ;;  %515 = vrot.lane.b32.xlu1 %v1438_v46, %s1742_s9  ;;  %vm1877_vm6 = vmor %vm286_vm4, %vm287_vm5  ;;  %s1745_s13 = smov 16  }
  0x29   : > { %v1436_v54 = vcombine.low %v476_v47, %v480_v49  ;;  %v332_v55 = vshrl.u32 %v276_v44, 16  ;;  %v335_v56 = vshll.u32 %v276_v44, 16  ;;  %v341_v57 = vshll.u32 %v277_v48, 16  ;;  %v271_v58 = vld [vmem:[%s1818_s30 + $0x4] sm:$0x1]  ;;  %s1746_s14 = smov 20  }
  0x2a   : > { %v323_v59 = vrot.slane %v321_v51, 5  ;;  %v329_v60 = vrot.slane %v327_v52, 5  ;;  %v272_v61 = vld [vmem:[%s1818_s30 + $0x8] sm:$0xf]  ;;  %v273_v62 = vld [vmem:[%s1818_s30 + $0xc] sm:$0x1] }
  0x2b   : > { %511 = vrot.lane.b32.xlu0 %v1436_v54, %s1742_s9  ;;  %v334_v63 = vrot.slane %v332_v55, 4  ;;  %v337_v0 = vrot.slane %v335_v56, 5  ;;  %v343_v1 = vrot.slane %v341_v57, 5  ;;  %v290_v2 = vshrl.u32 %v270_v53, 16  ;;  %v282_v8 = vld [vmem:[%s1818_s30 + $0x30] sm:$0xf] }
  0x2c   : > { %v324_v3 = vor.u32 %v323_v59, %v320_v50  ;;  %v293_v4 = vshll.u32 %v270_v53, 16  ;;  %v299_v5 = vshll.u32 %v271_v58, 16  ;;  %v304_v6 = vshrl.u32 %v272_v61, 16  ;;  %v283_v14 = vld [vmem:[%s1818_s30 + $0x34] sm:$0x1]  ;;  %s1747_s22 = smov 24  }
  0x2d   : > { %v338_v10 = vor.u32 %v337_v0, %v334_v63  ;;  %v292_v11 = vrot.slane %v290_v2, 4  ;;  %v307_v12 = vshll.u32 %v272_v61, 16  ;;  %v313_v13 = vshll.u32 %v273_v62, 16  ;;  %v284_v19 = vld [vmem:[%s1818_s30 + $0x38] sm:$0xf]  ;;  %s1571_s23 = smul.u32 20, %s1715_s12 }
  0x2e   : > { %v325_v15 = vrot.slane %v324_v3, 4  ;;  %v295_v16 = vrot.slane %v293_v4, 5  ;;  %v301_v17 = vrot.slane %v299_v5, 5  ;;  %v306_v18 = vrot.slane %v304_v6, 4  ;;  %v285_v26 = vld [vmem:[%s1818_s30 + $0x3c] sm:$0x1] }
  0x2f   : > { %v339_v20 = vrot.slane %v338_v10, 4  ;;  %v309_v21 = vrot.slane %v307_v12, 5  ;;  %v315_v22 = vrot.slane %v313_v13, 5  ;;  %v374_v23 = vshrl.u32 %v282_v8, 16  ;;  %v278_v33 = vld [vmem:[%s1818_s30 + $0x20] sm:$0xf]  ;;  %s2028_s27 = scalar_lea.vmem %s2116_s1, %s1571_s23 }
  0x30   : > { %v330_v24 = vsel %vm1877_vm6, %v325_v15, %v329_v60  ;;  %v296_v25 = vor.u32 %v295_v16, %v292_v11  ;;  %v377_v27 = vshll.u32 %v282_v8, 16  ;;  %v383_v28 = vshll.u32 %v283_v14, 16  ;;  %v279_v37 = vld [vmem:[%s1818_s30 + $0x24] sm:$0x1]  ;;  %v280_v42 = vld [vmem:[%s1818_s30 + $0x28] sm:$0xf] }
  0x31   : > { %v344_v29 = vsel %vm1877_vm6, %v339_v20, %v343_v1  ;;  %v310_v30 = vor.u32 %v309_v21, %v306_v18  ;;  %v376_v31 = vrot.slane %v374_v23, 4  ;;  %v388_v32 = vshrl.u32 %v284_v19, 16  ;;  %v281_v50 = vld [vmem:[%s1818_s30 + $0x2c] sm:$0x1]  ;;  %v1459_v5 = vld [vmem:[%s1818_s30 + $0x28] sm:$0xf] }
  0x32   : > { %v1424_v34 = vcombine.low %v330_v24, %v344_v29  ;;  %v297_v35 = vrot.slane %v296_v25, 4  ;;  %v379_v36 = vrot.slane %v377_v27, 5  ;;  %v391_v40 = vshll.u32 %v284_v19, 16  ;;  %v1460_v10 = vld [vmem:[%s1818_s30 + $0x2c] sm:$0x1]  ;;  %s1748_s24 = smov 28  }
  0x33   : > { %v311_v38 = vrot.slane %v310_v30, 4  ;;  %v390_v39 = vrot.slane %v388_v32, 4  ;;  %v397_v41 = vshll.u32 %v285_v26, 16  ;;  %v346_v45 = vshrl.u32 %v278_v33, 16  ;;  %v1461_v11 = vld [vmem:[%s1818_s30 + $0x30] sm:$0xf] }
  0x34   : > { %415 = vrot.lane.b32.xlu1 %v1424_v34, %s1743_s10  ;;  %v302_v43 = vsel %vm1877_vm6, %v297_v35, %v301_v17  ;;  %v380_v44 = vor.u32 %v379_v36, %v376_v31  ;;  %v349_v46 = vshll.u32 %v278_v33, 16  ;;  %v385_v48 = vrot.slane %v383_v28, 5  ;;  %v1462_v12 = vld [vmem:[%s1818_s30 + $0x34] sm:$0x1]  ;;  %v1670_v15 = vld [vmem:[%s1818_s30 + $0x28] ss:$8 sps:$4 sm:$0xff]  }
  0x35   : > { %v316_v47 = vsel %vm1877_vm6, %v311_v38, %v315_v22  ;;  %v393_v49 = vrot.slane %v391_v40, 5  ;;  %v355_v51 = vshll.u32 %v279_v37, 16  ;;  %v348_v54 = vrot.slane %v346_v45, 4  ;;  %v1451_v18 = vld [vmem:[%s1818_s30 + $0x8] sm:$0xf]  ;;  %s1749_s28 = smov 32  }
  0x36   : > { %v1423_v52 = vcombine.low %v302_v43, %v316_v47  ;;  %v381_v53 = vrot.slane %v380_v44, 4  ;;  %v351_v55 = vrot.slane %v349_v46, 5  ;;  %v399_v57 = vrot.slane %v397_v41, 5  ;;  %v1452_v19 = vld [vmem:[%s1818_s30 + $0xc] sm:$0x1]  ;;  %p1567_p10 = scmp.ne.s32.totalorder %s1715_s12, 1 }
  0x37   : > { %v394_v56 = vor.u32 %v393_v49, %v390_v39  ;;  %v360_v58 = vshrl.u32 %v280_v42, 16  ;;  %v363_v59 = vshll.u32 %v280_v42, 16  ;;  %v357_v61 = vrot.slane %v355_v51, 5  ;;  %v1453_v24 = vld [vmem:[%s1818_s30 + $0x10] sm:$0xf] }
  0x38   : > { %413 = vrot.lane.b32.xlu0 %v1423_v52, %s1743_s10  ;;  %v352_v60 = vor.u32 %v351_v55, %v348_v54  ;;  %v369_v62 = vshll.u32 %v281_v50, 16  ;;  %v386_v63 = vsel %vm1877_vm6, %v381_v53, %v385_v48  ;;  %v645_v16 = vshrl.u32 %v1459_v5, 16  ;;  %v1454_v28 = vld [vmem:[%s1818_s30 + $0x14] sm:$0x1]  ;;  %v1463_v34 = vld [vmem:[%s1818_s30 + $0x38] sm:$0xf] }
  0x39   : > { %v395_v0 = vrot.slane %v394_v56, 4  ;;  %v362_v1 = vrot.slane %v360_v58, 4  ;;  %v365_v2 = vrot.slane %v363_v59, 5  ;;  %v648_v17 = vshll.u32 %v1459_v5, 16  ;;  %v1671_v36 = vld [vmem:[%s1818_s30 + $0x8] ss:$8 sps:$4 sm:$0xff]  }
  0x3a   : > { %v353_v3 = vrot.slane %v352_v60, 4  ;;  %v371_v4 = vrot.slane %v369_v62, 5  ;;  %v654_v21 = vshll.u32 %v1460_v10, 16  ;;  %v659_v22 = vshrl.u32 %v1461_v11, 16  ;;  %v1672_v40 = vld [vmem:[%s1818_s30 + $0x38] ss:$8 sps:$4 sm:$0xff]  }
  0x3b   : > { %v400_v6 = vsel %vm1877_vm6, %v395_v0, %v399_v57  ;;  %v366_v8 = vor.u32 %v365_v2, %v362_v1  ;;  %v662_v23 = vshll.u32 %v1461_v11, 16  ;;  %v647_v25 = vrot.slane %v645_v16, 4  ;;  %v1464_v48 = vld [vmem:[%s1818_s30 + $0x3c] sm:$0x1]  ;;  %v1465_v54 = vld [vmem:[%s1818_s30 + $0x40] sm:$0xf] }
  0x3c   : > { %v1426_v13 = vcombine.low %v386_v63, %v400_v6  ;;  %v358_v14 = vsel %vm1877_vm6, %v353_v3, %v357_v61  ;;  %v650_v26 = vrot.slane %v648_v17, 5  ;;  %v668_v27 = vshll.u32 %v1462_v12, 16  ;;  %v1466_v58 = vld [vmem:[%s1818_s30 + $0x44] sm:$0x1]  ;;  %v1455_v0 = vld [vmem:[%s1818_s30 + $0x18] sm:$0xf] }
  0x3d   : > { %v367_v20 = vrot.slane %v366_v8, 4  ;;  %v589_v29 = vshrl.u32 %v1451_v18, 16  ;;  %v656_v31 = vrot.slane %v654_v21, 5  ;;  %v661_v32 = vrot.slane %v659_v22, 4  ;;  %v1673_v1 = vld [vmem:[%s1818_s30 + $0x18] ss:$8 sps:$4 sm:$0xff]  }
  0x3e   : > { %419 = vrot.lane.b32.xlu1 %v1426_v13, %s1743_s10  ;;  %v664_v33 = vrot.slane %v662_v23, 5  ;;  %v651_v37 = vor.u32 %v650_v26, %v647_v25  ;;  %v670_v38 = vrot.slane %v668_v27, 5  ;;  %v592_v42 = vshll.u32 %v1451_v18, 16  ;;  %v1456_v6 = vld [vmem:[%s1818_s30 + $0x1c] sm:$0x1] }
  0x3f   : > { %v372_v30 = vsel %vm1877_vm6, %v367_v20, %v371_v4  ;;  %v591_v39 = vrot.slane %v589_v29, 4  ;;  %v598_v43 = vshll.u32 %v1452_v19, 16  ;;  %v603_v44 = vshrl.u32 %v1453_v24, 16  ;;  %v1457_v13 = vld [vmem:[%s1818_s30 + $0x20] sm:$0xf] }
  0x40   : > { %v1425_v35 = vcombine.low %v358_v14, %v372_v30  ;;  %v665_v41 = vor.u32 %v664_v33, %v661_v32  ;;  %v652_v45 = vrot.slane %v651_v37, 4  ;;  %v606_v46 = vshll.u32 %v1453_v24, 16  ;;  %v1458_v17 = vld [vmem:[%s1818_s30 + $0x24] sm:$0x1]  ;;  %v1479_v23 = vld [vmem:[%s1818_s30 + $0x28] sm:$0xe] }
  0x41   : > { %v612_v47 = vshll.u32 %v1454_v28, 16  ;;  %v673_v49 = vshrl.u32 %v1463_v34, 16  ;;  %v594_v51 = vrot.slane %v592_v42, 5  ;;  %v600_v52 = vrot.slane %v598_v43, 5  ;;  %v1480_v24 = vld [vmem:[%s1818_s30 + $0x2c] sm:$0x1] }
  0x42   : > { %417 = vrot.lane.b32.xlu0 %v1425_v35, %s1743_s10  ;;  %559 = vrot.lane.b32.xlu1 %v1670_v15, %s1744_s11  ;;  %v666_v50 = vrot.slane %v665_v41, 4  ;;  %v605_v53 = vrot.slane %v603_v44, 4  ;;  %v657_v55 = vsel %vm1877_vm6, %v652_v45, %v656_v31  ;;  %v608_v56 = vrot.slane %v606_v46, 5  ;;  %v1481_v29 = vld [vmem:[%s1818_s30 + $0x30] sm:$0xe] }
  0x43   : > { %v614_v57 = vrot.slane %v612_v47, 5  ;;  %v675_v59 = vrot.slane %v673_v49, 4  ;;  %v595_v61 = vor.u32 %v594_v51, %v591_v39  ;;  %v676_v62 = vshll.u32 %v1463_v34, 16  ;;  %v1482_v30 = vld [vmem:[%s1818_s30 + $0x34] sm:$0x1] }
  0x44   : > { %v671_v60 = vsel %vm1877_vm6, %v666_v50, %v670_v38  ;;  %v682_v63 = vshll.u32 %v1464_v48, 16  ;;  %v609_v3 = vor.u32 %v608_v56, %v605_v53  ;;  %v687_v4 = vshrl.u32 %v1465_v54, 16  ;;  %v1471_v35 = vld [vmem:[%s1818_s30 + $0x8] sm:$0xe]  ;;  %v1473_v41 = vld [vmem:[%s1818_s30 + $0x10] sm:$0xe] }
  0x45   : > { %v1469_v2 = vcombine.low %v657_v55, %v671_v60  ;;  %v690_v5 = vshll.u32 %v1465_v54, 16  ;;  %v596_v8 = vrot.slane %v595_v61, 4  ;;  %v678_v10 = vrot.slane %v676_v62, 5  ;;  %v1474_v46 = vld [vmem:[%s1818_s30 + $0x14] sm:$0x1] }
  0x46   : > { %555 = vrot.lane.b32.xlu0 %v1671_v36, %s1744_s11  ;;  %561 = vrot.lane.b32.xlu1 %v1672_v40, %s1744_s11  ;;  %v684_v11 = vrot.slane %v682_v63, 5  ;;  %v696_v12 = vshll.u32 %v1466_v58, 16  ;;  %v610_v14 = vrot.slane %v609_v3, 4  ;;  %v689_v15 = vrot.slane %v687_v4, 4  ;;  %v1472_v36 = vld [vmem:[%s1818_s30 + $0xc] sm:$0x1] }
  0x47   : > { %v692_v16 = vrot.slane %v690_v5, 5  ;;  %v617_v18 = vshrl.u32 %v1455_v0, 16  ;;  %v601_v19 = vsel %vm1877_vm6, %v596_v8, %v600_v52  ;;  %v679_v20 = vor.u32 %v678_v10, %v675_v59  ;;  %v1483_v47 = vld [vmem:[%s1818_s30 + $0x38] sm:$0xe]  ;;  %v1484_v52 = vld [vmem:[%s1818_s30 + $0x3c] sm:$0x1] }
  0x48   : > { %v698_v21 = vrot.slane %v696_v12, 5  ;;  %v620_v22 = vshll.u32 %v1455_v0, 16  ;;  %v615_v25 = vsel %vm1877_vm6, %v610_v14, %v614_v57  ;;  %v626_v28 = vshll.u32 %v1456_v6, 16  ;;  %v1485_v53 = vld [vmem:[%s1818_s30 + $0x40] sm:$0xe] }
  0x49   : > { %v693_v26 = vor.u32 %v692_v16, %v689_v15  ;;  %v619_v27 = vrot.slane %v617_v18, 4  ;;  %v1467_v31 = vcombine.low %v601_v19, %v615_v25  ;;  %v680_v32 = vrot.slane %v679_v20, 4  ;;  %v1486_v54 = vld [vmem:[%s1818_s30 + $0x44] sm:$0x1]  ;;  %v1475_v59 = vld [vmem:[%s1818_s30 + $0x18] sm:$0xe] }
  0x4a   : > { %557 = vrot.lane.b32.xlu0 %v1673_v1, %s1744_s11  ;;  %716 = vrot.lane.b32.xlu1 %v1469_v2, %s1745_s13  ;;  %v622_v33 = vrot.slane %v620_v22, 5  ;;  %v631_v34 = vshrl.u32 %v1457_v13, 16  ;;  %v628_v38 = vrot.slane %v626_v28, 5  ;;  %v634_v39 = vshll.u32 %v1457_v13, 16  ;;  %v1476_v0 = vld [vmem:[%s1818_s30 + $0x1c] sm:$0x1] }
  0x4b   : > { %v694_v37 = vrot.slane %v693_v26, 4  ;;  %v640_v40 = vshll.u32 %v1458_v17, 16  ;;  %v685_v42 = vsel %vm1877_vm6, %v680_v32, %v684_v11  ;;  %v1491_v45 = vrot.slane %v1479_v23, 9  ;;  %v1477_v4 = vld [vmem:[%s1818_s30 + $0x20] sm:$0xe] }
  0x4c   : > { %v623_v43 = vor.u32 %v622_v33, %v619_v27  ;;  %v633_v44 = vrot.slane %v631_v34, 4  ;;  %v636_v49 = vrot.slane %v634_v39, 5  ;;  %v779_v51 = vrot.slane %v1480_v24, 5  ;;  %v1478_v15 = vld [vmem:[%s1818_s30 + $0x24] sm:$0x1] }
  0x4d   : > { %v699_v48 = vsel %vm1877_vm6, %v694_v37, %v698_v21  ;;  %v642_v50 = vrot.slane %v640_v40, 5  ;;  %v1492_v57 = vrot.slane %v1481_v29, 9  ;;  %v783_v58 = vrot.slane %v1482_v30, 5  ;;  %v1674_v28 = vld [vmem:[%s1818_s30 + $0x30] ss:$8 sps:$4 sm:$0xff]  }
  0x4e   : > { %712 = vrot.lane.b32.xlu0 %v1467_v31, %s1745_s13  ;;  %v1470_v55 = vcombine.low %v685_v42, %v699_v48  ;;  %v624_v56 = vrot.slane %v623_v43, 4  ;;  %v637_v60 = vor.u32 %v636_v49, %v633_v44  ;;  %v780_v61 = vsel %vm1830_vm3, %v1491_v45, %v779_v51  ;;  %v1519_v29 = vld [vmem:[%s1818_s30 + $0x30] sm:$0xf]  ;;  %v1520_v30 = vld [vmem:[%s1818_s30 + $0x34] sm:$0x1] }
  0x4f   : > { %v1487_v62 = vrot.slane %v1471_v35, 9  ;;  %v763_v63 = vrot.slane %v1472_v36, 5  ;;  %v784_v1 = vsel %vm1830_vm3, %v1492_v57, %v783_v58  ;;  %v1488_v2 = vrot.slane %v1473_v41, 9  ;;  %v1521_v31 = vld [vmem:[%s1818_s30 + $0x38] sm:$0xf] }
  0x50   : > { %718 = vrot.lane.b32.xlu1 %v1470_v55, %s1745_s13  ;;  %v767_v3 = vrot.slane %v1474_v46, 5  ;;  %v629_v5 = vsel %vm1877_vm6, %v624_v56, %v628_v38  ;;  %v638_v6 = vrot.slane %v637_v60, 4  ;;  %v1497_v8 = vcombine.low %v780_v61, %v784_v1  ;;  %v1522_v33 = vld [vmem:[%s1818_s30 + $0x3c] sm:$0x1]  ;;  %v1511_v41 = vld [vmem:[%s1818_s30 + $0x10] sm:$0xf] }
  0x51   : > { %v1493_v10 = vrot.slane %v1483_v47, 9  ;;  %v764_v11 = vsel %vm1830_vm3, %v1487_v62, %v763_v63  ;;  %v787_v12 = vrot.slane %v1484_v52, 5  ;;  %v1494_v13 = vrot.slane %v1485_v53, 9  ;;  %v1512_v45 = vld [vmem:[%s1818_s30 + $0x14] sm:$0x1] }
  0x52   : > { %v791_v14 = vrot.slane %v1486_v54, 5  ;;  %v643_v16 = vsel %vm1877_vm6, %v638_v6, %v642_v50  ;;  %v768_v17 = vsel %vm1830_vm3, %v1488_v2, %v767_v3  ;;  %v1489_v18 = vrot.slane %v1475_v59, 9  ;;  %v1676_v47 = vld [vmem:[%s1818_s30 + $0x40] ss:$8 sps:$4 sm:$0xff]   ;;  %v1513_v51 = vld [vmem:[%s1818_s30 + $0x18] sm:$0xf] }
  0x53   : > { %v771_v19 = vrot.slane %v1476_v0, 5  ;;  %v1468_v20 = vcombine.low %v629_v5, %v643_v16  ;;  %v788_v21 = vsel %vm1830_vm3, %v1493_v10, %v787_v12  ;;  %v1490_v23 = vrot.slane %v1477_v4, 9  ;;  %v1514_v54 = vld [vmem:[%s1818_s30 + $0x1c] sm:$0x1]  ;;  %v1675_v58 = vld [vmem:[%s1818_s30 + $0x10] ss:$8 sps:$4 sm:$0xff]  }
  0x54   : > { %809 = vrot.lane.b32.xlu1 %v1497_v8, %s1746_s14  ;;  %v792_v22 = vsel %vm1830_vm3, %v1494_v13, %v791_v14  ;;  %v775_v26 = vrot.slane %v1478_v15, 5  ;;  %v1495_v27 = vcombine.low %v764_v11, %v768_v17  ;;  %v941_v34 = vshrl.u32 %v1519_v29, 16  ;;  %v1523_v63 = vld [vmem:[%s1818_s30 + $0x40] sm:$0xf]  ;;  %v1524_v3 = vld [vmem:[%s1818_s30 + $0x44] sm:$0x1] }
  0x55   : > { %v1498_v24 = vcombine.low %v788_v21, %v792_v22  ;;  %v772_v25 = vsel %vm1830_vm3, %v1489_v18, %v771_v19  ;;  %714 = vrot.lane.b32.xlu0 %v1468_v20, %s1745_s13  ;;  %v944_v35 = vshll.u32 %v1519_v29, 16  ;;  %v950_v36 = vshll.u32 %v1520_v30, 16  ;;  %v1525_v11 = vld [vmem:[%s1818_s30 + $0x48] sm:$0xf]  ;;  %v1526_v13 = vld [vmem:[%s1818_s30 + $0x4c] sm:$0x1] }
  0x56   : > { %v776_v32 = vsel %vm1830_vm3, %v1490_v23, %v775_v26  ;;  %v955_v38 = vshrl.u32 %v1521_v31, 16  ;;  %v958_v39 = vshll.u32 %v1521_v31, 16  ;;  %v964_v40 = vshll.u32 %v1522_v33, 16  ;;  %v1677_v17 = vld [vmem:[%s1818_s30 + $0x20] ss:$8 sps:$4 sm:$0xff]  }
  0x57   : > { %v1496_v37 = vcombine.low %v772_v25, %v776_v32  ;;  %v943_v42 = vrot.slane %v941_v34, 4  ;;  %v946_v43 = vrot.slane %v944_v35, 5  ;;  %v952_v44 = vrot.slane %v950_v36, 5  ;;  %v1515_v22 = vld [vmem:[%s1818_s30 + $0x20] sm:$0xf] }
  0x58   : > { %811 = vrot.lane.b32.xlu1 %v1498_v24, %s1746_s14  ;;  %v885_v46 = vshrl.u32 %v1511_v41, 16  ;;  %v957_v48 = vrot.slane %v955_v38, 4  ;;  %v960_v49 = vrot.slane %v958_v39, 5  ;;  %v966_v50 = vrot.slane %v964_v40, 5  ;;  %v1516_v23 = vld [vmem:[%s1818_s30 + $0x24] sm:$0x1] }
  0x59   : > { %805 = vrot.lane.b32.xlu0 %v1495_v27, %s1746_s14  ;;  %v888_v52 = vshll.u32 %v1511_v41, 16  ;;  %v947_v53 = vor.u32 %v946_v43, %v943_v42  ;;  %v894_v56 = vshll.u32 %v1512_v45, 16  ;;  %v899_v57 = vshrl.u32 %v1513_v51, 16  ;;  %v1518_v33 = vld [vmem:[%s1818_s30 + $0x2c] sm:$0x1] }
  0x5a   : > { %v887_v55 = vrot.slane %v885_v46, 4  ;;  %v961_v59 = vor.u32 %v960_v49, %v957_v48  ;;  %v902_v61 = vshll.u32 %v1513_v51, 16  ;;  %v908_v62 = vshll.u32 %v1514_v54, 16  ;;  %v1539_v38 = vld [vmem:[%s1818_s30 + $0x30] sm:$0xe] }
  0x5b   : > { %v890_v60 = vrot.slane %v888_v52, 5  ;;  %v948_v0 = vrot.slane %v947_v53, 4  ;;  %v896_v1 = vrot.slane %v894_v56, 5  ;;  %v901_v2 = vrot.slane %v899_v57, 4  ;;  %v1540_v43 = vld [vmem:[%s1818_s30 + $0x34] sm:$0x1] }
  0x5c   : > { %855 = vrot.lane.b32.xlu1 %v1674_v28, %s1747_s22  ;;  %v969_v4 = vshrl.u32 %v1523_v63, 16  ;;  %v962_v5 = vrot.slane %v961_v59, 4  ;;  %v904_v8 = vrot.slane %v902_v61, 5  ;;  %v910_v10 = vrot.slane %v908_v62, 5  ;;  %v1517_v28 = vld [vmem:[%s1818_s30 + $0x28] sm:$0xf] }
  0x5d   : > { %807 = vrot.lane.b32.xlu0 %v1496_v37, %s1746_s14  ;;  %v891_v6 = vor.u32 %v890_v60, %v887_v55  ;;  %v953_v12 = vsel %vm1877_vm6, %v948_v0, %v952_v44  ;;  %v972_v15 = vshll.u32 %v1523_v63, 16  ;;  %v978_v16 = vshll.u32 %v1524_v3, 16  ;;  %v1541_v48 = vld [vmem:[%s1818_s30 + $0x38] sm:$0xe]  ;;  %v1542_v49 = vld [vmem:[%s1818_s30 + $0x3c] sm:$0x1] }
  0x5e   : > { %v971_v14 = vrot.slane %v969_v4, 4  ;;  %v967_v18 = vsel %vm1877_vm6, %v962_v5, %v966_v50  ;;  %v905_v20 = vor.u32 %v904_v8, %v901_v2  ;;  %v983_v21 = vshrl.u32 %v1525_v11, 16  ;;  %v1531_v54 = vld [vmem:[%s1818_s30 + $0x10] sm:$0xe]  ;;  %v1532_v59 = vld [vmem:[%s1818_s30 + $0x14] sm:$0x1] }
  0x5f   : > { %v892_v19 = vrot.slane %v891_v6, 4  ;;  %v1529_v24 = vcombine.low %v953_v12, %v967_v18  ;;  %v974_v25 = vrot.slane %v972_v15, 5  ;;  %v980_v26 = vrot.slane %v978_v16, 5  ;;  %v1682_v60 = vld [vmem:[%s2028_s27] sm:$0xff]   ;;  %v1534_v5 = vld [vmem:[%s1818_s30 + $0x1c] sm:$0x1] }
  0x60   : > { %857 = vrot.lane.b32.xlu1 %v1676_v47, %s1747_s22  ;;  %v986_v27 = vshll.u32 %v1525_v11, 16  ;;  %v906_v30 = vrot.slane %v905_v20, 4  ;;  %v985_v31 = vrot.slane %v983_v21, 4  ;;  %v992_v32 = vshll.u32 %v1526_v13, 16  ;;  %1579 = vmatprep.subr.bf16.mxu0 %v1682_v60  ;;  %v1543_v13 = vld [vmem:[%s1818_s30 + $0x40] sm:$0xe] }
  0x61   : > { %851 = vrot.lane.b32.xlu0 %v1675_v58, %s1747_s22  ;;  %v897_v29 = vsel %vm1877_vm6, %v892_v19, %v896_v1  ;;  %v975_v34 = vor.u32 %v974_v25, %v971_v14  ;;  %v913_v36 = vshrl.u32 %v1515_v22, 16  ;;  %v916_v37 = vshll.u32 %v1515_v22, 16  ;;  %v1533_v1 = vld [vmem:[%s1818_s30 + $0x18] sm:$0xe]  ;;  %1593 = vmatprep.subr.bf16.mxu1 %v1682_v60  ;;  %v1544_v14 = vld [vmem:[%s1818_s30 + $0x44] sm:$0x1] }
  0x62   : > { %v988_v35 = vrot.slane %v986_v27, 5  ;;  %v911_v39 = vsel %vm1877_vm6, %v906_v30, %v910_v10  ;;  %v994_v40 = vrot.slane %v992_v32, 5  ;;  %v922_v41 = vshll.u32 %v1516_v23, 16  ;;  %1580 = vmatpush3.bf16.msra.mxu0 %v1682_v60  ;;  %v1683_v15 = vld [vmem:[%s2028_s27 + $0x8] sm:$0xff]   ;;  %1596 = vmatpush3.bf16.msra.mxu1 %v1682_v60  ;;  %v1536_v30 = vld [vmem:[%s1818_s30 + $0x24] sm:$0x1] }
  0x63   : > { %v927_v42 = vshrl.u32 %v1517_v28, 16  ;;  %v1527_v44 = vcombine.low %v897_v29, %v911_v39  ;;  %v976_v45 = vrot.slane %v975_v34, 4  ;;  %v915_v47 = vrot.slane %v913_v36, 4  ;;  %v1545_v20 = vld [vmem:[%s1818_s30 + $0x48] sm:$0xe]  ;;  %1581 = vmatprep.subr.bf16.mxu0 %v1683_v15  ;;  %1594 = vmatprep.subr.bf16.mxu1 %v1683_v15 }
  0x64   : > { %1012 = vrot.lane.b32.xlu1 %v1529_v24, %s1748_s24  ;;  %v989_v46 = vor.u32 %v988_v35, %v985_v31  ;;  %v918_v50 = vrot.slane %v916_v37, 5  ;;  %v924_v51 = vrot.slane %v922_v41, 5  ;;  %v930_v53 = vshll.u32 %v1517_v28, 16  ;;  %v1546_v24 = vld [vmem:[%s1818_s30 + $0x4c] sm:$0x1] }
  0x65   : > { %853 = vrot.lane.b32.xlu0 %v1677_v17, %s1747_s22  ;;  %v929_v52 = vrot.slane %v927_v42, 4  ;;  %vm265_vm7 = vcmask 31744   ;;  %v981_v55 = vsel %vm1877_vm6, %v976_v45, %v980_v26  ;;  %v936_v57 = vshll.u32 %v1518_v33, 16  ;;  %v1535_v26 = vld [vmem:[%s1818_s30 + $0x20] sm:$0xe] }
  0x66   : > { %v990_v56 = vrot.slane %v989_v46, 4  ;;  %v1551_v58 = vrot.slane %v1539_v38, 9  ;;  %v919_v61 = vor.u32 %v918_v50, %v915_v47  ;;  %v932_v62 = vrot.slane %v930_v53, 5  ;;  %v1537_v31 = vld [vmem:[%s1818_s30 + $0x28] sm:$0xe]  ;;  %1582 = vmatpush3.bf16.msra.mxu0 %v1683_v15  ;;  %1597 = vmatpush3.bf16.msra.mxu1 %v1683_v15 }
  0x67   : > { %v1075_v63 = vrot.slane %v1540_v43, 5  ;;  %v1552_v0 = vrot.slane %v1541_v48, 9  ;;  %v938_v3 = vrot.slane %v936_v57, 5  ;;  %v1079_v4 = vrot.slane %v1542_v49, 5  ;;  %v1538_v35 = vld [vmem:[%s1818_s30 + $0x2c] sm:$0x1] }
  0x68   : > { %v995_v2 = vsel %vm1877_vm6, %v990_v56, %v994_v40  ;;  %v1547_v6 = vrot.slane %v1531_v54, 9  ;;  %v920_v10 = vrot.slane %v919_v61, 4  ;;  %v933_v11 = vor.u32 %v932_v62, %v929_v52  ;;  %v1678_v41 = vld [vmem:[%s1818_s30 + $0x10] ss:$8 sps:$4 sm:$0xff]   ;;  %v1679_v45 = vld [vmem:[%s1818_s30] ss:$8 sps:$4 sm:$0xff]  }
  0x69   : > { %1008 = vrot.lane.b32.xlu0 %v1527_v44, %s1748_s24  ;;  %v1530_v8 = vcombine.low %v981_v55, %v995_v2  ;;  %v1076_v12 = vsel %vm1830_vm3, %v1551_v58, %v1075_v63  ;;  %v1080_v16 = vsel %vm1830_vm3, %v1552_v0, %v1079_v4  ;;  %v1059_v17 = vrot.slane %v1532_v59, 5  ;;  %267 = vst.msk [vmem:[#allocation2 + $0x8] sm:$0xff] %vm265_vm7, %v1678_v41  ;;  %v1680_v48 = vld [vmem:[%s1818_s30 + $0x30] ss:$8 sps:$4 sm:$0xff]   ;;  %v1681_v49 = vld [vmem:[%s1818_s30 + $0x20] ss:$8 sps:$4 sm:$0xff]  }
  0x6a   : > { %v1548_v18 = vrot.slane %v1533_v1, 9  ;;  %v1063_v19 = vrot.slane %v1534_v5, 5  ;;  %v925_v21 = vsel %vm1877_vm6, %v920_v10, %v924_v51  ;;  %v934_v22 = vrot.slane %v933_v11, 4  ;;  %266 = vst.msk [vmem:[#allocation2] sm:$0xff] %vm265_vm7, %v1679_v45  ;;  %269 = vst.msk [vmem:[#allocation2 + $0x18] sm:$0xff] %vm265_vm7, %v1680_v48  ;;  %v1121_v41 = vld [vmem:[#allocation3 + $0x18] sm:$0xff] }
  0x6b   : > { %1014 = vrot.lane.b32.xlu1 %v1530_v8, %s1748_s24  ;;  %v1557_v23 = vcombine.low %v1076_v12, %v1080_v16  ;;  %v1553_v25 = vrot.slane %v1543_v13, 9  ;;  %v1060_v27 = vsel %vm1830_vm3, %v1547_v6, %v1059_v17  ;;  %v1083_v28 = vrot.slane %v1544_v14, 5  ;;  %268 = vst.msk [vmem:[#allocation2 + $0x10] sm:$0xff] %vm265_vm7, %v1681_v49  ;;  %v1684_v51 = vld [vmem:[%s2028_s27 + $0x10] ss:$0 sps:$4 sm:$0x33]  }
  0x6c   : > { %v1554_v29 = vrot.slane %v1545_v20, 9  ;;  %v939_v32 = vsel %vm1877_vm6, %v934_v22, %v938_v3  ;;  %v1064_v33 = vsel %vm1830_vm3, %v1548_v18, %v1063_v19  ;;  %v1087_v34 = vrot.slane %v1546_v24, 5 }
  0x6d   : > { %v1549_v36 = vrot.slane %v1535_v26, 9  ;;  %v1528_v37 = vcombine.low %v925_v21, %v939_v32  ;;  %v1084_v38 = vsel %vm1830_vm3, %v1553_v25, %v1083_v28  ;;  %v1067_v39 = vrot.slane %v1536_v30, 5  ;;  %v1124_v26 = vld [vmem:[#allocation3 + $0x30] sm:$0xff]  ;;  %v1123_v32 = vld [vmem:[#allocation3 + $0x28] sm:$0xff] }
  0x6e   : > { %v1550_v40 = vrot.slane %v1537_v31, 9  ;;  %v1088_v9 = vsel %vm1830_vm3, %v1554_v29, %v1087_v34  ;;  %v1071_v42 = vrot.slane %v1538_v35, 5  ;;  %v1555_v43 = vcombine.low %v1060_v27, %v1064_v33  ;;  %v1122_v27 = vld [vmem:[#allocation3 + $0x20] sm:$0xff]  ;;  %v1125_v29 = vld [vmem:[#allocation3 + $0x38] sm:$0xff]  ;;  %v1120_v35 = vld [vmem:[#allocation3 + $0x10] sm:$0xff] }
  0x6f   : > { %1105 = vrot.lane.b32.xlu1 %v1557_v23, %s1749_s28  ;;  %1010 = vrot.lane.b32.xlu0 %v1528_v37, %s1748_s24  ;;  %v1558_v44 = vcombine.low %v1084_v38, %v1088_v9  ;;  %v1068_v46 = vsel %vm1830_vm3, %v1549_v36, %v1067_v39  ;;  %vm1166_vm8 = vcmask 1041408   ;;  %vm425_vm9 = vcmask 64544   ;;  %v1118_v38 = vld [vmem:[#allocation3] sm:$0xff] }
  0x70   : > { %v1072_v47 = vsel %vm1830_vm3, %v1550_v40, %v1071_v42  ;;  %1599 = vmatprep.subr.msk.bf16.mxu0 %vm1166_vm8, %v1684_v51  ;;  %1600 = vmatprep.subr.msk.bf16.mxu1 %vm1166_vm8, %v1684_v51  ;;  %v1168_v52 = vsel %vm1166_vm8, %v1684_v51, 0  ;;  %vm521_vm10 = vcmask 97344   ;;  %vm567_vm11 = vcmask 130144  }
  0x71   : > { %v1556_v50 = vcombine.low %v1068_v46, %v1072_v47  ;;  %1584 = vmatpush3.bf16.msra.mxu0 %v1168_v52  ;;  %1598 = vmatpush3.bf16.msra.mxu1 %v1168_v52  ;;  %vm724_vm12 = vcmask 162944   ;;  %vm817_vm13 = vcmask 195744   ;;  %vm863_vm14 = vcmask 228544  }
  0x72   : > { %vm1020_vm15 = vcmask 261344   ;;  %vm1113_vm0 = vcmask 294144   ;;  %vm1153_vm1 = vcmask 293888   ;;  %vm1243_vm2 = vcmask 64512  }
  0x73   : > { %1107 = vrot.lane.b32.xlu1 %v1558_v44, %s1749_s28  ;;  %1101 = vrot.lane.b32.xlu0 %v1555_v43, %s1749_s28  ;;  %v1119_v43 = vld [vmem:[#allocation3 + $0x8] sm:$0xff]  ;;  %vm1312_vm3 = vcmask (!%p1567_p10), 519168  }
  0x77   : > { %1103 = vrot.lane.b32.xlu0 %v1556_v50, %s1749_s28  ;;  %v1568_v50 = vld [vmem:[%s2117_s2] ss:$0 sm:$0xff] (!%p1567_p10) }
  0x96   : > { %v514_v7 = vpop.permute.xlu1 %513 }
  0x98   : > { %v510_v53 = vpop.permute.xlu0 %509 }
  0x9a   : > { %v516_v54 = vpop.permute.xlu1 %515 }
  0x9d   : > { %v512_v55 = vpop.permute.xlu0 %511 }
  0xa6   : > { %v416_v56 = vpop.permute.xlu1 %415 }
  0xa7   : > { %427 = vst.msk [vmem:[#allocation2 + $0x8] sm:$0xff] %vm425_vm9, %v416_v56 }
  0xa8   : > { %523 = vst.msk [vmem:[#allocation2 + $0x8] sm:$0xff] %vm521_vm10, %v512_v55 }
  0xaa   : > { %v414_v57 = vpop.permute.xlu0 %413 }
  0xab   : > { %426 = vst.msk [vmem:[#allocation2] sm:$0xff] %vm425_vm9, %v414_v57 }
  0xac   : > { %522 = vst.msk [vmem:[#allocation2] sm:$0xff] %vm521_vm10, %v510_v53 }
  0xb0   : > { %v420_v58 = vpop.permute.xlu1 %419 }
  0xb1   : > { %429 = vst.msk [vmem:[#allocation2 + $0x18] sm:$0xff] %vm425_vm9, %v420_v58 }
  0xb2   : > { %525 = vst.msk [vmem:[#allocation2 + $0x18] sm:$0xff] %vm521_vm10, %v516_v54 }
  0xb4   : > { %v418_v59 = vpop.permute.xlu0 %417  ;;  %v560_v60 = vpop.permute.xlu1 %559 }
  0xb5   : > { %428 = vst.msk [vmem:[#allocation2 + $0x10] sm:$0xff] %vm425_vm9, %v418_v59 }
  0xb6   : > { %524 = vst.msk [vmem:[#allocation2 + $0x10] sm:$0xff] %vm521_vm10, %v514_v7 }
  0xb7   : > { %570 = vst.msk [vmem:[#allocation2 + $0x10] sm:$0xff] %vm567_vm11, %v560_v60 }
  0xb8   : > { %v556_v61 = vpop.permute.xlu0 %555  ;;  %v562_v62 = vpop.permute.xlu1 %561 }
  0xb9   : > { %568 = vst.msk [vmem:[#allocation2] sm:$0xff] %vm567_vm11, %v556_v61  ;;  %571 = vst.msk [vmem:[#allocation2 + $0x18] sm:$0xff] %vm567_vm11, %v562_v62 }
  0xbc   : > { %v558_v63 = vpop.permute.xlu0 %557  ;;  %v717_v0 = vpop.permute.xlu1 %716 }
  0xbd   : > { %569 = vst.msk [vmem:[#allocation2 + $0x8] sm:$0xff] %vm567_vm11, %v558_v63 }
  0xbe   : > { %727 = vst.msk [vmem:[#allocation2 + $0x10] sm:$0xff] %vm724_vm12, %v717_v0 }
  0xc0   : > { %v713_v1 = vpop.permute.xlu0 %712 }
  0xc1   : > { %725 = vst.msk [vmem:[#allocation2] sm:$0xff] %vm724_vm12, %v713_v1 }
  0xc2   : > { %v719_v2 = vpop.permute.xlu1 %718 }
  0xc3   : > { %728 = vst.msk [vmem:[#allocation2 + $0x18] sm:$0xff] %vm724_vm12, %v719_v2 }
  0xc6   : > { %v810_v3 = vpop.permute.xlu1 %809 }
  0xc7   : > { %820 = vst.msk [vmem:[#allocation2 + $0x10] sm:$0xff] %vm817_vm13, %v810_v3  ;;  %v715_v4 = vpop.permute.xlu0 %714 }
  0xc8   : > { %726 = vst.msk [vmem:[#allocation2 + $0x8] sm:$0xff] %vm724_vm12, %v715_v4 }
  0xca   : > { %v812_v5 = vpop.permute.xlu1 %811 }
  0xcb   : > { %821 = vst.msk [vmem:[#allocation2 + $0x18] sm:$0xff] %vm817_vm13, %v812_v5  ;;  %v806_v6 = vpop.permute.xlu0 %805 }
  0xcc   : > { %818 = vst.msk [vmem:[#allocation2] sm:$0xff] %vm817_vm13, %v806_v6 }
  0xce   : > { %v856_v8 = vpop.permute.xlu1 %855 }
  0xcf   : > { %866 = vst.msk [vmem:[#allocation2 + $0x10] sm:$0xff] %vm863_vm14, %v856_v8  ;;  %v808_v10 = vpop.permute.xlu0 %807 }
  0xd0   : > { %819 = vst.msk [vmem:[#allocation2 + $0x8] sm:$0xff] %vm817_vm13, %v808_v10 }
  0xd2   : > { %v858_v11 = vpop.permute.xlu1 %857 }
  0xd3   : > { %867 = vst.msk [vmem:[#allocation2 + $0x18] sm:$0xff] %vm863_vm14, %v858_v11  ;;  %v852_v12 = vpop.permute.xlu0 %851 }
  0xd4   : > { %864 = vst.msk [vmem:[#allocation2] sm:$0xff] %vm863_vm14, %v852_v12 }
  0xd6   : > { %v1013_v13 = vpop.permute.xlu1 %1012 }
  0xd7   : > { %1023 = vst.msk [vmem:[#allocation2 + $0x10] sm:$0xff] %vm1020_vm15, %v1013_v13  ;;  %v854_v14 = vpop.permute.xlu0 %853 }
  0xd8   : > { %865 = vst.msk [vmem:[#allocation2 + $0x8] sm:$0xff] %vm863_vm14, %v854_v14 }
  0xdb   : > { %v1009_v15 = vpop.permute.xlu0 %1008 }
  0xdc   : > { %1021 = vst.msk [vmem:[#allocation2] sm:$0xff] %vm1020_vm15, %v1009_v15 }
  0xdd   : > { %v1015_v16 = vpop.permute.xlu1 %1014 }
  0xde   : > { %1024 = vst.msk [vmem:[#allocation2 + $0x18] sm:$0xff] %vm1020_vm15, %v1015_v16 }
  0xe1   : > { %v1106_v17 = vpop.permute.xlu1 %1105  ;;  %v1011_v18 = vpop.permute.xlu0 %1010 }
  0xe2   : > { %1116 = vst.msk [vmem:[#allocation2 + $0x10] sm:$0xff] %vm1113_vm0, %v1106_v17 }
  0xe3   : > { %1022 = vst.msk [vmem:[#allocation2 + $0x8] sm:$0xff] %vm1020_vm15, %v1011_v18 }
  0xe5   : > { %v1108_v19 = vpop.permute.xlu1 %1107  ;;  %v1102_v20 = vpop.permute.xlu0 %1101 }
  0xe6   : > { %1117 = vst.msk [vmem:[#allocation2 + $0x18] sm:$0xff] %vm1113_vm0, %v1108_v19  ;;  %1114 = vst.msk [vmem:[#allocation2] sm:$0xff] %vm1113_vm0, %v1102_v20 }
  0xe9   : > { %v1128_v21 = vld [vmem:[#allocation2 + $0x10] sm:$0xff]  ;;  %v1104_v22 = vpop.permute.xlu0 %1103 }
  0xea   : > { %1589 = vmatprep.mubr.msk.bf16.mxu1 %vm1153_vm1, %v1128_v21  ;;  %1115 = vst.msk [vmem:[#allocation2 + $0x8] sm:$0xff] %vm1113_vm0, %v1104_v22 }
  0xed   : > { %v1129_v23 = vld [vmem:[#allocation2 + $0x18] sm:$0xff]  ;;  %v1126_v24 = vld [vmem:[#allocation2] sm:$0xff] }
  0xee   : > { %1590 = vmatmul.mubr.msk.bf16.vlgmr.msra.gmra.mrb[0].mxu1 %vm1153_vm1, %v1129_v23  ;;  %1585 = vmatprep.mubr.msk.bf16.mxu0 %vm1153_vm1, %v1126_v24 }
  0xf1   : > { %v1127_v25 = vld [vmem:[#allocation2 + $0x8] sm:$0xff] }
  0xf2   : > { %1586 = vmatmul.mubr.msk.bf16.vlgmr.msra.gmra.mrb[0].mxu0 %vm1153_vm1, %v1127_v25 }
 0x1c1   : > { %v1591_v28 = vpop.f32.mrb[0].mxu1 }
 0x1c2   : > { %v1241_v30 = vadd.f32 %v1591_v28, %v1124_v26  ;;  %v1220_v31 = vpop.f32.mrb[1].mxu1 }
 0x1c3   : > { %v1239_v33 = vadd.f32 %v1220_v31, %v1122_v27  ;;  %v1592_v34 = vpop.f32.mrb[2].mxu1 }
 0x1c4   : > { %1250 = vst.msk [vmem:[#allocation3 + $0x30] sm:$0xff] %vm1243_vm2, %v1241_v30  ;;  %v1242_v36 = vadd.f32 %v1592_v34, %v1125_v29  ;;  %v1223_v37 = vpop.f32.mrb[3].mxu1 }
 0x1c5   : > { %1248 = vst.msk [vmem:[#allocation3 + $0x20] sm:$0xff] %vm1243_vm2, %v1239_v33  ;;  %v1240_v39 = vadd.f32 %v1223_v37, %v1123_v32  ;;  %v1587_v40 = vpop.f32.mrb[0].mxu0  ;;  %1255 = sbr.rel (%p1567_p10) target bundleno = 599 (0x257), region = 40 }
 0x1c6   : > { %1251 = vst.msk [vmem:[#allocation3 + $0x38] sm:$0xff] %vm1243_vm2, %v1242_v36  ;;  %v1237_v9 = vadd.f32 %v1587_v40, %v1120_v35  ;;  %v1204_v42 = vpop.f32.mrb[1].mxu0 }
 0x1c7   : > { %1249 = vst.msk [vmem:[#allocation3 + $0x28] sm:$0xff] %vm1243_vm2, %v1240_v39  ;;  %v1235_v44 = vadd.f32 %v1204_v42, %v1118_v38  ;;  %v1588_v45 = vpop.f32.mrb[2].mxu0 }
 0x1c8   : > { %1246 = vst.msk [vmem:[#allocation3 + $0x10] sm:$0xff] %vm1243_vm2, %v1237_v9  ;;  %v1238_v46 = vadd.f32 %v1588_v45, %v1121_v41  ;;  %v1207_v47 = vpop.f32.mrb[3].mxu0 }
 0x1c9   : > { %1244 = vst.msk [vmem:[#allocation3] sm:$0xff] %vm1243_vm2, %v1235_v44  ;;  %v1236_v48 = vadd.f32 %v1207_v47, %v1119_v43 }
 0x1ca   : > { %1247 = vst.msk [vmem:[#allocation3 + $0x18] sm:$0xff] %vm1243_vm2, %v1238_v46 }
 0x1cb   : > { %1245 = vst.msk [vmem:[#allocation3 + $0x8] sm:$0xff] %vm1243_vm2, %v1236_v48  ;;  %v1262_v61 = vld [vmem:[#allocation3 + $0x30] sm:$0xff] (!%p1567_p10) }
 0x1cc   : > { %v1260_v57 = vld [vmem:[#allocation3 + $0x20] sm:$0xff]  ;;  %v1277_v62 = vadd.f32 %v1568_v50, %v1262_v61 }
 0x1cd   : > { %v1275_v58 = vadd.f32 %v1568_v50, %v1260_v57  ;;  %v1263_v63 = vld [vmem:[#allocation3 + $0x38] sm:$0xff] }
 0x1ce   : > { %v1261_v59 = vld [vmem:[#allocation3 + $0x28] sm:$0xff]  ;;  %v1278_v0 = vadd.f32 %v1568_v50, %v1263_v63 }
 0x1cf   : > { %v1258_v53 = vld [vmem:[#allocation3 + $0x10] sm:$0xff]  ;;  %v1276_v60 = vadd.f32 %v1568_v50, %v1261_v59 }
 0x1d0   : > { %v1256_v49 = vld [vmem:[#allocation3] sm:$0xff]  ;;  %v1273_v54 = vadd.f32 %v1568_v50, %v1258_v53 }
 0x1d1   : > { %v1271_v52 = vadd.f32 %v1568_v50, %v1256_v49  ;;  %v1259_v55 = vld [vmem:[#allocation3 + $0x18] sm:$0xff] }
 0x1d2   : > { %v1257_v51 = vld [vmem:[#allocation3 + $0x8] sm:$0xff]  ;;  %v1274_v56 = vadd.f32 %v1568_v50, %v1259_v55 }
 0x1d3   : > { %1279 = vxpose.xlu0.b32.start [1/8] (short) (narrow) %v1271_v52, 8  ;;  %v1272_v7 = vadd.f32 %v1568_v50, %v1257_v51 }
 0x1d7   : > { %1280 = vxpose.xlu0.b32.cont [2/8] (short) (narrow) %v1272_v7, 8 }
 0x1db   : > { %1281 = vxpose.xlu0.b32.cont [3/8] (short) (narrow) %v1273_v54, 8 }
 0x1df   : > { %1282 = vxpose.xlu0.b32.cont [4/8] (short) (narrow) %v1274_v56, 8 }
 0x1e3   : > { %1283 = vxpose.xlu0.b32.cont [5/8] (short) (narrow) %v1275_v58, 8 }
 0x1e7   : > { %1284 = vxpose.xlu0.b32.cont [6/8] (short) (narrow) %v1276_v60, 8 }
 0x1eb   : > { %1285 = vxpose.xlu0.b32.cont [7/8] (short) (narrow) %v1277_v62, 8 }
 0x1ef   : > { %1286 = vxpose.xlu0.b32.end [8/8] (short) (narrow) %v1278_v0, 8 }
 0x253   : > { %v1295_v1 = vpop.trf.xlu0 }
 0x254   : > { %v1311_v2 = vpack.c.bf16 %v1295_v1, %v1295_v1 }
 0x256   : > { %1313 = vst.msk [vmem:[%s1823_s8] sm:$0xf] %vm1312_vm3, %v1311_v2 }
 0x257 PF: > { %s13_s18 = sadd.s32 1, %s1739_s18   ;;  %s2123_s12 = smov %s1727_s15 }
 0x258   : > { %p10_p11 = scmp.ge.s32.totalorder %s13_s18, 14   ;;  %s2124_s13 = smov %s1731_s16 }
 0x259   : > { %s2125_s14 = smov %s1735_s17  ;;  %s2126_s15 = smov %s2130_s19 }
 0x25a   : > { %s2127_s16 = smov %s2134_s20  ;;  %s2128_s17 = smov %s2138_s21 }
 0x25b   :  { %12 = sbr.rel (!%p10_p11) target bundleno = 4 (0x4), region = 73 }

// kernel: down_right_shifted_conv3d_forward.7
= control target key start
LH: loop header
LB: loop body
LE: loop exit
PB: predicated region body
PF: predicated region fallthrough
CT: control target
= control target key end

     0   :  { %s1798_s12 = smov 0   ;;  %s1800_s13 = smov 0   ;;  %s2150_s0 = inlined_call_operand.vmem [shape: bf16[2,3,10,10,8], index: 0, kind: input, shape index: {}]   ;;  %s2151_s1 = inlined_call_operand.vmem [shape: bf16[2,72,8], index: 1, kind: input, shape index: {}]   ;;  %s2152_s2 = inlined_call_operand.vmem [shape: f32[1,8], index: 2, kind: input, shape index: {}]   ;;  %s2153_s3 = inlined_call_operand.vmem [shape: f32[2,2,8,64], index: 3, kind: output, shape index: {}]  }
   0x1   :  { %s1802_s14 = smov 0   ;;  %s1804_s15 = smov 0  }
   0x2   :  { %s1806_s16 = smov 0   ;;  %s1808_s17 = smov 0  }
   0x3   :  { %s1810_s18 = smov 0  }
   0x4 LB: > { %s25_s19 = sadd.s32 1, %s1755_s15  ;;  %s28_s20 = sadd.s32 1, %s1759_s16  ;;  %s1767_s18 = sphi %s1810_s18, %s13_s18   ;;  %s1763_s17 = sphi %s1808_s17, %s2163_s17   ;;  %s1759_s16 = sphi %s1806_s16, %s2162_s16   ;;  %s1755_s15 = sphi %s1804_s15, %s2161_s15   ;;  %s1751_s14 = sphi %s1802_s14, %s2160_s14   ;;  %s1747_s13 = sphi %s1800_s13, %s2159_s13   ;;  %s1743_s12 = sphi %s1798_s12, %s2158_s12  }
   0x5   : > { %p26_p0 = scmp.ge.s32.totalorder %s25_s19, 2  ;;  %p1429_p1 = scmp.ge.s32.totalorder %s1767_s18, 1 }
   0x6   : > { %p168_p2 = scmp.lt.s32.totalorder %s1767_s18, 9  ;;  %s32_s21 = sadd.s32 1, %s1763_s17 }
   0x7   : > { %s2165_s19 = smov (%p26_p0, %s25_s19), 0  ;;  %s2167_s20 = smov (!%p26_p0, %s28_s20), %s1759_s16 }
   0x8   : > { %p169_p3 = pnand %p1429_p1, %p168_p2  ;;  %p30_p4 = scmp.ge.s32.totalorder %s2167_s20, 2 }
   0x9   : > { %s200_s22 = sadd.s32 (!%p169_p3), %s1743_s12, %s1747_s13  ;;  %p201_p6 = scmp.lt.s32.totalorder (!%p169_p3), %s1751_s14, 1 }
   0xa   : > { %s2169_s20 = smov (%p30_p4, %s2167_s20), 0  ;;  %s2171_s21 = smov (!%p30_p4, %s32_s21), %s1763_s17 }
   0xb   : > { %p34_p5 = scmp.ge.s32.totalorder %s2171_s21, 2  ;;  %172 = sbr.rel (%p169_p3) target bundleno = 596 (0x254), region = 32 }
   0xc   : > { %p203_p7 = scmp.lt.s32.totalorder (!%p169_p3), %s200_s22, 2  ;;  %p213_p8 = scmp.lt.s32.totalorder (!%p169_p3), %s1747_s13, 1 }
   0xd   : > { %s2173_s21 = smov (%p34_p5, %s2171_s21), 0  ;;  %p1433_p9 = scmp.ne.s32.totalorder (!%p169_p3), %s1743_s12, 0 }
  0x12   : > { %s2175_s14 = smov (!%p201_p6, %s1751_s14), 1  ;;  %s2177_s22 = smov (!%p203_p7, %s200_s22), 2 }
  0x13   : > { %s1629_s23 = smul.u32 60, %s2175_s14  ;;  %s1431_s25 = sshll.u32 %s2175_s14, 1  ;;  %vm224_vm0 = vcmask (!%p1433_p9), 64512   ;;  %v1769_v0 = vmov (!%p1433_p9), 0.0  }
  0x14   : > { %s1628_s24 = smul.u32 20, %s2177_s22  ;;  %s2179_s13 = smov (!%p213_p8, %s1747_s13), 1  ;;  %225 = vst.msk [vmem:[#allocation3] sm:$0xff] (!%p1433_p9), %vm224_vm0, %v1769_v0  ;;  %226 = vst.msk [vmem:[#allocation3 + $0x8] sm:$0xff] (!%p1433_p9), %vm224_vm0, %v1769_v0 }
  0x15   : > { %s216_s28 = sadd.s32 %s1431_s25, %s2179_s13  ;;  %223 = sbr.rel (%p1433_p9) target bundleno = 28 (0x1c), region = 36  ;;  %227 = vst.msk [vmem:[#allocation3 + $0x10] sm:$0xff] (!%p1433_p9), %vm224_vm0, %v1769_v0  ;;  %228 = vst.msk [vmem:[#allocation3 + $0x18] sm:$0xff] (!%p1433_p9), %vm224_vm0, %v1769_v0 }
  0x16   : > { %s207_s26 = sadd.s32 %s1629_s23, %s1628_s24  ;;  %s1432_s5 = sshll.u32 %s216_s28, 3  ;;  %229 = vst.msk [vmem:[#allocation3 + $0x20] sm:$0xff] (!%p1433_p9), %vm224_vm0, %v1769_v0  ;;  %230 = vst.msk [vmem:[#allocation3 + $0x28] sm:$0xff] (!%p1433_p9), %vm224_vm0, %v1769_v0 }
  0x17   : > { %s1430_s27 = sshll.u32 %s207_s26, 2  ;;  %s1856_s8 = scalar_lea.vmem %s2153_s3, %s1432_s5  ;;  %231 = vst.msk [vmem:[#allocation3 + $0x30] sm:$0xff] (!%p1433_p9), %vm224_vm0, %v1769_v0  ;;  %232 = vst.msk [vmem:[#allocation3 + $0x38] sm:$0xff] (!%p1433_p9), %vm224_vm0, %v1769_v0 }
  0x18   : > { %s1851_s4 = scalar_lea.vmem %s2150_s0, %s1430_s27 }
  0x1c PF: > { %v438_v1 = vld [vmem:[%s1851_s4 + $0x20] sm:$0xe]  ;;  %v439_v2 = vld [vmem:[%s1851_s4 + $0x24] sm:$0x1]  ;;  %v440_v3 = vld [vmem:[%s1851_s4 + $0x28] sm:$0xe] }
  0x1d   : > { %v441_v4 = vld [vmem:[%s1851_s4 + $0x2c] sm:$0x1]  ;;  %vm462_vm1 = vcmask 1042432   ;;  %vm463_vm2 = vcmask 1046532   ;;  %v1446_v5 = vrot.slane %v438_v1, 9  ;;  %v483_v6 = vrot.slane %v439_v2, 5 }
  0x1e   : > { %vm1863_vm3 = vmor %vm462_vm1, %vm463_vm2  ;;  %v1447_v8 = vrot.slane %v440_v3, 9  ;;  %v487_v9 = vrot.slane %v441_v4, 5  ;;  %v430_v10 = vld [vmem:[%s1851_s4] sm:$0xe]  ;;  %v431_v12 = vld [vmem:[%s1851_s4 + $0x4] sm:$0x1] }
  0x1f   : > { %v484_v11 = vsel %vm1863_vm3, %v1446_v5, %v483_v6  ;;  %v432_v13 = vld [vmem:[%s1851_s4 + $0x8] sm:$0xe]  ;;  %v433_v14 = vld [vmem:[%s1851_s4 + $0xc] sm:$0x1]  ;;  %v1442_v16 = vrot.slane %v430_v10, 9  ;;  %v467_v17 = vrot.slane %v431_v12, 5 }
  0x20   : > { %v488_v15 = vsel %vm1863_vm3, %v1447_v8, %v487_v9  ;;  %v1443_v18 = vrot.slane %v432_v13, 9  ;;  %v442_v19 = vld [vmem:[%s1851_s4 + $0x30] sm:$0xe]  ;;  %v471_v21 = vrot.slane %v433_v14, 5  ;;  %v443_v22 = vld [vmem:[%s1851_s4 + $0x34] sm:$0x1] }
  0x21   : > { %v1452_v20 = vcombine.low %v484_v11, %v488_v15  ;;  %v444_v23 = vld [vmem:[%s1851_s4 + $0x38] sm:$0xe]  ;;  %v1448_v24 = vrot.slane %v442_v19, 9  ;;  %v468_v25 = vsel %vm1863_vm3, %v1442_v16, %v467_v17  ;;  %v445_v26 = vld [vmem:[%s1851_s4 + $0x3c] sm:$0x1]  ;;  %v491_v27 = vrot.slane %v443_v22, 5 }
  0x22   : > { %v1449_v28 = vrot.slane %v444_v23, 9  ;;  %v434_v29 = vld [vmem:[%s1851_s4 + $0x10] sm:$0xe]  ;;  %s1770_s9 = smov 16   ;;  %v472_v30 = vsel %vm1863_vm3, %v1443_v18, %v471_v21  ;;  %v495_v31 = vrot.slane %v445_v26, 5  ;;  %s1771_s10 = smov 8  }
  0x23   : > { %513 = vrot.lane.b32.xlu1 %v1452_v20, %s1770_s9  ;;  %v435_v32 = vld [vmem:[%s1851_s4 + $0x14] sm:$0x1]  ;;  %v436_v33 = vld [vmem:[%s1851_s4 + $0x18] sm:$0xe]  ;;  %v1444_v34 = vrot.slane %v434_v29, 9  ;;  %v1450_v35 = vcombine.low %v468_v25, %v472_v30  ;;  %v492_v36 = vsel %vm1863_vm3, %v1448_v24, %v491_v27  ;;  %s1772_s11 = smov 24  }
  0x24   : > { %v437_v37 = vld [vmem:[%s1851_s4 + $0x1c] sm:$0x1]  ;;  %v475_v38 = vrot.slane %v435_v32, 5  ;;  %v1445_v39 = vrot.slane %v436_v33, 9  ;;  %v274_v40 = vld [vmem:[%s1851_s4 + $0x10] sm:$0xf]  ;;  %v496_v41 = vsel %vm1863_vm3, %v1449_v28, %v495_v31 }
  0x25   : > { %v479_v42 = vrot.slane %v437_v37, 5  ;;  %v275_v43 = vld [vmem:[%s1851_s4 + $0x14] sm:$0x1]  ;;  %v276_v44 = vld [vmem:[%s1851_s4 + $0x18] sm:$0xf]  ;;  %v318_v45 = vshrl.u32 %v274_v40, 16  ;;  %509 = vrot.lane.b32.xlu0 %v1450_v35, %s1770_s9  ;;  %v1453_v46 = vcombine.low %v492_v36, %v496_v41 }
  0x26   : > { %v476_v47 = vsel %vm1863_vm3, %v1444_v34, %v475_v38  ;;  %v277_v48 = vld [vmem:[%s1851_s4 + $0x1c] sm:$0x1]  ;;  %vm286_vm4 = vsmask.f32 3328  ;;  %vm287_vm5 = vsmask.f32 7440 }
  0x27   : > { %v480_v49 = vsel %vm1863_vm3, %v1445_v39, %v479_v42  ;;  %v320_v50 = vrot.slane %v318_v45, 4  ;;  %v321_v51 = vshll.u32 %v274_v40, 16  ;;  %v327_v52 = vshll.u32 %v275_v43, 16  ;;  %v270_v53 = vld [vmem:[%s1851_s4] sm:$0xf]  ;;  %515 = vrot.lane.b32.xlu1 %v1453_v46, %s1770_s9  ;;  %vm1910_vm6 = vmor %vm286_vm4, %vm287_vm5  ;;  %s1773_s13 = smov 32  }
  0x28   : > { %v1451_v54 = vcombine.low %v476_v47, %v480_v49  ;;  %v332_v55 = vshrl.u32 %v276_v44, 16  ;;  %v335_v56 = vshll.u32 %v276_v44, 16  ;;  %v341_v57 = vshll.u32 %v277_v48, 16  ;;  %v271_v58 = vld [vmem:[%s1851_s4 + $0x4] sm:$0x1]  ;;  %s1774_s14 = smov 40  }
  0x29   : > { %v323_v59 = vrot.slane %v321_v51, 5  ;;  %v329_v60 = vrot.slane %v327_v52, 5  ;;  %v272_v61 = vld [vmem:[%s1851_s4 + $0x8] sm:$0xf]  ;;  %v273_v62 = vld [vmem:[%s1851_s4 + $0xc] sm:$0x1] }
  0x2a   : > { %511 = vrot.lane.b32.xlu0 %v1451_v54, %s1770_s9  ;;  %v334_v63 = vrot.slane %v332_v55, 4  ;;  %v337_v0 = vrot.slane %v335_v56, 5  ;;  %v343_v1 = vrot.slane %v341_v57, 5  ;;  %v290_v2 = vshrl.u32 %v270_v53, 16  ;;  %v282_v8 = vld [vmem:[%s1851_s4 + $0x30] sm:$0xf] }
  0x2b   : > { %v324_v3 = vor.u32 %v323_v59, %v320_v50  ;;  %v293_v4 = vshll.u32 %v270_v53, 16  ;;  %v299_v5 = vshll.u32 %v271_v58, 16  ;;  %v304_v6 = vshrl.u32 %v272_v61, 16  ;;  %v283_v14 = vld [vmem:[%s1851_s4 + $0x34] sm:$0x1]  ;;  %s1588_s22 = smul.u32 36, %s1743_s12 }
  0x2c   : > { %v338_v10 = vor.u32 %v337_v0, %v334_v63  ;;  %v292_v11 = vrot.slane %v290_v2, 4  ;;  %v307_v12 = vshll.u32 %v272_v61, 16  ;;  %v313_v13 = vshll.u32 %v273_v62, 16  ;;  %v284_v19 = vld [vmem:[%s1851_s4 + $0x38] sm:$0xf]  ;;  %s1775_s23 = smov 48  }
  0x2d   : > { %v325_v15 = vrot.slane %v324_v3, 4  ;;  %v295_v16 = vrot.slane %v293_v4, 5  ;;  %v301_v17 = vrot.slane %v299_v5, 5  ;;  %v306_v18 = vrot.slane %v304_v6, 4  ;;  %v285_v26 = vld [vmem:[%s1851_s4 + $0x3c] sm:$0x1]  ;;  %s2038_s26 = scalar_lea.vmem %s2151_s1, %s1588_s22 }
  0x2e   : > { %v339_v20 = vrot.slane %v338_v10, 4  ;;  %v309_v21 = vrot.slane %v307_v12, 5  ;;  %v315_v22 = vrot.slane %v313_v13, 5  ;;  %v374_v23 = vshrl.u32 %v282_v8, 16  ;;  %v278_v33 = vld [vmem:[%s1851_s4 + $0x20] sm:$0xf] }
  0x2f   : > { %v330_v24 = vsel %vm1910_vm6, %v325_v15, %v329_v60  ;;  %v296_v25 = vor.u32 %v295_v16, %v292_v11  ;;  %v377_v27 = vshll.u32 %v282_v8, 16  ;;  %v383_v28 = vshll.u32 %v283_v14, 16  ;;  %v279_v37 = vld [vmem:[%s1851_s4 + $0x24] sm:$0x1]  ;;  %v280_v42 = vld [vmem:[%s1851_s4 + $0x28] sm:$0xf] }
  0x30   : > { %v344_v29 = vsel %vm1910_vm6, %v339_v20, %v343_v1  ;;  %v310_v30 = vor.u32 %v309_v21, %v306_v18  ;;  %v376_v31 = vrot.slane %v374_v23, 4  ;;  %v388_v32 = vshrl.u32 %v284_v19, 16  ;;  %v281_v50 = vld [vmem:[%s1851_s4 + $0x2c] sm:$0x1]  ;;  %v1474_v5 = vld [vmem:[%s1851_s4 + $0x28] sm:$0xf] }
  0x31   : > { %v1439_v34 = vcombine.low %v330_v24, %v344_v29  ;;  %v297_v35 = vrot.slane %v296_v25, 4  ;;  %v379_v36 = vrot.slane %v377_v27, 5  ;;  %v391_v40 = vshll.u32 %v284_v19, 16  ;;  %v1475_v10 = vld [vmem:[%s1851_s4 + $0x2c] sm:$0x1]  ;;  %s1776_s27 = smov 56  }
  0x32   : > { %v311_v38 = vrot.slane %v310_v30, 4  ;;  %v390_v39 = vrot.slane %v388_v32, 4  ;;  %v397_v41 = vshll.u32 %v285_v26, 16  ;;  %v346_v45 = vshrl.u32 %v278_v33, 16  ;;  %v1476_v11 = vld [vmem:[%s1851_s4 + $0x30] sm:$0xf] }
  0x33   : > { %415 = vrot.lane.b32.xlu1 %v1439_v34, %s1771_s10  ;;  %v302_v43 = vsel %vm1910_vm6, %v297_v35, %v301_v17  ;;  %v380_v44 = vor.u32 %v379_v36, %v376_v31  ;;  %v349_v46 = vshll.u32 %v278_v33, 16  ;;  %v385_v48 = vrot.slane %v383_v28, 5  ;;  %v1477_v12 = vld [vmem:[%s1851_s4 + $0x34] sm:$0x1]  ;;  %v1696_v15 = vld [vmem:[%s1851_s4 + $0x28] ss:$8 sps:$4 sm:$0xff]  }
  0x34   : > { %v316_v47 = vsel %vm1910_vm6, %v311_v38, %v315_v22  ;;  %v393_v49 = vrot.slane %v391_v40, 5  ;;  %v355_v51 = vshll.u32 %v279_v37, 16  ;;  %v348_v54 = vrot.slane %v346_v45, 4  ;;  %v1466_v18 = vld [vmem:[%s1851_s4 + $0x8] sm:$0xf]  ;;  %s1777_s28 = smov 64  }
  0x35   : > { %v1438_v52 = vcombine.low %v302_v43, %v316_v47  ;;  %v381_v53 = vrot.slane %v380_v44, 4  ;;  %v351_v55 = vrot.slane %v349_v46, 5  ;;  %v399_v57 = vrot.slane %v397_v41, 5  ;;  %v1467_v19 = vld [vmem:[%s1851_s4 + $0xc] sm:$0x1]  ;;  %p1584_p10 = scmp.ne.s32.totalorder %s1743_s12, 1 }
  0x36   : > { %v394_v56 = vor.u32 %v393_v49, %v390_v39  ;;  %v360_v58 = vshrl.u32 %v280_v42, 16  ;;  %v363_v59 = vshll.u32 %v280_v42, 16  ;;  %v357_v61 = vrot.slane %v355_v51, 5  ;;  %v1468_v24 = vld [vmem:[%s1851_s4 + $0x10] sm:$0xf] }
  0x37   : > { %413 = vrot.lane.b32.xlu0 %v1438_v52, %s1771_s10  ;;  %v352_v60 = vor.u32 %v351_v55, %v348_v54  ;;  %v369_v62 = vshll.u32 %v281_v50, 16  ;;  %v386_v63 = vsel %vm1910_vm6, %v381_v53, %v385_v48  ;;  %v645_v16 = vshrl.u32 %v1474_v5, 16  ;;  %v1469_v28 = vld [vmem:[%s1851_s4 + $0x14] sm:$0x1]  ;;  %v1478_v34 = vld [vmem:[%s1851_s4 + $0x38] sm:$0xf] }
  0x38   : > { %v395_v0 = vrot.slane %v394_v56, 4  ;;  %v362_v1 = vrot.slane %v360_v58, 4  ;;  %v365_v2 = vrot.slane %v363_v59, 5  ;;  %v648_v17 = vshll.u32 %v1474_v5, 16  ;;  %v1697_v36 = vld [vmem:[%s1851_s4 + $0x8] ss:$8 sps:$4 sm:$0xff]  }
  0x39   : > { %v353_v3 = vrot.slane %v352_v60, 4  ;;  %v371_v4 = vrot.slane %v369_v62, 5  ;;  %v654_v21 = vshll.u32 %v1475_v10, 16  ;;  %v659_v22 = vshrl.u32 %v1476_v11, 16  ;;  %v1698_v40 = vld [vmem:[%s1851_s4 + $0x38] ss:$8 sps:$4 sm:$0xff]  }
  0x3a   : > { %v400_v6 = vsel %vm1910_vm6, %v395_v0, %v399_v57  ;;  %v366_v8 = vor.u32 %v365_v2, %v362_v1  ;;  %v662_v23 = vshll.u32 %v1476_v11, 16  ;;  %v647_v25 = vrot.slane %v645_v16, 4  ;;  %v1479_v48 = vld [vmem:[%s1851_s4 + $0x3c] sm:$0x1]  ;;  %v1480_v54 = vld [vmem:[%s1851_s4 + $0x40] sm:$0xf] }
  0x3b   : > { %v1441_v13 = vcombine.low %v386_v63, %v400_v6  ;;  %v358_v14 = vsel %vm1910_vm6, %v353_v3, %v357_v61  ;;  %v650_v26 = vrot.slane %v648_v17, 5  ;;  %v668_v27 = vshll.u32 %v1477_v12, 16  ;;  %v1481_v58 = vld [vmem:[%s1851_s4 + $0x44] sm:$0x1]  ;;  %v1470_v0 = vld [vmem:[%s1851_s4 + $0x18] sm:$0xf] }
  0x3c   : > { %v367_v20 = vrot.slane %v366_v8, 4  ;;  %v589_v29 = vshrl.u32 %v1466_v18, 16  ;;  %v656_v31 = vrot.slane %v654_v21, 5  ;;  %v661_v32 = vrot.slane %v659_v22, 4  ;;  %v1699_v1 = vld [vmem:[%s1851_s4 + $0x18] ss:$8 sps:$4 sm:$0xff]  }
  0x3d   : > { %419 = vrot.lane.b32.xlu1 %v1441_v13, %s1771_s10  ;;  %v664_v33 = vrot.slane %v662_v23, 5  ;;  %v651_v37 = vor.u32 %v650_v26, %v647_v25  ;;  %v670_v38 = vrot.slane %v668_v27, 5  ;;  %v592_v42 = vshll.u32 %v1466_v18, 16  ;;  %v1471_v6 = vld [vmem:[%s1851_s4 + $0x1c] sm:$0x1] }
  0x3e   : > { %v372_v30 = vsel %vm1910_vm6, %v367_v20, %v371_v4  ;;  %v591_v39 = vrot.slane %v589_v29, 4  ;;  %v598_v43 = vshll.u32 %v1467_v19, 16  ;;  %v603_v44 = vshrl.u32 %v1468_v24, 16  ;;  %v1472_v13 = vld [vmem:[%s1851_s4 + $0x20] sm:$0xf] }
  0x3f   : > { %v1440_v35 = vcombine.low %v358_v14, %v372_v30  ;;  %v665_v41 = vor.u32 %v664_v33, %v661_v32  ;;  %v652_v45 = vrot.slane %v651_v37, 4  ;;  %v606_v46 = vshll.u32 %v1468_v24, 16  ;;  %v1473_v17 = vld [vmem:[%s1851_s4 + $0x24] sm:$0x1]  ;;  %v1494_v23 = vld [vmem:[%s1851_s4 + $0x28] sm:$0xe] }
  0x40   : > { %v612_v47 = vshll.u32 %v1469_v28, 16  ;;  %v673_v49 = vshrl.u32 %v1478_v34, 16  ;;  %v594_v51 = vrot.slane %v592_v42, 5  ;;  %v600_v52 = vrot.slane %v598_v43, 5  ;;  %v1495_v24 = vld [vmem:[%s1851_s4 + $0x2c] sm:$0x1] }
  0x41   : > { %417 = vrot.lane.b32.xlu0 %v1440_v35, %s1771_s10  ;;  %559 = vrot.lane.b32.xlu1 %v1696_v15, %s1772_s11  ;;  %v666_v50 = vrot.slane %v665_v41, 4  ;;  %v605_v53 = vrot.slane %v603_v44, 4  ;;  %v657_v55 = vsel %vm1910_vm6, %v652_v45, %v656_v31  ;;  %v608_v56 = vrot.slane %v606_v46, 5  ;;  %v1496_v29 = vld [vmem:[%s1851_s4 + $0x30] sm:$0xe] }
  0x42   : > { %v614_v57 = vrot.slane %v612_v47, 5  ;;  %v675_v59 = vrot.slane %v673_v49, 4  ;;  %v595_v61 = vor.u32 %v594_v51, %v591_v39  ;;  %v676_v62 = vshll.u32 %v1478_v34, 16  ;;  %v1497_v30 = vld [vmem:[%s1851_s4 + $0x34] sm:$0x1] }
  0x43   : > { %v671_v60 = vsel %vm1910_vm6, %v666_v50, %v670_v38  ;;  %v682_v63 = vshll.u32 %v1479_v48, 16  ;;  %v609_v3 = vor.u32 %v608_v56, %v605_v53  ;;  %v687_v4 = vshrl.u32 %v1480_v54, 16  ;;  %v1486_v35 = vld [vmem:[%s1851_s4 + $0x8] sm:$0xe]  ;;  %v1488_v41 = vld [vmem:[%s1851_s4 + $0x10] sm:$0xe] }
  0x44   : > { %v1484_v2 = vcombine.low %v657_v55, %v671_v60  ;;  %v690_v5 = vshll.u32 %v1480_v54, 16  ;;  %v596_v8 = vrot.slane %v595_v61, 4  ;;  %v678_v10 = vrot.slane %v676_v62, 5  ;;  %v1489_v46 = vld [vmem:[%s1851_s4 + $0x14] sm:$0x1] }
  0x45   : > { %555 = vrot.lane.b32.xlu0 %v1697_v36, %s1772_s11  ;;  %561 = vrot.lane.b32.xlu1 %v1698_v40, %s1772_s11  ;;  %v684_v11 = vrot.slane %v682_v63, 5  ;;  %v696_v12 = vshll.u32 %v1481_v58, 16  ;;  %v610_v14 = vrot.slane %v609_v3, 4  ;;  %v689_v15 = vrot.slane %v687_v4, 4  ;;  %v1487_v36 = vld [vmem:[%s1851_s4 + $0xc] sm:$0x1] }
  0x46   : > { %v692_v16 = vrot.slane %v690_v5, 5  ;;  %v617_v18 = vshrl.u32 %v1470_v0, 16  ;;  %v601_v19 = vsel %vm1910_vm6, %v596_v8, %v600_v52  ;;  %v679_v20 = vor.u32 %v678_v10, %v675_v59  ;;  %v1498_v47 = vld [vmem:[%s1851_s4 + $0x38] sm:$0xe]  ;;  %v1499_v52 = vld [vmem:[%s1851_s4 + $0x3c] sm:$0x1] }
  0x47   : > { %v698_v21 = vrot.slane %v696_v12, 5  ;;  %v620_v22 = vshll.u32 %v1470_v0, 16  ;;  %v615_v25 = vsel %vm1910_vm6, %v610_v14, %v614_v57  ;;  %v626_v28 = vshll.u32 %v1471_v6, 16  ;;  %v1500_v53 = vld [vmem:[%s1851_s4 + $0x40] sm:$0xe] }
  0x48   : > { %v693_v26 = vor.u32 %v692_v16, %v689_v15  ;;  %v619_v27 = vrot.slane %v617_v18, 4  ;;  %v1482_v31 = vcombine.low %v601_v19, %v615_v25  ;;  %v680_v32 = vrot.slane %v679_v20, 4  ;;  %v1501_v54 = vld [vmem:[%s1851_s4 + $0x44] sm:$0x1]  ;;  %v1490_v59 = vld [vmem:[%s1851_s4 + $0x18] sm:$0xe] }
  0x49   : > { %557 = vrot.lane.b32.xlu0 %v1699_v1, %s1772_s11  ;;  %716 = vrot.lane.b32.xlu1 %v1484_v2, %s1773_s13  ;;  %v622_v33 = vrot.slane %v620_v22, 5  ;;  %v631_v34 = vshrl.u32 %v1472_v13, 16  ;;  %v628_v38 = vrot.slane %v626_v28, 5  ;;  %v634_v39 = vshll.u32 %v1472_v13, 16  ;;  %v1491_v0 = vld [vmem:[%s1851_s4 + $0x1c] sm:$0x1] }
  0x4a   : > { %v694_v37 = vrot.slane %v693_v26, 4  ;;  %v640_v40 = vshll.u32 %v1473_v17, 16  ;;  %v685_v42 = vsel %vm1910_vm6, %v680_v32, %v684_v11  ;;  %v1506_v45 = vrot.slane %v1494_v23, 9  ;;  %v1492_v4 = vld [vmem:[%s1851_s4 + $0x20] sm:$0xe] }
  0x4b   : > { %v623_v43 = vor.u32 %v622_v33, %v619_v27  ;;  %v633_v44 = vrot.slane %v631_v34, 4  ;;  %v636_v49 = vrot.slane %v634_v39, 5  ;;  %v779_v51 = vrot.slane %v1495_v24, 5  ;;  %v1493_v15 = vld [vmem:[%s1851_s4 + $0x24] sm:$0x1] }
  0x4c   : > { %v699_v48 = vsel %vm1910_vm6, %v694_v37, %v698_v21  ;;  %v642_v50 = vrot.slane %v640_v40, 5  ;;  %v1507_v57 = vrot.slane %v1496_v29, 9  ;;  %v783_v58 = vrot.slane %v1497_v30, 5  ;;  %v1700_v28 = vld [vmem:[%s1851_s4 + $0x30] ss:$8 sps:$4 sm:$0xff]  }
  0x4d   : > { %712 = vrot.lane.b32.xlu0 %v1482_v31, %s1773_s13  ;;  %v1485_v55 = vcombine.low %v685_v42, %v699_v48  ;;  %v624_v56 = vrot.slane %v623_v43, 4  ;;  %v637_v60 = vor.u32 %v636_v49, %v633_v44  ;;  %v780_v61 = vsel %vm1863_vm3, %v1506_v45, %v779_v51  ;;  %v1534_v29 = vld [vmem:[%s1851_s4 + $0x30] sm:$0xf]  ;;  %v1535_v30 = vld [vmem:[%s1851_s4 + $0x34] sm:$0x1] }
  0x4e   : > { %v1502_v62 = vrot.slane %v1486_v35, 9  ;;  %v763_v63 = vrot.slane %v1487_v36, 5  ;;  %v784_v1 = vsel %vm1863_vm3, %v1507_v57, %v783_v58  ;;  %v1503_v2 = vrot.slane %v1488_v41, 9  ;;  %v1536_v31 = vld [vmem:[%s1851_s4 + $0x38] sm:$0xf] }
  0x4f   : > { %718 = vrot.lane.b32.xlu1 %v1485_v55, %s1773_s13  ;;  %v767_v3 = vrot.slane %v1489_v46, 5  ;;  %v629_v5 = vsel %vm1910_vm6, %v624_v56, %v628_v38  ;;  %v638_v6 = vrot.slane %v637_v60, 4  ;;  %v1512_v8 = vcombine.low %v780_v61, %v784_v1  ;;  %v1537_v33 = vld [vmem:[%s1851_s4 + $0x3c] sm:$0x1]  ;;  %v1526_v41 = vld [vmem:[%s1851_s4 + $0x10] sm:$0xf] }
  0x50   : > { %v1508_v10 = vrot.slane %v1498_v47, 9  ;;  %v764_v11 = vsel %vm1863_vm3, %v1502_v62, %v763_v63  ;;  %v787_v12 = vrot.slane %v1499_v52, 5  ;;  %v1509_v13 = vrot.slane %v1500_v53, 9  ;;  %v1527_v45 = vld [vmem:[%s1851_s4 + $0x14] sm:$0x1] }
  0x51   : > { %v791_v14 = vrot.slane %v1501_v54, 5  ;;  %v643_v16 = vsel %vm1910_vm6, %v638_v6, %v642_v50  ;;  %v768_v17 = vsel %vm1863_vm3, %v1503_v2, %v767_v3  ;;  %v1504_v18 = vrot.slane %v1490_v59, 9  ;;  %v1702_v47 = vld [vmem:[%s1851_s4 + $0x40] ss:$8 sps:$4 sm:$0xff]   ;;  %v1528_v51 = vld [vmem:[%s1851_s4 + $0x18] sm:$0xf] }
  0x52   : > { %v771_v19 = vrot.slane %v1491_v0, 5  ;;  %v1483_v20 = vcombine.low %v629_v5, %v643_v16  ;;  %v788_v21 = vsel %vm1863_vm3, %v1508_v10, %v787_v12  ;;  %v1505_v23 = vrot.slane %v1492_v4, 9  ;;  %v1529_v54 = vld [vmem:[%s1851_s4 + $0x1c] sm:$0x1]  ;;  %v1701_v58 = vld [vmem:[%s1851_s4 + $0x10] ss:$8 sps:$4 sm:$0xff]  }
  0x53   : > { %809 = vrot.lane.b32.xlu1 %v1512_v8, %s1774_s14  ;;  %v792_v22 = vsel %vm1863_vm3, %v1509_v13, %v791_v14  ;;  %v775_v26 = vrot.slane %v1493_v15, 5  ;;  %v1510_v27 = vcombine.low %v764_v11, %v768_v17  ;;  %v941_v34 = vshrl.u32 %v1534_v29, 16  ;;  %v1538_v63 = vld [vmem:[%s1851_s4 + $0x40] sm:$0xf]  ;;  %v1539_v3 = vld [vmem:[%s1851_s4 + $0x44] sm:$0x1] }
  0x54   : > { %v1513_v24 = vcombine.low %v788_v21, %v792_v22  ;;  %v772_v25 = vsel %vm1863_vm3, %v1504_v18, %v771_v19  ;;  %714 = vrot.lane.b32.xlu0 %v1483_v20, %s1773_s13  ;;  %v944_v35 = vshll.u32 %v1534_v29, 16  ;;  %v950_v36 = vshll.u32 %v1535_v30, 16  ;;  %v1540_v11 = vld [vmem:[%s1851_s4 + $0x48] sm:$0xf]  ;;  %v1708_v12 = vld [vmem:[%s2038_s26] sm:$0xff]  }
  0x55   : > { %v776_v32 = vsel %vm1863_vm3, %v1505_v23, %v775_v26  ;;  %v955_v38 = vshrl.u32 %v1536_v31, 16  ;;  %v958_v39 = vshll.u32 %v1536_v31, 16  ;;  %v964_v40 = vshll.u32 %v1537_v33, 16  ;;  %v1541_v14 = vld [vmem:[%s1851_s4 + $0x4c] sm:$0x1]  ;;  %1598 = vmatprep.subr.bf16.mxu0 %v1708_v12  ;;  %1616 = vmatprep.subr.bf16.mxu1 %v1708_v12 }
  0x56   : > { %v1511_v37 = vcombine.low %v772_v25, %v776_v32  ;;  %v943_v42 = vrot.slane %v941_v34, 4  ;;  %v946_v43 = vrot.slane %v944_v35, 5  ;;  %v952_v44 = vrot.slane %v950_v36, 5  ;;  %v1703_v18 = vld [vmem:[%s1851_s4 + $0x20] ss:$8 sps:$4 sm:$0xff]   ;;  %1599 = vmatpush3.bf16.msra.mxu0 %v1708_v12  ;;  %1621 = vmatpush3.bf16.msra.mxu1 %v1708_v12 }
  0x57   : > { %811 = vrot.lane.b32.xlu1 %v1513_v24, %s1774_s14  ;;  %v885_v46 = vshrl.u32 %v1526_v41, 16  ;;  %v957_v48 = vrot.slane %v955_v38, 4  ;;  %v960_v49 = vrot.slane %v958_v39, 5  ;;  %v966_v50 = vrot.slane %v964_v40, 5  ;;  %v1530_v23 = vld [vmem:[%s1851_s4 + $0x20] sm:$0xf] }
  0x58   : > { %805 = vrot.lane.b32.xlu0 %v1510_v27, %s1774_s14  ;;  %v888_v52 = vshll.u32 %v1526_v41, 16  ;;  %v947_v53 = vor.u32 %v946_v43, %v943_v42  ;;  %v894_v56 = vshll.u32 %v1527_v45, 16  ;;  %v899_v57 = vshrl.u32 %v1528_v51, 16  ;;  %v1531_v24 = vld [vmem:[%s1851_s4 + $0x24] sm:$0x1]  ;;  %v1709_v35 = vld [vmem:[%s2038_s26 + $0x8] sm:$0xff]  }
  0x59   : > { %v887_v55 = vrot.slane %v885_v46, 4  ;;  %v961_v59 = vor.u32 %v960_v49, %v957_v48  ;;  %v902_v61 = vshll.u32 %v1528_v51, 16  ;;  %v908_v62 = vshll.u32 %v1529_v54, 16  ;;  %v1532_v29 = vld [vmem:[%s1851_s4 + $0x28] sm:$0xf]  ;;  %1600 = vmatprep.subr.bf16.mxu0 %v1709_v35  ;;  %1617 = vmatprep.subr.bf16.mxu1 %v1709_v35 }
  0x5a   : > { %v890_v60 = vrot.slane %v888_v52, 5  ;;  %v948_v0 = vrot.slane %v947_v53, 4  ;;  %v896_v1 = vrot.slane %v894_v56, 5  ;;  %v901_v2 = vrot.slane %v899_v57, 4  ;;  %v1533_v34 = vld [vmem:[%s1851_s4 + $0x2c] sm:$0x1]  ;;  %1601 = vmatpush3.bf16.msra.mxu0 %v1709_v35  ;;  %1622 = vmatpush3.bf16.msra.mxu1 %v1709_v35 }
  0x5b   : > { %855 = vrot.lane.b32.xlu1 %v1700_v28, %s1775_s23  ;;  %v969_v4 = vshrl.u32 %v1538_v63, 16  ;;  %v962_v5 = vrot.slane %v961_v59, 4  ;;  %v904_v8 = vrot.slane %v902_v61, 5  ;;  %v910_v10 = vrot.slane %v908_v62, 5  ;;  %v1554_v40 = vld [vmem:[%s1851_s4 + $0x30] sm:$0xe] }
  0x5c   : > { %807 = vrot.lane.b32.xlu0 %v1511_v37, %s1774_s14  ;;  %v891_v6 = vor.u32 %v890_v60, %v887_v55  ;;  %v953_v13 = vsel %vm1910_vm6, %v948_v0, %v952_v44  ;;  %v972_v16 = vshll.u32 %v1538_v63, 16  ;;  %v978_v17 = vshll.u32 %v1539_v3, 16  ;;  %v1555_v45 = vld [vmem:[%s1851_s4 + $0x34] sm:$0x1]  ;;  %v1557_v51 = vld [vmem:[%s1851_s4 + $0x3c] sm:$0x1] }
  0x5d   : > { %v971_v15 = vrot.slane %v969_v4, 4  ;;  %v967_v19 = vsel %vm1910_vm6, %v962_v5, %v966_v50  ;;  %v905_v21 = vor.u32 %v904_v8, %v901_v2  ;;  %v983_v22 = vshrl.u32 %v1540_v11, 16  ;;  %v1556_v50 = vld [vmem:[%s1851_s4 + $0x38] sm:$0xe]  ;;  %v1546_v56 = vld [vmem:[%s1851_s4 + $0x10] sm:$0xe] }
  0x5e   : > { %v892_v20 = vrot.slane %v891_v6, 4  ;;  %v1544_v25 = vcombine.low %v953_v13, %v967_v19  ;;  %v974_v26 = vrot.slane %v972_v16, 5  ;;  %v980_v27 = vrot.slane %v978_v17, 5  ;;  %v1547_v61 = vld [vmem:[%s1851_s4 + $0x14] sm:$0x1]  ;;  %v1711_v17 = vld [vmem:[%s2038_s26 + $0x18] sm:$0xff]  }
  0x5f   : > { %857 = vrot.lane.b32.xlu1 %v1702_v47, %s1775_s23  ;;  %v986_v28 = vshll.u32 %v1540_v11, 16  ;;  %v906_v31 = vrot.slane %v905_v21, 4  ;;  %v985_v32 = vrot.slane %v983_v22, 4  ;;  %v992_v33 = vshll.u32 %v1541_v14, 16  ;;  %v1710_v62 = vld [vmem:[%s2038_s26 + $0x10] sm:$0xff]  }
  0x60   : > { %851 = vrot.lane.b32.xlu0 %v1701_v58, %s1775_s23  ;;  %v897_v30 = vsel %vm1910_vm6, %v892_v20, %v896_v1  ;;  %v975_v36 = vor.u32 %v974_v26, %v971_v15  ;;  %v913_v38 = vshrl.u32 %v1530_v23, 16  ;;  %v916_v39 = vshll.u32 %v1530_v23, 16  ;;  %v1548_v3 = vld [vmem:[%s1851_s4 + $0x18] sm:$0xe]  ;;  %v1549_v8 = vld [vmem:[%s1851_s4 + $0x1c] sm:$0x1]  ;;  %1602 = vmatprep.subr.bf16.mxu0 %v1710_v62 }
  0x61   : > { %v988_v37 = vrot.slane %v986_v28, 5  ;;  %v911_v41 = vsel %vm1910_vm6, %v906_v31, %v910_v10  ;;  %v994_v42 = vrot.slane %v992_v33, 5  ;;  %v922_v43 = vshll.u32 %v1531_v24, 16  ;;  %1618 = vmatprep.subr.bf16.mxu1 %v1710_v62  ;;  %v1558_v15 = vld [vmem:[%s1851_s4 + $0x40] sm:$0xe]  ;;  %1603 = vmatpush3.bf16.msra.mxu0 %v1710_v62 }
  0x62   : > { %v927_v44 = vshrl.u32 %v1532_v29, 16  ;;  %v1542_v46 = vcombine.low %v897_v30, %v911_v41  ;;  %v976_v47 = vrot.slane %v975_v36, 4  ;;  %v915_v49 = vrot.slane %v913_v38, 4  ;;  %v1559_v16 = vld [vmem:[%s1851_s4 + $0x44] sm:$0x1]  ;;  %1623 = vmatpush3.bf16.msra.mxu1 %v1710_v62  ;;  %1604 = vmatprep.subr.bf16.mxu0 %v1711_v17 }
  0x63   : > { %1012 = vrot.lane.b32.xlu1 %v1544_v25, %s1776_s27  ;;  %v989_v48 = vor.u32 %v988_v37, %v985_v32  ;;  %v918_v52 = vrot.slane %v916_v39, 5  ;;  %v924_v53 = vrot.slane %v922_v43, 5  ;;  %v930_v55 = vshll.u32 %v1532_v29, 16  ;;  %v1560_v22 = vld [vmem:[%s1851_s4 + $0x48] sm:$0xe]  ;;  %1619 = vmatprep.subr.bf16.mxu1 %v1711_v17 }
  0x64   : > { %853 = vrot.lane.b32.xlu0 %v1703_v18, %s1775_s23  ;;  %v929_v54 = vrot.slane %v927_v44, 4  ;;  %vm265_vm7 = vcmask 64512   ;;  %v981_v57 = vsel %vm1910_vm6, %v976_v47, %v980_v27  ;;  %v936_v59 = vshll.u32 %v1533_v34, 16  ;;  %v1561_v26 = vld [vmem:[%s1851_s4 + $0x4c] sm:$0x1] }
  0x65   : > { %v990_v58 = vrot.slane %v989_v48, 4  ;;  %v1566_v60 = vrot.slane %v1554_v40, 9  ;;  %v919_v63 = vor.u32 %v918_v52, %v915_v49  ;;  %v932_v0 = vrot.slane %v930_v55, 5  ;;  %v1550_v28 = vld [vmem:[%s1851_s4 + $0x20] sm:$0xe]  ;;  %1605 = vmatpush3.bf16.msra.mxu0 %v1711_v17 }
  0x66   : > { %v1075_v1 = vrot.slane %v1555_v45, 5  ;;  %v1567_v2 = vrot.slane %v1556_v50, 9  ;;  %v938_v5 = vrot.slane %v936_v59, 5  ;;  %v1079_v6 = vrot.slane %v1557_v51, 5  ;;  %v1551_v32 = vld [vmem:[%s1851_s4 + $0x24] sm:$0x1]  ;;  %1624 = vmatpush3.bf16.msra.mxu1 %v1711_v17 }
  0x67   : > { %v995_v4 = vsel %vm1910_vm6, %v990_v58, %v994_v42  ;;  %v1562_v10 = vrot.slane %v1546_v56, 9  ;;  %v920_v12 = vrot.slane %v919_v63, 4  ;;  %v933_v13 = vor.u32 %v932_v0, %v929_v54  ;;  %v1552_v33 = vld [vmem:[%s1851_s4 + $0x28] sm:$0xe]  ;;  %v1553_v37 = vld [vmem:[%s1851_s4 + $0x2c] sm:$0x1] }
  0x68   : > { %1008 = vrot.lane.b32.xlu0 %v1542_v46, %s1776_s27  ;;  %v1545_v11 = vcombine.low %v981_v57, %v995_v4  ;;  %v1076_v14 = vsel %vm1863_vm3, %v1566_v60, %v1075_v1  ;;  %v1080_v18 = vsel %vm1863_vm3, %v1567_v2, %v1079_v6  ;;  %v1059_v19 = vrot.slane %v1547_v61, 5  ;;  %v1704_v43 = vld [vmem:[%s1851_s4 + $0x10] ss:$8 sps:$4 sm:$0xff]   ;;  %v1705_v47 = vld [vmem:[%s1851_s4] ss:$8 sps:$4 sm:$0xff]  }
  0x69   : > { %v1563_v20 = vrot.slane %v1548_v3, 9  ;;  %v1063_v21 = vrot.slane %v1549_v8, 5  ;;  %v925_v23 = vsel %vm1910_vm6, %v920_v12, %v924_v53  ;;  %v934_v24 = vrot.slane %v933_v13, 4  ;;  %267 = vst.msk [vmem:[#allocation2 + $0x8] sm:$0xff] %vm265_vm7, %v1704_v43  ;;  %v1706_v50 = vld [vmem:[%s1851_s4 + $0x30] ss:$8 sps:$4 sm:$0xff]  }
  0x6a   : > { %1014 = vrot.lane.b32.xlu1 %v1545_v11, %s1776_s27  ;;  %v1572_v25 = vcombine.low %v1076_v14, %v1080_v18  ;;  %v1568_v27 = vrot.slane %v1558_v15, 9  ;;  %v1060_v29 = vsel %vm1863_vm3, %v1562_v10, %v1059_v19  ;;  %v1083_v30 = vrot.slane %v1559_v16, 5  ;;  %266 = vst.msk [vmem:[#allocation2] sm:$0xff] %vm265_vm7, %v1705_v47  ;;  %v1707_v51 = vld [vmem:[%s1851_s4 + $0x20] ss:$8 sps:$4 sm:$0xff]   ;;  %269 = vst.msk [vmem:[#allocation2 + $0x18] sm:$0xff] %vm265_vm7, %v1706_v50 }
  0x6b   : > { %v1569_v31 = vrot.slane %v1560_v22, 9  ;;  %v939_v34 = vsel %vm1910_vm6, %v934_v24, %v938_v5  ;;  %v1064_v35 = vsel %vm1863_vm3, %v1563_v20, %v1063_v21  ;;  %v1087_v36 = vrot.slane %v1561_v26, 5  ;;  %268 = vst.msk [vmem:[#allocation2 + $0x10] sm:$0xff] %vm265_vm7, %v1707_v51  ;;  %v1712_v53 = vld [vmem:[%s2038_s26 + $0x20] ss:$0 sps:$4 sm:$0xff]   ;;  %v1121_v43 = vld [vmem:[#allocation3 + $0x18] sm:$0xff] }
  0x6c   : > { %v1564_v38 = vrot.slane %v1550_v28, 9  ;;  %v1543_v39 = vcombine.low %v925_v23, %v939_v34  ;;  %v1084_v40 = vsel %vm1863_vm3, %v1568_v27, %v1083_v30  ;;  %v1067_v41 = vrot.slane %v1551_v32, 5  ;;  %v1124_v28 = vld [vmem:[#allocation3 + $0x30] sm:$0xff]  ;;  %v1123_v34 = vld [vmem:[#allocation3 + $0x28] sm:$0xff] }
  0x6d   : > { %v1565_v42 = vrot.slane %v1552_v33, 9  ;;  %v1088_v9 = vsel %vm1863_vm3, %v1569_v31, %v1087_v36  ;;  %v1071_v44 = vrot.slane %v1553_v37, 5  ;;  %v1570_v45 = vcombine.low %v1060_v29, %v1064_v35  ;;  %v1122_v29 = vld [vmem:[#allocation3 + $0x20] sm:$0xff]  ;;  %v1125_v31 = vld [vmem:[#allocation3 + $0x38] sm:$0xff]  ;;  %v1120_v37 = vld [vmem:[#allocation3 + $0x10] sm:$0xff] }
  0x6e   : > { %1105 = vrot.lane.b32.xlu1 %v1572_v25, %s1777_s28  ;;  %1010 = vrot.lane.b32.xlu0 %v1543_v39, %s1776_s27  ;;  %v1573_v46 = vcombine.low %v1084_v40, %v1088_v9  ;;  %v1068_v48 = vsel %vm1863_vm3, %v1564_v38, %v1067_v41  ;;  %vm1182_vm8 = vcmask 1043456   ;;  %vm425_vm9 = vcmask 130112   ;;  %v1118_v40 = vld [vmem:[#allocation3] sm:$0xff] }
  0x6f   : > { %v1072_v49 = vsel %vm1863_vm3, %v1565_v42, %v1071_v44  ;;  %1626 = vmatprep.subr.msk.bf16.mxu0 %vm1182_vm8, %v1712_v53  ;;  %v1184_v54 = vsel %vm1182_vm8, %v1712_v53, 0  ;;  %1627 = vmatprep.subr.msk.bf16.mxu1 %vm1182_vm8, %v1712_v53  ;;  %vm521_vm10 = vcmask 195712   ;;  %vm567_vm11 = vcmask 261312  }
  0x70   : > { %v1571_v52 = vcombine.low %v1068_v48, %v1072_v49  ;;  %1607 = vmatpush3.bf16.msra.mxu0 %v1184_v54  ;;  %1625 = vmatpush3.bf16.msra.mxu1 %v1184_v54  ;;  %vm724_vm12 = vcmask 326912   ;;  %vm817_vm13 = vcmask 392512   ;;  %vm863_vm14 = vcmask 458112  }
  0x71   : > { %vm1020_vm15 = vcmask 523712   ;;  %vm1113_vm0 = vcmask 589312   ;;  %vm1169_vm1 = vcmask 588800   ;;  %vm1326_vm2 = vcmask (!%p1584_p10), 523264  }
  0x72   : > { %1107 = vrot.lane.b32.xlu1 %v1573_v46, %s1777_s28  ;;  %1101 = vrot.lane.b32.xlu0 %v1570_v45, %s1777_s28  ;;  %v1119_v45 = vld [vmem:[#allocation3 + $0x8] sm:$0xff] }
  0x76   : > { %1103 = vrot.lane.b32.xlu0 %v1571_v52, %s1777_s28  ;;  %v1585_v52 = vld [vmem:[%s2152_s2] ss:$0 sm:$0xff] (!%p1584_p10) }
  0x95   : > { %v514_v7 = vpop.permute.xlu1 %513 }
  0x97   : > { %v510_v55 = vpop.permute.xlu0 %509 }
  0x99   : > { %v516_v56 = vpop.permute.xlu1 %515 }
  0x9c   : > { %v512_v57 = vpop.permute.xlu0 %511 }
  0xa5   : > { %v416_v58 = vpop.permute.xlu1 %415 }
  0xa6   : > { %427 = vst.msk [vmem:[#allocation2 + $0x8] sm:$0xff] %vm425_vm9, %v416_v58 }
  0xa7   : > { %523 = vst.msk [vmem:[#allocation2 + $0x8] sm:$0xff] %vm521_vm10, %v512_v57 }
  0xa9   : > { %v414_v59 = vpop.permute.xlu0 %413 }
  0xaa   : > { %426 = vst.msk [vmem:[#allocation2] sm:$0xff] %vm425_vm9, %v414_v59 }
  0xab   : > { %522 = vst.msk [vmem:[#allocation2] sm:$0xff] %vm521_vm10, %v510_v55 }
  0xaf   : > { %v420_v60 = vpop.permute.xlu1 %419 }
  0xb0   : > { %429 = vst.msk [vmem:[#allocation2 + $0x18] sm:$0xff] %vm425_vm9, %v420_v60 }
  0xb1   : > { %525 = vst.msk [vmem:[#allocation2 + $0x18] sm:$0xff] %vm521_vm10, %v516_v56 }
  0xb3   : > { %v418_v61 = vpop.permute.xlu0 %417  ;;  %v560_v62 = vpop.permute.xlu1 %559 }
  0xb4   : > { %428 = vst.msk [vmem:[#allocation2 + $0x10] sm:$0xff] %vm425_vm9, %v418_v61 }
  0xb5   : > { %524 = vst.msk [vmem:[#allocation2 + $0x10] sm:$0xff] %vm521_vm10, %v514_v7 }
  0xb6   : > { %570 = vst.msk [vmem:[#allocation2 + $0x10] sm:$0xff] %vm567_vm11, %v560_v62 }
  0xb7   : > { %v556_v63 = vpop.permute.xlu0 %555  ;;  %v562_v0 = vpop.permute.xlu1 %561 }
  0xb8   : > { %568 = vst.msk [vmem:[#allocation2] sm:$0xff] %vm567_vm11, %v556_v63  ;;  %571 = vst.msk [vmem:[#allocation2 + $0x18] sm:$0xff] %vm567_vm11, %v562_v0 }
  0xbb   : > { %v558_v1 = vpop.permute.xlu0 %557  ;;  %v717_v2 = vpop.permute.xlu1 %716 }
  0xbc   : > { %569 = vst.msk [vmem:[#allocation2 + $0x8] sm:$0xff] %vm567_vm11, %v558_v1 }
  0xbd   : > { %727 = vst.msk [vmem:[#allocation2 + $0x10] sm:$0xff] %vm724_vm12, %v717_v2 }
  0xbf   : > { %v713_v3 = vpop.permute.xlu0 %712 }
  0xc0   : > { %725 = vst.msk [vmem:[#allocation2] sm:$0xff] %vm724_vm12, %v713_v3 }
  0xc1   : > { %v719_v4 = vpop.permute.xlu1 %718 }
  0xc2   : > { %728 = vst.msk [vmem:[#allocation2 + $0x18] sm:$0xff] %vm724_vm12, %v719_v4 }
  0xc5   : > { %v810_v5 = vpop.permute.xlu1 %809 }
  0xc6   : > { %820 = vst.msk [vmem:[#allocation2 + $0x10] sm:$0xff] %vm817_vm13, %v810_v5  ;;  %v715_v6 = vpop.permute.xlu0 %714 }
  0xc7   : > { %726 = vst.msk [vmem:[#allocation2 + $0x8] sm:$0xff] %vm724_vm12, %v715_v6 }
  0xc9   : > { %v812_v8 = vpop.permute.xlu1 %811 }
  0xca   : > { %821 = vst.msk [vmem:[#allocation2 + $0x18] sm:$0xff] %vm817_vm13, %v812_v8  ;;  %v806_v10 = vpop.permute.xlu0 %805 }
  0xcb   : > { %818 = vst.msk [vmem:[#allocation2] sm:$0xff] %vm817_vm13, %v806_v10 }
  0xcd   : > { %v856_v11 = vpop.permute.xlu1 %855 }
  0xce   : > { %866 = vst.msk [vmem:[#allocation2 + $0x10] sm:$0xff] %vm863_vm14, %v856_v11  ;;  %v808_v12 = vpop.permute.xlu0 %807 }
  0xcf   : > { %819 = vst.msk [vmem:[#allocation2 + $0x8] sm:$0xff] %vm817_vm13, %v808_v12 }
  0xd1   : > { %v858_v13 = vpop.permute.xlu1 %857 }
  0xd2   : > { %867 = vst.msk [vmem:[#allocation2 + $0x18] sm:$0xff] %vm863_vm14, %v858_v13  ;;  %v852_v14 = vpop.permute.xlu0 %851 }
  0xd3   : > { %864 = vst.msk [vmem:[#allocation2] sm:$0xff] %vm863_vm14, %v852_v14 }
  0xd5   : > { %v1013_v15 = vpop.permute.xlu1 %1012 }
  0xd6   : > { %1023 = vst.msk [vmem:[#allocation2 + $0x10] sm:$0xff] %vm1020_vm15, %v1013_v15  ;;  %v854_v16 = vpop.permute.xlu0 %853 }
  0xd7   : > { %865 = vst.msk [vmem:[#allocation2 + $0x8] sm:$0xff] %vm863_vm14, %v854_v16 }
  0xda   : > { %v1009_v17 = vpop.permute.xlu0 %1008 }
  0xdb   : > { %1021 = vst.msk [vmem:[#allocation2] sm:$0xff] %vm1020_vm15, %v1009_v17 }
  0xdc   : > { %v1015_v18 = vpop.permute.xlu1 %1014 }
  0xdd   : > { %1024 = vst.msk [vmem:[#allocation2 + $0x18] sm:$0xff] %vm1020_vm15, %v1015_v18 }
  0xe0   : > { %v1106_v19 = vpop.permute.xlu1 %1105  ;;  %v1011_v20 = vpop.permute.xlu0 %1010 }
  0xe1   : > { %1116 = vst.msk [vmem:[#allocation2 + $0x10] sm:$0xff] %vm1113_vm0, %v1106_v19 }
  0xe2   : > { %1022 = vst.msk [vmem:[#allocation2 + $0x8] sm:$0xff] %vm1020_vm15, %v1011_v20 }
  0xe4   : > { %v1108_v21 = vpop.permute.xlu1 %1107  ;;  %v1102_v22 = vpop.permute.xlu0 %1101 }
  0xe5   : > { %1117 = vst.msk [vmem:[#allocation2 + $0x18] sm:$0xff] %vm1113_vm0, %v1108_v21  ;;  %1114 = vst.msk [vmem:[#allocation2] sm:$0xff] %vm1113_vm0, %v1102_v22 }
  0xe8   : > { %v1128_v23 = vld [vmem:[#allocation2 + $0x10] sm:$0xff]  ;;  %v1104_v24 = vpop.permute.xlu0 %1103 }
  0xe9   : > { %1612 = vmatprep.mubr.msk.bf16.mxu1 %vm1169_vm1, %v1128_v23  ;;  %1115 = vst.msk [vmem:[#allocation2 + $0x8] sm:$0xff] %vm1113_vm0, %v1104_v24 }
  0xec   : > { %v1129_v25 = vld [vmem:[#allocation2 + $0x18] sm:$0xff]  ;;  %v1126_v26 = vld [vmem:[#allocation2] sm:$0xff] }
  0xed   : > { %1613 = vmatmul.mubr.msk.bf16.vlgmr.msra.gmra.mrb[0].mxu1 %vm1169_vm1, %v1129_v25  ;;  %1608 = vmatprep.mubr.msk.bf16.mxu0 %vm1169_vm1, %v1126_v26 }
  0xf0   : > { %v1127_v27 = vld [vmem:[#allocation2 + $0x8] sm:$0xff] }
  0xf1   : > { %1609 = vmatmul.mubr.msk.bf16.vlgmr.msra.gmra.mrb[0].mxu0 %vm1169_vm1, %v1127_v27 }
 0x1c0   : > { %v1614_v30 = vpop.f32.mrb[0].mxu1 }
 0x1c1   : > { %v1257_v32 = vadd.f32 %v1614_v30, %v1124_v28  ;;  %v1236_v33 = vpop.f32.mrb[1].mxu1 }
 0x1c2   : > { %v1255_v35 = vadd.f32 %v1236_v33, %v1122_v29  ;;  %v1615_v36 = vpop.f32.mrb[2].mxu1 }
 0x1c3   : > { %1265 = vst.msk [vmem:[#allocation3 + $0x30] sm:$0xff] %vm265_vm7, %v1257_v32  ;;  %v1258_v38 = vadd.f32 %v1615_v36, %v1125_v31  ;;  %v1239_v39 = vpop.f32.mrb[3].mxu1 }
 0x1c4   : > { %1263 = vst.msk [vmem:[#allocation3 + $0x20] sm:$0xff] %vm265_vm7, %v1255_v35  ;;  %v1256_v41 = vadd.f32 %v1239_v39, %v1123_v34  ;;  %v1610_v42 = vpop.f32.mrb[0].mxu0  ;;  %1270 = sbr.rel (%p1584_p10) target bundleno = 596 (0x254), region = 40 }
 0x1c5   : > { %1266 = vst.msk [vmem:[#allocation3 + $0x38] sm:$0xff] %vm265_vm7, %v1258_v38  ;;  %v1253_v9 = vadd.f32 %v1610_v42, %v1120_v37  ;;  %v1220_v44 = vpop.f32.mrb[1].mxu0 }
 0x1c6   : > { %1264 = vst.msk [vmem:[#allocation3 + $0x28] sm:$0xff] %vm265_vm7, %v1256_v41  ;;  %v1251_v46 = vadd.f32 %v1220_v44, %v1118_v40  ;;  %v1611_v47 = vpop.f32.mrb[2].mxu0 }
 0x1c7   : > { %1261 = vst.msk [vmem:[#allocation3 + $0x10] sm:$0xff] %vm265_vm7, %v1253_v9  ;;  %v1254_v48 = vadd.f32 %v1611_v47, %v1121_v43  ;;  %v1223_v49 = vpop.f32.mrb[3].mxu0 }
 0x1c8   : > { %1259 = vst.msk [vmem:[#allocation3] sm:$0xff] %vm265_vm7, %v1251_v46  ;;  %v1252_v50 = vadd.f32 %v1223_v49, %v1119_v45 }
 0x1c9   : > { %1262 = vst.msk [vmem:[#allocation3 + $0x18] sm:$0xff] %vm265_vm7, %v1254_v48 }
 0x1ca   : > { %1260 = vst.msk [vmem:[#allocation3 + $0x8] sm:$0xff] %vm265_vm7, %v1252_v50  ;;  %v1277_v63 = vld [vmem:[#allocation3 + $0x30] sm:$0xff] (!%p1584_p10) }
 0x1cb   : > { %v1275_v59 = vld [vmem:[#allocation3 + $0x20] sm:$0xff]  ;;  %v1292_v0 = vadd.f32 %v1585_v52, %v1277_v63 }
 0x1cc   : > { %v1290_v60 = vadd.f32 %v1585_v52, %v1275_v59  ;;  %v1278_v1 = vld [vmem:[#allocation3 + $0x38] sm:$0xff] }
 0x1cd   : > { %v1276_v61 = vld [vmem:[#allocation3 + $0x28] sm:$0xff]  ;;  %v1293_v2 = vadd.f32 %v1585_v52, %v1278_v1 }
 0x1ce   : > { %v1273_v55 = vld [vmem:[#allocation3 + $0x10] sm:$0xff]  ;;  %v1291_v62 = vadd.f32 %v1585_v52, %v1276_v61 }
 0x1cf   : > { %v1271_v51 = vld [vmem:[#allocation3] sm:$0xff]  ;;  %v1288_v56 = vadd.f32 %v1585_v52, %v1273_v55 }
 0x1d0   : > { %v1286_v54 = vadd.f32 %v1585_v52, %v1271_v51  ;;  %v1274_v57 = vld [vmem:[#allocation3 + $0x18] sm:$0xff] }
 0x1d1   : > { %v1272_v53 = vld [vmem:[#allocation3 + $0x8] sm:$0xff]  ;;  %v1289_v58 = vadd.f32 %v1585_v52, %v1274_v57 }
 0x1d2   : > { %1294 = vxpose.xlu0.b32.start [1/8] (short) (narrow) %v1286_v54, 8  ;;  %v1287_v7 = vadd.f32 %v1585_v52, %v1272_v53 }
 0x1d6   : > { %1295 = vxpose.xlu0.b32.cont [2/8] (short) (narrow) %v1287_v7, 8 }
 0x1da   : > { %1296 = vxpose.xlu0.b32.cont [3/8] (short) (narrow) %v1288_v56, 8 }
 0x1de   : > { %1297 = vxpose.xlu0.b32.cont [4/8] (short) (narrow) %v1289_v58, 8 }
 0x1e2   : > { %1298 = vxpose.xlu0.b32.cont [5/8] (short) (narrow) %v1290_v60, 8 }
 0x1e6   : > { %1299 = vxpose.xlu0.b32.cont [6/8] (short) (narrow) %v1291_v62, 8 }
 0x1ea   : > { %1300 = vxpose.xlu0.b32.cont [7/8] (short) (narrow) %v1292_v0, 8 }
 0x1ee   : > { %1301 = vxpose.xlu0.b32.end [8/8] (short) (narrow) %v1293_v2, 8 }
 0x252   : > { %v1310_v3 = vpop.trf.xlu0 }
 0x253   : > { %1327 = vst.msk [vmem:[%s1856_s8] sm:$0xff] %vm1326_vm2, %v1310_v3 }
 0x254 PF: > { %s13_s18 = sadd.s32 1, %s1767_s18   ;;  %s2158_s12 = smov %s1755_s15 }
 0x255   : > { %p10_p11 = scmp.ge.s32.totalorder %s13_s18, 10   ;;  %s2159_s13 = smov %s1759_s16 }
 0x256   : > { %s2160_s14 = smov %s1763_s17  ;;  %s2161_s15 = smov %s2165_s19 }
 0x257   : > { %s2162_s16 = smov %s2169_s20  ;;  %s2163_s17 = smov %s2173_s21 }
 0x258   :  { %12 = sbr.rel (!%p10_p11) target bundleno = 4 (0x4), region = 73 }

</bundles_post_ra>
